<compile_context>
chip_gen: v5e
topology: v5e:2x2
jax: 0.10.0
libtpu: 0.0.40
codegen_flags: <defaults>
</compile_context>

<pallas_src>
import functools

import jax
import jax.numpy as jnp
from jax.experimental import pallas as pl
from jax.experimental.pallas import tpu as pltpu


# ----------------------------------------------------------------------------
# in-kernel building blocks (traced inside the Pallas kernel body)
# ----------------------------------------------------------------------------
def _mlp2(x, w1, b1, g1, be1, w2, b2):
    """MLPLN([D, I, H]): Linear -> LayerNorm -> SiLU -> (Dropout=id) -> Linear."""
    h = jnp.dot(x.astype(jnp.bfloat16), w1.astype(jnp.bfloat16),
                preferred_element_type=jnp.float32) + b1
    mu = jnp.mean(h, axis=-1, keepdims=True)
    var = jnp.mean((h - mu) * (h - mu), axis=-1, keepdims=True)
    h = (h - mu) * jax.lax.rsqrt(var + 1e-5) * g1 + be1          # LN eps = 1e-5
    h = h * jax.nn.sigmoid(h)                                    # SiLU
    # TODO(synk): nn.Dropout is identity here (eval semantics); training mode
    # would need pltpu.prng_random_bits + masking.
    return jnp.dot(h.astype(jnp.bfloat16), w2.astype(jnp.bfloat16),
                   preferred_element_type=jnp.float32) + b2


def _proj_normalize(x, w, b):
    """MLPLN([H, H]) == single Linear, then F.normalize(dim=1) (eps=1e-12)."""
    y = jnp.dot(x.astype(jnp.bfloat16), w.astype(jnp.bfloat16),
                preferred_element_type=jnp.float32) + b
    ss = jnp.sum(y * y, axis=-1, keepdims=True)
    # x / max(||x||, 1e-12)  ==  x * rsqrt(max(||x||^2, 1e-24))   (rsqrt -> EUP)
    return y * jax.lax.rsqrt(jnp.maximum(ss, 1e-24))


# ----------------------------------------------------------------------------
# fused kernel
#   grid = (queue core-shard [parallel], batch tile [parallel],
#           queue-K tile within shard [arbitrary reduction])
# ----------------------------------------------------------------------------
def _moco_pair_kernel(
    # inputs
    x_ref, d_ref,                                   # (TB,G), (TB,Ddrug) f32
    gw1, gb1, gg1, gbe1, gw2, gb2, gpw, gpb,        # ges encoder+proj, stacked (2,...)
    dw1, db1, dg1, dbe1, dw2, db2, dpw, dpb,        # dc  encoder+proj, stacked (2,...)
    qdc_ref, qges_ref,                              # queue blocks (H, TK) bf16
    # outputs
    lat_ref,                                        # (4, TB, H) f32: q_ges,q_dc,k_ges,k_dc
    part_ref,                                       # (1, TB, 2) f32: partial neg exp-sums
    # scratch (persists across the kj reduction axis)
    qlat_sc,                                        # (2, TB, H) bf16: cached q latents
    s_sc,                                           # (2, TB, 1) f32:  running exp-sums
    *, inv_t,
):
    kj = pl.program_id(2)

    # --- encoders + projection heads: once per (shard, batch tile) -----------
    @pl.when(kj == 0)
    def _encode():
        x = x_ref[...]
        d = d_ref[...]
        for i in range(2):                          # 0 = encoder_q, 1 = encoder_k
            ges = _proj_normalize(
                _mlp2(x, gw1[i], gb1[i], gg1[i], gbe1[i], gw2[i], gb2[i]),
                gpw[i], gpb[i])
            dc = _proj_normalize(
                _mlp2(d, dw1[i], db1[i], dg1[i], dbe1[i], dw2[i], db2[i]),
                dpw[i], dpb[i])
            lat_ref[2 * i + 0] = ges
            lat_ref[2 * i + 1] = dc
            if i == 0:
                # bf16 lhs cache for the queue matmuls (avoid re-reading the
                # f32 output block + re-casting on every reduction step).
                qlat_sc[0] = ges.astype(jnp.bfloat16)
                qlat_sc[1] = dc.astype(jnp.bfloat16)
        s_sc[...] = jnp.zeros_like(s_sc)

    # --- negatives for this queue block -------------------------------------
    # Fixed 1/T shift instead of an online max: both q and the queue columns
    # are L2-normalized, so every logit <= 1/T (wrapper asserts 2/T < 80 so
    # exp(z - 1/T) cannot underflow f32).
    z_ges = jnp.dot(qlat_sc[0], qdc_ref[...],
                    preferred_element_type=jnp.float32) * inv_t        # (TB, TK)
    z_dc = jnp.dot(qlat_sc[1], qges_ref[...],
                   preferred_element_type=jnp.float32) * inv_t         # (TB, TK)
    s_sc[0] = s_sc[0] + jnp.sum(jnp.exp(z_ges - inv_t), axis=-1, keepdims=True)
    s_sc[1] = s_sc[1] + jnp.sum(jnp.exp(z_dc - inv_t), axis=-1, keepdims=True)

    # --- flush this shard's partial exp-sums (positives added in the wrapper)
    @pl.when(kj == pl.num_programs(2) - 1)
    def _flush():
        part_ref[0, :, 0:1] = s_sc[0]
        part_ref[0, :, 1:2] = s_sc[1]


# ----------------------------------------------------------------------------
# tiling heuristics
# ----------------------------------------------------------------------------
def _pick_batch_tile(n, cap=1024):
    """Largest batch tile (ideally the whole batch -> queue streamed once)."""
    if n <= cap:
        return n
    for t in range(cap, 7, -8):                     # multiple-of-8 divisor
        if n % t == 0:
            return t
    return n                                        # no aligned divisor found


def _pick_queue_tiling(k, num_shards=None, tk=None):
    """(num_shards, tk) with k % (num_shards*tk) == 0 and a lane-legal block."""
    if num_shards is None:
        # Shard the queue across (up to) 2 TensorCores when the split stays
        # lane-aligned: ~2x on v7x (2 TCs share the queue stream), near-free
        # on single-TC v5e/v6e (one extra cheap encoder pass, serial).
        num_shards = 2 if k % 256 == 0 else 1
    assert k % num_shards == 0
    per_shard = k // num_shards
    if tk is None:
        if per_shard % 128 == 0:
            tk = min(per_shard, 1024)               # keep tk in the 128..1024 range
            while per_shard % tk:
                tk -= 128
        else:
            tk = per_shard                          # single full-extent block
    assert per_shard % tk == 0
    assert tk % 128 == 0 or (num_shards == 1 and tk == k), (
        "queue tile must be lane-aligned (multiple of 128) or the full queue")
    return num_shards, tk


def _vmem_limit_bytes(tb, tk, h, gene_dim, drug_dim, w_list, weight_bufs):
    """Rough scoped-VMEM requirement; clamp to [32 MiB, 48 MiB] (v7x-safe)."""
    q_blk = 2 * (h * tk * 2) * 2                         # 2 bf16 queue blocks, 2 bufs
    io_blk = 2 * tb * (gene_dim + drug_dim) * 4          # x/d blocks, 2 bufs
    out_blk = 2 * (4 * tb * h * 4 + tb * 2 * 4)          # lat + partial blocks
    w_bytes = sum(int(w.size) * 4 for w in w_list) * weight_bufs
    scratch = 2 * tb * h * 2 + 2 * tb * 4
    mid = max(int(w.shape[-1]) for w in w_list)
    tmp = 2 * tb * tk * 4 + 6 * tb * mid * 4             # z blocks + activations
    est = q_blk + io_blk + out_blk + w_bytes + scratch + tmp
    return int(min(max(2 * est, 32 << 20), 48 << 20))


# ----------------------------------------------------------------------------
# wrapper: MoCoPair.forward (infocore=False)
# ----------------------------------------------------------------------------
def moco_pair_forward(diff_ges, drug_repr, params_q, params_k,
                      queue_ges, queue_dc, temperature,
                      *, tb=None, tk=None, num_queue_shards=None,
                      single_buffer_weights=True):
    n, gene_dim = diff_ges.shape
    drug_dim = drug_repr.shape[1]
    h, k = queue_ges.shape
    inv_t = float(1.0 / temperature)
    # fixed-shift LSE is valid because all logits lie in [-1/T, 1/T]; if this
    # fires (tiny T), revert to the online-max logsumexp.
    assert 2.0 * inv_t < 80.0, "temperature too small for fixed-shift exp-sum"

    # TODO(synk): ragged batches / queue sizes (n % tb != 0, odd K) would need
    # padding or pl.when masking; handled here only via tile selection.
    tb = _pick_batch_tile(n) if tb is None else tb
    assert n % tb == 0 and (tb % 8 == 0 or tb == n)
    ncs, tk = _pick_queue_tiling(k, num_queue_shards, tk)
    steps_per_shard = (k // ncs) // tk
    grid = (ncs, n // tb, steps_per_shard)

    # stream the queues in bf16 (matches the bf16-MXU math used for l_neg; in a
    # real MoCo loop the queue buffers themselves would be stored as bf16).
    queue_dc_bf = queue_dc.astype(jnp.bfloat16)
    queue_ges_bf = queue_ges.astype(jnp.bfloat16)

    # stack q / k parameters on a leading axis -> one weight DMA serves both
    # the q and the k (momentum-copy) encoder passes.
    stacked = jax.tree_util.tree_map(lambda a, b: jnp.stack([a, b]),
                                     params_q, params_k)
    w_list = [
        stacked["ges_enc"]["w1"], stacked["ges_enc"]["b1"],
        stacked["ges_enc"]["g1"], stacked["ges_enc"]["be1"],
        stacked["ges_enc"]["w2"], stacked["ges_enc"]["b2"],
        stacked["ges_proj"]["w"], stacked["ges_proj"]["b"],
        stacked["dc_enc"]["w1"], stacked["dc_enc"]["b1"],
        stacked["dc_enc"]["g1"], stacked["dc_enc"]["be1"],
        stacked["dc_enc"]["w2"], stacked["dc_enc"]["b2"],
        stacked["dc_proj"]["w"], stacked["dc_proj"]["b"],
    ]

    # weights never change block index -> single-buffer them to save VMEM.
    w_spec_kwargs = {}
    if single_buffer_weights:
        w_spec_kwargs["pipeline_mode"] = pl.Buffered(1)
    w_specs = [pl.BlockSpec(w.shape, lambda ci, bi, kj: (0, 0, 0),
                            **w_spec_kwargs) for w in w_list]

    q_idx = lambda ci, bi, kj: (0, ci * steps_per_shard + kj)
    in_specs = [
        pl.BlockSpec((tb, gene_dim), lambda ci, bi, kj: (bi, 0)),
        pl.BlockSpec((tb, drug_dim), lambda ci, bi, kj: (bi, 0)),
        *w_specs,
        pl.BlockSpec((h, tk), q_idx),                # queue_dc  (bf16)
        pl.BlockSpec((h, tk), q_idx),                # queue_ges (bf16)
    ]

    out_shape = (
        jax.ShapeDtypeStruct((ncs * 4, n, h), jnp.float32),  # latents (per shard copy)
        jax.ShapeDtypeStruct((ncs, n, 2), jnp.float32),      # partial neg exp-sums
    )
    out_specs = (
        pl.BlockSpec((4, tb, h), lambda ci, bi, kj: (ci, bi, 0)),
        pl.BlockSpec((1, tb, 2), lambda ci, bi, kj: (ci, bi, 0)),
    )

    kern = functools.partial(_moco_pair_kernel, inv_t=inv_t)
    lat_all, part = pl.pallas_call(
        kern,
        out_shape=out_shape,
        grid_spec=pltpu.PrefetchScalarGridSpec(
            num_scalar_prefetch=0,
            grid=grid,
            in_specs=in_specs,
            out_specs=out_specs,
            scratch_shapes=[pltpu.VMEM((2, tb, h), jnp.bfloat16),
                            pltpu.VMEM((2, tb, 1), jnp.float32)]),
        compiler_params=pltpu.CompilerParams(
            dimension_semantics=("parallel", "parallel", "arbitrary"),
            vmem_limit_bytes=_vmem_limit_bytes(
                tb, tk, h, gene_dim, drug_dim, w_list,
                1 if single_buffer_weights else 2)),
    )(diff_ges, drug_repr, *w_list, queue_dc_bf, queue_ges_bf)

    # ---- tiny O(N) epilogue: combine per-shard partials + positive logits ---
    q_ges, q_dc, k_ges, k_dc = lat_all[0], lat_all[1], lat_all[2], lat_all[3]
    lp_ges = jnp.sum(q_ges * k_dc, axis=-1) * inv_t
    lp_dc = jnp.sum(q_dc * k_ges, axis=-1) * inv_t
    s_neg = jnp.sum(part, axis=0)                    # (n, 2) sum over queue shards
    loss_ges = inv_t + jnp.log(s_neg[:, 0] + jnp.exp(lp_ges - inv_t)) - lp_ges
    loss_dc = inv_t + jnp.log(s_neg[:, 1] + jnp.exp(lp_dc - inv_t)) - lp_dc
    return loss_ges, loss_dc, q_ges, q_dc, k_ges, k_dc


# ----------------------------------------------------------------------------
# parameter construction (deterministic, mimics module __init__ shapes)
# ----------------------------------------------------------------------------
def make_mlp2_params(key, d_in, d_mid, d_out):
    k1, k2, k3, k4 = jax.random.split(key, 4)
    return {
        "w1": jax.random.normal(k1, (d_in, d_mid), jnp.float32) * 0.1,
        "b1": jax.random.normal(k2, (1, d_mid), jnp.float32) * 0.01,
        "g1": jnp.ones((1, d_mid), jnp.float32),     # LayerNorm gamma
        "be1": jnp.zeros((1, d_mid), jnp.float32),   # LayerNorm beta
        "w2": jax.random.normal(k3, (d_mid, d_out), jnp.float32) * 0.1,
        "b2": jax.random.normal(k4, (1, d_out), jnp.float32) * 0.01,
    }


def make_proj_params(key, d):
    k1, k2 = jax.random.split(key, 2)
    return {
        "w": jax.random.normal(k1, (d, d), jnp.float32) * 0.1,
        "b": jax.random.normal(k2, (1, d), jnp.float32) * 0.01,
    }


def make_contrast_pair_params(key, gene_dim, enc_intldim, enc_hiddim,
                              drug_dim, dc_intldim):
    kg, kgp, kd, kdp = jax.random.split(key, 4)
    return {
        "ges_enc": make_mlp2_params(kg, gene_dim, enc_intldim, enc_hiddim),
        "ges_proj": make_proj_params(kgp, enc_hiddim),   # args.proj == 'linear'
        "dc_enc": make_mlp2_params(kd, drug_dim, dc_intldim, enc_hiddim),
        "dc_proj": make_proj_params(kdp, enc_hiddim),
    }


# ----------------------------------------------------------------------------
# pure-JAX reference (same bf16-MXU math) for a numerical sanity check
# ----------------------------------------------------------------------------
def _ref_mlp2(x, p):
    h = jnp.dot(x.astype(jnp.bfloat16), p["w1"].astype(jnp.bfloat16),
                preferred_element_type=jnp.float32) + p["b1"]
    mu = jnp.mean(h, axis=-1, keepdims=True)
    var = jnp.mean((h - mu) * (h - mu), axis=-1, keepdims=True)
    h = (h - mu) * jax.lax.rsqrt(var + 1e-5) * p["g1"] + p["be1"]
    h = h * jax.nn.sigmoid(h)
    return jnp.dot(h.astype(jnp.bfloat16), p["w2"].astype(jnp.bfloat16),
                   preferred_element_type=jnp.float32) + p["b2"]


def _ref_proj(x, p):
    y = jnp.dot(x.astype(jnp.bfloat16), p["w"].astype(jnp.bfloat16),
                preferred_element_type=jnp.float32) + p["b"]
    return y / jnp.maximum(jnp.sqrt(jnp.sum(y * y, -1, keepdims=True)), 1e-12)


def _ref_forward(diff_ges, drug_repr, pq, pk, queue_ges, queue_dc, t):
    def enc(p):
        ges = _ref_proj(_ref_mlp2(diff_ges, p["ges_enc"]), p["ges_proj"])
        dc = _ref_proj(_ref_mlp2(drug_repr, p["dc_enc"]), p["dc_proj"])
        return ges, dc

    q_ges, q_dc = enc(pq)
    k_ges, k_dc = enc(pk)

    def ce(q, kk, queue):
        l_pos = jnp.sum(q * kk, -1, keepdims=True)
        l_neg = jnp.dot(q.astype(jnp.bfloat16), queue.astype(jnp.bfloat16),
                        preferred_element_type=jnp.float32)
        logits = jnp.concatenate([l_pos, l_neg], axis=1) / t
        return jax.nn.logsumexp(logits, axis=-1) - logits[:, 0]

    return (ce(q_ges, k_dc, queue_dc), ce(q_dc, k_ges, queue_ges),
            q_ges, q_dc, k_ges, k_dc)


# ----------------------------------------------------------------------------
# main
# ----------------------------------------------------------------------------
if __name__ == "__main__":
    # small synthetic config (args)
    N = 16            # batch
    GENE_DIM = 32     # args.gene_dim
    ENC_INTLDIM = 32  # args.enc_intldim   (enc_nlayers = 2)
    ENC_HIDDIM = 16   # args.enc_hiddim
    DRUG_DIM = 24     # drug representation dim
    DC_INTLDIM = 32   # args.dc_intldim    (dc_nlayers = 1)
    K = 512           # args.moco_k
    T = 0.07          # args.temperature

    root = jax.random.PRNGKey(0)
    k_x, k_drug, k_qparams, k_qges, k_qdc = jax.random.split(root, 5)

    # inputs: diff_ges (N, gene_dim); drug_repr = dict-gather of per-drug vectors
    diff_ges = jax.random.normal(k_x, (N, GENE_DIM), jnp.float32)
    drug_repr = jax.random.normal(k_drug, (N, DRUG_DIM), jnp.float32)

    # encoder_q params; encoder_k initialized as an exact copy (MoCo init)
    params_q = make_contrast_pair_params(
        k_qparams, GENE_DIM, ENC_INTLDIM, ENC_HIDDIM, DRUG_DIM, DC_INTLDIM)
    params_k = jax.tree_util.tree_map(lambda a: a, params_q)

    # queues: randn(enc_hiddim, K) normalized along dim=0
    queue_ges = jax.random.normal(k_qges, (ENC_HIDDIM, K), jnp.float32)
    queue_ges = queue_ges / jnp.maximum(
        jnp.sqrt(jnp.sum(queue_ges * queue_ges, axis=0, keepdims=True)), 1e-12)
    queue_dc = jax.random.normal(k_qdc, (ENC_HIDDIM, K), jnp.float32)
    queue_dc = queue_dc / jnp.maximum(
        jnp.sqrt(jnp.sum(queue_dc * queue_dc, axis=0, keepdims=True)), 1e-12)

    def run(**tiling):
        def call(single_buf):
            fwd = jax.jit(functools.partial(
                moco_pair_forward, temperature=T,
                single_buffer_weights=single_buf, **tiling))
            return jax.block_until_ready(
                fwd(diff_ges, drug_repr, params_q, params_k,
                    queue_ges, queue_dc))
        try:
            return call(True)
        except Exception:
            # TODO(synk): pl.Buffered(1) rejected on this jax build -> fall
            # back to default (double-buffered) weight pipelining.
            return call(False)

    refs = _ref_forward(diff_ges, drug_repr, params_q, params_k,
                        queue_ges, queue_dc, T)

    # 1) default tiling: tb = N (queue streamed once), queue split into 2
    #    "parallel" core shards;  2) explicit smaller tiles to exercise every
    #    grid axis (2 shards x 2 batch tiles x 2 reduction steps).
    for tiling in ({}, {"tb": 8, "tk": 128}):
        outs = run(**tiling)
        loss_ges, loss_dc, q_ges_l, q_dc_l, k_ges_l, k_dc_l = outs

        # shape / finiteness checks
        assert loss_ges.shape == (N,) and loss_dc.shape == (N,)
        for a in (q_ges_l, q_dc_l, k_ges_l, k_dc_l):
            assert a.shape == (N, ENC_HIDDIM)
        assert all(bool(jnp.all(jnp.isfinite(o))) for o in outs)

        # numerical check vs pure-JAX reference (same bf16/f32-accum math)
        for got, want in zip(outs, refs):
            assert jnp.allclose(got, want, rtol=2e-2, atol=2e-2), \
                float(jnp.max(jnp.abs(got - want)))

    print("KERNEL_OK")
</pallas_src>

<mosaic_0001>
module attributes {stable_mosaic.version = 11 : i64} {
  func.func @_moco_pair_kernel(%arg0: i32, %arg1: i32, %arg2: i32, %arg3: memref<16x32xf32, #tpu.memory_space<vmem>>, %arg4: memref<16x24xf32, #tpu.memory_space<vmem>>, %arg5: memref<2x32x32xf32, #tpu.memory_space<vmem>>, %arg6: memref<2x1x32xf32, #tpu.memory_space<vmem>>, %arg7: memref<2x1x32xf32, #tpu.memory_space<vmem>>, %arg8: memref<2x1x32xf32, #tpu.memory_space<vmem>>, %arg9: memref<2x32x16xf32, #tpu.memory_space<vmem>>, %arg10: memref<2x1x16xf32, #tpu.memory_space<vmem>>, %arg11: memref<2x16x16xf32, #tpu.memory_space<vmem>>, %arg12: memref<2x1x16xf32, #tpu.memory_space<vmem>>, %arg13: memref<2x24x32xf32, #tpu.memory_space<vmem>>, %arg14: memref<2x1x32xf32, #tpu.memory_space<vmem>>, %arg15: memref<2x1x32xf32, #tpu.memory_space<vmem>>, %arg16: memref<2x1x32xf32, #tpu.memory_space<vmem>>, %arg17: memref<2x32x16xf32, #tpu.memory_space<vmem>>, %arg18: memref<2x1x16xf32, #tpu.memory_space<vmem>>, %arg19: memref<2x16x16xf32, #tpu.memory_space<vmem>>, %arg20: memref<2x1x16xf32, #tpu.memory_space<vmem>>, %arg21: memref<16x256xbf16, #tpu.memory_space<vmem>>, %arg22: memref<16x256xbf16, #tpu.memory_space<vmem>>, %arg23: memref<4x16x16xf32, #tpu.memory_space<vmem>>, %arg24: memref<1x16x2xf32, #tpu.memory_space<vmem>>, %arg25: memref<2x16x16xbf16, #tpu.memory_space<vmem>>, %arg26: memref<2x16x1xf32, #tpu.memory_space<vmem>>) attributes {dimension_semantics = [#tpu.dimension_semantics<parallel>, #tpu.dimension_semantics<parallel>, #tpu.dimension_semantics<arbitrary>], iteration_bounds = array<i64: 2, 1, 1>, scalar_prefetch = 0 : i64, scratch_operands = 2 : i64, tpu.core_type = #tpu.core_type<tc>, window_params = [{transform_indices = @transform_0, window_bounds = array<i64: 16, 32>}, {transform_indices = @transform_1, window_bounds = array<i64: 16, 24>}, {pipeline_mode = #tpu.pipeline_mode<synchronous>, transform_indices = @transform_2, window_bounds = array<i64: 2, 32, 32>}, {pipeline_mode = #tpu.pipeline_mode<synchronous>, transform_indices = @transform_3, window_bounds = array<i64: 2, 1, 32>}, {pipeline_mode = #tpu.pipeline_mode<synchronous>, transform_indices = @transform_4, window_bounds = array<i64: 2, 1, 32>}, {pipeline_mode = #tpu.pipeline_mode<synchronous>, transform_indices = @transform_5, window_bounds = array<i64: 2, 1, 32>}, {pipeline_mode = #tpu.pipeline_mode<synchronous>, transform_indices = @transform_6, window_bounds = array<i64: 2, 32, 16>}, {pipeline_mode = #tpu.pipeline_mode<synchronous>, transform_indices = @transform_7, window_bounds = array<i64: 2, 1, 16>}, {pipeline_mode = #tpu.pipeline_mode<synchronous>, transform_indices = @transform_8, window_bounds = array<i64: 2, 16, 16>}, {pipeline_mode = #tpu.pipeline_mode<synchronous>, transform_indices = @transform_9, window_bounds = array<i64: 2, 1, 16>}, {pipeline_mode = #tpu.pipeline_mode<synchronous>, transform_indices = @transform_10, window_bounds = array<i64: 2, 24, 32>}, {pipeline_mode = #tpu.pipeline_mode<synchronous>, transform_indices = @transform_11, window_bounds = array<i64: 2, 1, 32>}, {pipeline_mode = #tpu.pipeline_mode<synchronous>, transform_indices = @transform_12, window_bounds = array<i64: 2, 1, 32>}, {pipeline_mode = #tpu.pipeline_mode<synchronous>, transform_indices = @transform_13, window_bounds = array<i64: 2, 1, 32>}, {pipeline_mode = #tpu.pipeline_mode<synchronous>, transform_indices = @transform_14, window_bounds = array<i64: 2, 32, 16>}, {pipeline_mode = #tpu.pipeline_mode<synchronous>, transform_indices = @transform_15, window_bounds = array<i64: 2, 1, 16>}, {pipeline_mode = #tpu.pipeline_mode<synchronous>, transform_indices = @transform_16, window_bounds = array<i64: 2, 16, 16>}, {pipeline_mode = #tpu.pipeline_mode<synchronous>, transform_indices = @transform_17, window_bounds = array<i64: 2, 1, 16>}, {transform_indices = @transform_18, window_bounds = array<i64: 16, 256>}, {transform_indices = @transform_19, window_bounds = array<i64: 16, 256>}, {transform_indices = @transform_20, window_bounds = array<i64: 4, 16, 16>}, {transform_indices = @transform_21, window_bounds = array<i64: 1, 16, 2>}]} {
    %c0_i32 = arith.constant 0 : i32
    %0 = arith.cmpi eq, %arg2, %c0_i32 : i32
    %1 = arith.extui %0 : i1 to i32
    %c0_i32_0 = arith.constant 0 : i32
    %2 = arith.cmpi ne, %1, %c0_i32_0 : i32
    scf.if %2 {
      %c0_30 = arith.constant 0 : index
      %c0_31 = arith.constant 0 : index
      %40 = vector.load %arg3[%c0_30, %c0_31] : memref<16x32xf32, #tpu.memory_space<vmem>>, vector<16x32xf32>
      %c0_32 = arith.constant 0 : index
      %c0_33 = arith.constant 0 : index
      %41 = vector.load %arg4[%c0_32, %c0_33] : memref<16x24xf32, #tpu.memory_space<vmem>>, vector<16x24xf32>
      %c0_34 = arith.constant 0 : index
      %c0_35 = arith.constant 0 : index
      %c0_36 = arith.constant 0 : index
      %42 = vector.load %arg5[%c0_34, %c0_35, %c0_36] : memref<2x32x32xf32, #tpu.memory_space<vmem>>, vector<1x32x32xf32>
      %43 = vector.shape_cast %42 : vector<1x32x32xf32> to vector<32x32xf32>
      %c0_37 = arith.constant 0 : index
      %c0_38 = arith.constant 0 : index
      %c0_39 = arith.constant 0 : index
      %44 = vector.load %arg6[%c0_37, %c0_38, %c0_39] : memref<2x1x32xf32, #tpu.memory_space<vmem>>, vector<1x1x32xf32>
      %45 = vector.shape_cast %44 : vector<1x1x32xf32> to vector<1x32xf32>
      %c0_40 = arith.constant 0 : index
      %c0_41 = arith.constant 0 : index
      %c0_42 = arith.constant 0 : index
      %46 = vector.load %arg7[%c0_40, %c0_41, %c0_42] : memref<2x1x32xf32, #tpu.memory_space<vmem>>, vector<1x1x32xf32>
      %47 = vector.shape_cast %46 : vector<1x1x32xf32> to vector<1x32xf32>
      %c0_43 = arith.constant 0 : index
      %c0_44 = arith.constant 0 : index
      %c0_45 = arith.constant 0 : index
      %48 = vector.load %arg8[%c0_43, %c0_44, %c0_45] : memref<2x1x32xf32, #tpu.memory_space<vmem>>, vector<1x1x32xf32>
      %49 = vector.shape_cast %48 : vector<1x1x32xf32> to vector<1x32xf32>
      %c0_46 = arith.constant 0 : index
      %c0_47 = arith.constant 0 : index
      %c0_48 = arith.constant 0 : index
      %50 = vector.load %arg9[%c0_46, %c0_47, %c0_48] : memref<2x32x16xf32, #tpu.memory_space<vmem>>, vector<1x32x16xf32>
      %51 = vector.shape_cast %50 : vector<1x32x16xf32> to vector<32x16xf32>
      %c0_49 = arith.constant 0 : index
      %c0_50 = arith.constant 0 : index
      %c0_51 = arith.constant 0 : index
      %52 = vector.load %arg10[%c0_49, %c0_50, %c0_51] : memref<2x1x16xf32, #tpu.memory_space<vmem>>, vector<1x1x16xf32>
      %53 = vector.shape_cast %52 : vector<1x1x16xf32> to vector<1x16xf32>
      %54 = arith.truncf %40 : vector<16x32xf32> to vector<16x32xbf16>
      %55 = arith.truncf %43 : vector<32x32xf32> to vector<32x32xbf16>
      %cst_52 = arith.constant dense<0.000000e+00> : vector<16x32xf32>
      %56 = tpu.matmul %54, %55, %cst_52 {dimension_numbers = #tpu.dot_dimension_numbers<[1], [0], [0], [1], [0, 0, 1, 1], [], []>} : vector<16x32xbf16>, vector<32x32xbf16>, vector<16x32xf32> -> vector<16x32xf32>
      %57 = vector.broadcast %45 : vector<1x32xf32> to vector<16x32xf32>
      %58 = arith.addf %56, %57 : vector<16x32xf32>
      %cst_53 = arith.constant dense<0.000000e+00> : vector<16xf32>
      %59 = vector.multi_reduction <add>, %58, %cst_53 [1] : vector<16x32xf32> to vector<16xf32>
      %60 = vector.shape_cast %59 : vector<16xf32> to vector<16x1xf32>
      %cst_54 = arith.constant 3.200000e+01 : f32
      %61 = vector.broadcast %cst_54 : f32 to vector<16x1xf32>
      %62 = arith.divf %60, %61 : vector<16x1xf32>
      %63 = vector.broadcast %62 : vector<16x1xf32> to vector<16x32xf32>
      %64 = arith.subf %58, %63 : vector<16x32xf32>
      %65 = vector.broadcast %62 : vector<16x1xf32> to vector<16x32xf32>
      %66 = arith.subf %58, %65 : vector<16x32xf32>
      %67 = arith.mulf %64, %66 : vector<16x32xf32>
      %cst_55 = arith.constant dense<0.000000e+00> : vector<16xf32>
      %68 = vector.multi_reduction <add>, %67, %cst_55 [1] : vector<16x32xf32> to vector<16xf32>
      %69 = vector.shape_cast %68 : vector<16xf32> to vector<16x1xf32>
      %cst_56 = arith.constant 3.200000e+01 : f32
      %70 = vector.broadcast %cst_56 : f32 to vector<16x1xf32>
      %71 = arith.divf %69, %70 : vector<16x1xf32>
      %72 = vector.broadcast %62 : vector<16x1xf32> to vector<16x32xf32>
      %73 = arith.subf %58, %72 : vector<16x32xf32>
      %cst_57 = arith.constant 9.99999974E-6 : f32
      %74 = vector.broadcast %cst_57 : f32 to vector<16x1xf32>
      %75 = arith.addf %71, %74 : vector<16x1xf32>
      %76 = math.rsqrt %75 : vector<16x1xf32>
      %77 = vector.broadcast %76 : vector<16x1xf32> to vector<16x32xf32>
      %78 = arith.mulf %73, %77 : vector<16x32xf32>
      %79 = vector.broadcast %47 : vector<1x32xf32> to vector<16x32xf32>
      %80 = arith.mulf %78, %79 : vector<16x32xf32>
      %81 = vector.broadcast %49 : vector<1x32xf32> to vector<16x32xf32>
      %82 = arith.addf %80, %81 : vector<16x32xf32>
      %83 = arith.negf %82 : vector<16x32xf32>
      %84 = math.exp %83 : vector<16x32xf32>
      %cst_58 = arith.constant 1.000000e+00 : f32
      %85 = vector.broadcast %cst_58 : f32 to vector<16x32xf32>
      %86 = arith.addf %85, %84 : vector<16x32xf32>
      %87 = arith.divf %85, %86 : vector<16x32xf32>
      %88 = arith.mulf %82, %87 : vector<16x32xf32>
      %89 = arith.truncf %88 : vector<16x32xf32> to vector<16x32xbf16>
      %90 = arith.truncf %51 : vector<32x16xf32> to vector<32x16xbf16>
      %cst_59 = arith.constant dense<0.000000e+00> : vector<16x16xf32>
      %91 = tpu.matmul %89, %90, %cst_59 {dimension_numbers = #tpu.dot_dimension_numbers<[1], [0], [0], [1], [0, 0, 1, 1], [], []>} : vector<16x32xbf16>, vector<32x16xbf16>, vector<16x16xf32> -> vector<16x16xf32>
      %92 = vector.broadcast %53 : vector<1x16xf32> to vector<16x16xf32>
      %93 = arith.addf %91, %92 : vector<16x16xf32>
      %c0_60 = arith.constant 0 : index
      %c0_61 = arith.constant 0 : index
      %c0_62 = arith.constant 0 : index
      %94 = vector.load %arg11[%c0_60, %c0_61, %c0_62] : memref<2x16x16xf32, #tpu.memory_space<vmem>>, vector<1x16x16xf32>
      %95 = vector.shape_cast %94 : vector<1x16x16xf32> to vector<16x16xf32>
      %c0_63 = arith.constant 0 : index
      %c0_64 = arith.constant 0 : index
      %c0_65 = arith.constant 0 : index
      %96 = vector.load %arg12[%c0_63, %c0_64, %c0_65] : memref<2x1x16xf32, #tpu.memory_space<vmem>>, vector<1x1x16xf32>
      %97 = vector.shape_cast %96 : vector<1x1x16xf32> to vector<1x16xf32>
      %98 = arith.truncf %93 : vector<16x16xf32> to vector<16x16xbf16>
      %99 = arith.truncf %95 : vector<16x16xf32> to vector<16x16xbf16>
      %cst_66 = arith.constant dense<0.000000e+00> : vector<16x16xf32>
      %100 = tpu.matmul %98, %99, %cst_66 {dimension_numbers = #tpu.dot_dimension_numbers<[1], [0], [0], [1], [0, 0, 1, 1], [], []>} : vector<16x16xbf16>, vector<16x16xbf16>, vector<16x16xf32> -> vector<16x16xf32>
      %101 = vector.broadcast %97 : vector<1x16xf32> to vector<16x16xf32>
      %102 = arith.addf %100, %101 : vector<16x16xf32>
      %103 = arith.mulf %102, %102 : vector<16x16xf32>
      %cst_67 = arith.constant dense<0.000000e+00> : vector<16xf32>
      %104 = vector.multi_reduction <add>, %103, %cst_67 [1] : vector<16x16xf32> to vector<16xf32>
      %105 = vector.shape_cast %104 : vector<16xf32> to vector<16x1xf32>
      %cst_68 = arith.constant 1.000000e-24 : f32
      %106 = vector.broadcast %cst_68 : f32 to vector<16x1xf32>
      %107 = arith.maximumf %105, %106 : vector<16x1xf32>
      %108 = math.rsqrt %107 : vector<16x1xf32>
      %109 = vector.broadcast %108 : vector<16x1xf32> to vector<16x16xf32>
      %110 = arith.mulf %102, %109 : vector<16x16xf32>
      %c0_69 = arith.constant 0 : index
      %c0_70 = arith.constant 0 : index
      %c0_71 = arith.constant 0 : index
      %111 = vector.load %arg13[%c0_69, %c0_70, %c0_71] : memref<2x24x32xf32, #tpu.memory_space<vmem>>, vector<1x24x32xf32>
      %112 = vector.shape_cast %111 : vector<1x24x32xf32> to vector<24x32xf32>
      %c0_72 = arith.constant 0 : index
      %c0_73 = arith.constant 0 : index
      %c0_74 = arith.constant 0 : index
      %113 = vector.load %arg14[%c0_72, %c0_73, %c0_74] : memref<2x1x32xf32, #tpu.memory_space<vmem>>, vector<1x1x32xf32>
      %114 = vector.shape_cast %113 : vector<1x1x32xf32> to vector<1x32xf32>
      %c0_75 = arith.constant 0 : index
      %c0_76 = arith.constant 0 : index
      %c0_77 = arith.constant 0 : index
      %115 = vector.load %arg15[%c0_75, %c0_76, %c0_77] : memref<2x1x32xf32, #tpu.memory_space<vmem>>, vector<1x1x32xf32>
      %116 = vector.shape_cast %115 : vector<1x1x32xf32> to vector<1x32xf32>
      %c0_78 = arith.constant 0 : index
      %c0_79 = arith.constant 0 : index
      %c0_80 = arith.constant 0 : index
      %117 = vector.load %arg16[%c0_78, %c0_79, %c0_80] : memref<2x1x32xf32, #tpu.memory_space<vmem>>, vector<1x1x32xf32>
      %118 = vector.shape_cast %117 : vector<1x1x32xf32> to vector<1x32xf32>
      %c0_81 = arith.constant 0 : index
      %c0_82 = arith.constant 0 : index
      %c0_83 = arith.constant 0 : index
      %119 = vector.load %arg17[%c0_81, %c0_82, %c0_83] : memref<2x32x16xf32, #tpu.memory_space<vmem>>, vector<1x32x16xf32>
      %120 = vector.shape_cast %119 : vector<1x32x16xf32> to vector<32x16xf32>
      %c0_84 = arith.constant 0 : index
      %c0_85 = arith.constant 0 : index
      %c0_86 = arith.constant 0 : index
      %121 = vector.load %arg18[%c0_84, %c0_85, %c0_86] : memref<2x1x16xf32, #tpu.memory_space<vmem>>, vector<1x1x16xf32>
      %122 = vector.shape_cast %121 : vector<1x1x16xf32> to vector<1x16xf32>
      %123 = arith.truncf %41 : vector<16x24xf32> to vector<16x24xbf16>
      %124 = arith.truncf %112 : vector<24x32xf32> to vector<24x32xbf16>
      %cst_87 = arith.constant dense<0.000000e+00> : vector<16x32xf32>
      %125 = tpu.matmul %123, %124, %cst_87 {dimension_numbers = #tpu.dot_dimension_numbers<[1], [0], [0], [1], [0, 0, 1, 1], [], []>} : vector<16x24xbf16>, vector<24x32xbf16>, vector<16x32xf32> -> vector<16x32xf32>
      %126 = vector.broadcast %114 : vector<1x32xf32> to vector<16x32xf32>
      %127 = arith.addf %125, %126 : vector<16x32xf32>
      %cst_88 = arith.constant dense<0.000000e+00> : vector<16xf32>
      %128 = vector.multi_reduction <add>, %127, %cst_88 [1] : vector<16x32xf32> to vector<16xf32>
      %129 = vector.shape_cast %128 : vector<16xf32> to vector<16x1xf32>
      %cst_89 = arith.constant 3.200000e+01 : f32
      %130 = vector.broadcast %cst_89 : f32 to vector<16x1xf32>
      %131 = arith.divf %129, %130 : vector<16x1xf32>
      %132 = vector.broadcast %131 : vector<16x1xf32> to vector<16x32xf32>
      %133 = arith.subf %127, %132 : vector<16x32xf32>
      %134 = vector.broadcast %131 : vector<16x1xf32> to vector<16x32xf32>
      %135 = arith.subf %127, %134 : vector<16x32xf32>
      %136 = arith.mulf %133, %135 : vector<16x32xf32>
      %cst_90 = arith.constant dense<0.000000e+00> : vector<16xf32>
      %137 = vector.multi_reduction <add>, %136, %cst_90 [1] : vector<16x32xf32> to vector<16xf32>
      %138 = vector.shape_cast %137 : vector<16xf32> to vector<16x1xf32>
      %cst_91 = arith.constant 3.200000e+01 : f32
      %139 = vector.broadcast %cst_91 : f32 to vector<16x1xf32>
      %140 = arith.divf %138, %139 : vector<16x1xf32>
      %141 = vector.broadcast %131 : vector<16x1xf32> to vector<16x32xf32>
      %142 = arith.subf %127, %141 : vector<16x32xf32>
      %cst_92 = arith.constant 9.99999974E-6 : f32
      %143 = vector.broadcast %cst_92 : f32 to vector<16x1xf32>
      %144 = arith.addf %140, %143 : vector<16x1xf32>
      %145 = math.rsqrt %144 : vector<16x1xf32>
      %146 = vector.broadcast %145 : vector<16x1xf32> to vector<16x32xf32>
      %147 = arith.mulf %142, %146 : vector<16x32xf32>
      %148 = vector.broadcast %116 : vector<1x32xf32> to vector<16x32xf32>
      %149 = arith.mulf %147, %148 : vector<16x32xf32>
      %150 = vector.broadcast %118 : vector<1x32xf32> to vector<16x32xf32>
      %151 = arith.addf %149, %150 : vector<16x32xf32>
      %152 = arith.negf %151 : vector<16x32xf32>
      %153 = math.exp %152 : vector<16x32xf32>
      %cst_93 = arith.constant 1.000000e+00 : f32
      %154 = vector.broadcast %cst_93 : f32 to vector<16x32xf32>
      %155 = arith.addf %154, %153 : vector<16x32xf32>
      %156 = arith.divf %154, %155 : vector<16x32xf32>
      %157 = arith.mulf %151, %156 : vector<16x32xf32>
      %158 = arith.truncf %157 : vector<16x32xf32> to vector<16x32xbf16>
      %159 = arith.truncf %120 : vector<32x16xf32> to vector<32x16xbf16>
      %cst_94 = arith.constant dense<0.000000e+00> : vector<16x16xf32>
      %160 = tpu.matmul %158, %159, %cst_94 {dimension_numbers = #tpu.dot_dimension_numbers<[1], [0], [0], [1], [0, 0, 1, 1], [], []>} : vector<16x32xbf16>, vector<32x16xbf16>, vector<16x16xf32> -> vector<16x16xf32>
      %161 = vector.broadcast %122 : vector<1x16xf32> to vector<16x16xf32>
      %162 = arith.addf %160, %161 : vector<16x16xf32>
      %c0_95 = arith.constant 0 : index
      %c0_96 = arith.constant 0 : index
      %c0_97 = arith.constant 0 : index
      %163 = vector.load %arg19[%c0_95, %c0_96, %c0_97] : memref<2x16x16xf32, #tpu.memory_space<vmem>>, vector<1x16x16xf32>
      %164 = vector.shape_cast %163 : vector<1x16x16xf32> to vector<16x16xf32>
      %c0_98 = arith.constant 0 : index
      %c0_99 = arith.constant 0 : index
      %c0_100 = arith.constant 0 : index
      %165 = vector.load %arg20[%c0_98, %c0_99, %c0_100] : memref<2x1x16xf32, #tpu.memory_space<vmem>>, vector<1x1x16xf32>
      %166 = vector.shape_cast %165 : vector<1x1x16xf32> to vector<1x16xf32>
      %167 = arith.truncf %162 : vector<16x16xf32> to vector<16x16xbf16>
      %168 = arith.truncf %164 : vector<16x16xf32> to vector<16x16xbf16>
      %cst_101 = arith.constant dense<0.000000e+00> : vector<16x16xf32>
      %169 = tpu.matmul %167, %168, %cst_101 {dimension_numbers = #tpu.dot_dimension_numbers<[1], [0], [0], [1], [0, 0, 1, 1], [], []>} : vector<16x16xbf16>, vector<16x16xbf16>, vector<16x16xf32> -> vector<16x16xf32>
      %170 = vector.broadcast %166 : vector<1x16xf32> to vector<16x16xf32>
      %171 = arith.addf %169, %170 : vector<16x16xf32>
      %172 = arith.mulf %171, %171 : vector<16x16xf32>
      %cst_102 = arith.constant dense<0.000000e+00> : vector<16xf32>
      %173 = vector.multi_reduction <add>, %172, %cst_102 [1] : vector<16x16xf32> to vector<16xf32>
      %174 = vector.shape_cast %173 : vector<16xf32> to vector<16x1xf32>
      %cst_103 = arith.constant 1.000000e-24 : f32
      %175 = vector.broadcast %cst_103 : f32 to vector<16x1xf32>
      %176 = arith.maximumf %174, %175 : vector<16x1xf32>
      %177 = math.rsqrt %176 : vector<16x1xf32>
      %178 = vector.broadcast %177 : vector<16x1xf32> to vector<16x16xf32>
      %179 = arith.mulf %171, %178 : vector<16x16xf32>
      %c0_104 = arith.constant 0 : index
      %c0_105 = arith.constant 0 : index
      %c0_106 = arith.constant 0 : index
      %180 = vector.load %arg23[%c0_104, %c0_105, %c0_106] : memref<4x16x16xf32, #tpu.memory_space<vmem>>, vector<1x16x16xf32>
      %181 = vector.shape_cast %180 : vector<1x16x16xf32> to vector<16x16xf32>
      %182 = vector.shape_cast %110 : vector<16x16xf32> to vector<1x16x16xf32>
      tpu.vector_store %arg23[%c0_104, %c0_105, %c0_106], %182 {strides = array<i32>} : memref<4x16x16xf32, #tpu.memory_space<vmem>>, vector<1x16x16xf32>,
      %c1_107 = arith.constant 1 : index
      %c0_108 = arith.constant 0 : index
      %c0_109 = arith.constant 0 : index
      %183 = vector.load %arg23[%c1_107, %c0_108, %c0_109] : memref<4x16x16xf32, #tpu.memory_space<vmem>>, vector<1x16x16xf32>
      %184 = vector.shape_cast %183 : vector<1x16x16xf32> to vector<16x16xf32>
      %185 = vector.shape_cast %179 : vector<16x16xf32> to vector<1x16x16xf32>
      tpu.vector_store %arg23[%c1_107, %c0_108, %c0_109], %185 {strides = array<i32>} : memref<4x16x16xf32, #tpu.memory_space<vmem>>, vector<1x16x16xf32>,
      %186 = arith.truncf %110 : vector<16x16xf32> to vector<16x16xbf16>
      %c0_110 = arith.constant 0 : index
      %c0_111 = arith.constant 0 : index
      %c0_112 = arith.constant 0 : index
      %187 = vector.load %arg25[%c0_110, %c0_111, %c0_112] : memref<2x16x16xbf16, #tpu.memory_space<vmem>>, vector<1x16x16xbf16>
      %188 = vector.shape_cast %187 : vector<1x16x16xbf16> to vector<16x16xbf16>
      %189 = vector.shape_cast %186 : vector<16x16xbf16> to vector<1x16x16xbf16>
      tpu.vector_store %arg25[%c0_110, %c0_111, %c0_112], %189 {strides = array<i32>} : memref<2x16x16xbf16, #tpu.memory_space<vmem>>, vector<1x16x16xbf16>,
      %190 = arith.truncf %179 : vector<16x16xf32> to vector<16x16xbf16>
      %c1_113 = arith.constant 1 : index
      %c0_114 = arith.constant 0 : index
      %c0_115 = arith.constant 0 : index
      %191 = vector.load %arg25[%c1_113, %c0_114, %c0_115] : memref<2x16x16xbf16, #tpu.memory_space<vmem>>, vector<1x16x16xbf16>
      %192 = vector.shape_cast %191 : vector<1x16x16xbf16> to vector<16x16xbf16>
      %193 = vector.shape_cast %190 : vector<16x16xbf16> to vector<1x16x16xbf16>
      tpu.vector_store %arg25[%c1_113, %c0_114, %c0_115], %193 {strides = array<i32>} : memref<2x16x16xbf16, #tpu.memory_space<vmem>>, vector<1x16x16xbf16>,
      %c1_116 = arith.constant 1 : index
      %c0_117 = arith.constant 0 : index
      %c0_118 = arith.constant 0 : index
      %194 = vector.load %arg5[%c1_116, %c0_117, %c0_118] : memref<2x32x32xf32, #tpu.memory_space<vmem>>, vector<1x32x32xf32>
      %195 = vector.shape_cast %194 : vector<1x32x32xf32> to vector<32x32xf32>
      %c1_119 = arith.constant 1 : index
      %c0_120 = arith.constant 0 : index
      %c0_121 = arith.constant 0 : index
      %196 = vector.load %arg6[%c1_119, %c0_120, %c0_121] : memref<2x1x32xf32, #tpu.memory_space<vmem>>, vector<1x1x32xf32>
      %197 = vector.shape_cast %196 : vector<1x1x32xf32> to vector<1x32xf32>
      %c1_122 = arith.constant 1 : index
      %c0_123 = arith.constant 0 : index
      %c0_124 = arith.constant 0 : index
      %198 = vector.load %arg7[%c1_122, %c0_123, %c0_124] : memref<2x1x32xf32, #tpu.memory_space<vmem>>, vector<1x1x32xf32>
      %199 = vector.shape_cast %198 : vector<1x1x32xf32> to vector<1x32xf32>
      %c1_125 = arith.constant 1 : index
      %c0_126 = arith.constant 0 : index
      %c0_127 = arith.constant 0 : index
      %200 = vector.load %arg8[%c1_125, %c0_126, %c0_127] : memref<2x1x32xf32, #tpu.memory_space<vmem>>, vector<1x1x32xf32>
      %201 = vector.shape_cast %200 : vector<1x1x32xf32> to vector<1x32xf32>
      %c1_128 = arith.constant 1 : index
      %c0_129 = arith.constant 0 : index
      %c0_130 = arith.constant 0 : index
      %202 = vector.load %arg9[%c1_128, %c0_129, %c0_130] : memref<2x32x16xf32, #tpu.memory_space<vmem>>, vector<1x32x16xf32>
      %203 = vector.shape_cast %202 : vector<1x32x16xf32> to vector<32x16xf32>
      %c1_131 = arith.constant 1 : index
      %c0_132 = arith.constant 0 : index
      %c0_133 = arith.constant 0 : index
      %204 = vector.load %arg10[%c1_131, %c0_132, %c0_133] : memref<2x1x16xf32, #tpu.memory_space<vmem>>, vector<1x1x16xf32>
      %205 = vector.shape_cast %204 : vector<1x1x16xf32> to vector<1x16xf32>
      %206 = arith.truncf %40 : vector<16x32xf32> to vector<16x32xbf16>
      %207 = arith.truncf %195 : vector<32x32xf32> to vector<32x32xbf16>
      %cst_134 = arith.constant dense<0.000000e+00> : vector<16x32xf32>
      %208 = tpu.matmul %206, %207, %cst_134 {dimension_numbers = #tpu.dot_dimension_numbers<[1], [0], [0], [1], [0, 0, 1, 1], [], []>} : vector<16x32xbf16>, vector<32x32xbf16>, vector<16x32xf32> -> vector<16x32xf32>
      %209 = vector.broadcast %197 : vector<1x32xf32> to vector<16x32xf32>
      %210 = arith.addf %208, %209 : vector<16x32xf32>
      %cst_135 = arith.constant dense<0.000000e+00> : vector<16xf32>
      %211 = vector.multi_reduction <add>, %210, %cst_135 [1] : vector<16x32xf32> to vector<16xf32>
      %212 = vector.shape_cast %211 : vector<16xf32> to vector<16x1xf32>
      %cst_136 = arith.constant 3.200000e+01 : f32
      %213 = vector.broadcast %cst_136 : f32 to vector<16x1xf32>
      %214 = arith.divf %212, %213 : vector<16x1xf32>
      %215 = vector.broadcast %214 : vector<16x1xf32> to vector<16x32xf32>
      %216 = arith.subf %210, %215 : vector<16x32xf32>
      %217 = vector.broadcast %214 : vector<16x1xf32> to vector<16x32xf32>
      %218 = arith.subf %210, %217 : vector<16x32xf32>
      %219 = arith.mulf %216, %218 : vector<16x32xf32>
      %cst_137 = arith.constant dense<0.000000e+00> : vector<16xf32>
      %220 = vector.multi_reduction <add>, %219, %cst_137 [1] : vector<16x32xf32> to vector<16xf32>
      %221 = vector.shape_cast %220 : vector<16xf32> to vector<16x1xf32>
      %cst_138 = arith.constant 3.200000e+01 : f32
      %222 = vector.broadcast %cst_138 : f32 to vector<16x1xf32>
      %223 = arith.divf %221, %222 : vector<16x1xf32>
      %224 = vector.broadcast %214 : vector<16x1xf32> to vector<16x32xf32>
      %225 = arith.subf %210, %224 : vector<16x32xf32>
      %cst_139 = arith.constant 9.99999974E-6 : f32
      %226 = vector.broadcast %cst_139 : f32 to vector<16x1xf32>
      %227 = arith.addf %223, %226 : vector<16x1xf32>
      %228 = math.rsqrt %227 : vector<16x1xf32>
      %229 = vector.broadcast %228 : vector<16x1xf32> to vector<16x32xf32>
      %230 = arith.mulf %225, %229 : vector<16x32xf32>
      %231 = vector.broadcast %199 : vector<1x32xf32> to vector<16x32xf32>
      %232 = arith.mulf %230, %231 : vector<16x32xf32>
      %233 = vector.broadcast %201 : vector<1x32xf32> to vector<16x32xf32>
      %234 = arith.addf %232, %233 : vector<16x32xf32>
      %235 = arith.negf %234 : vector<16x32xf32>
      %236 = math.exp %235 : vector<16x32xf32>
      %cst_140 = arith.constant 1.000000e+00 : f32
      %237 = vector.broadcast %cst_140 : f32 to vector<16x32xf32>
      %238 = arith.addf %237, %236 : vector<16x32xf32>
      %239 = arith.divf %237, %238 : vector<16x32xf32>
      %240 = arith.mulf %234, %239 : vector<16x32xf32>
      %241 = arith.truncf %240 : vector<16x32xf32> to vector<16x32xbf16>
      %242 = arith.truncf %203 : vector<32x16xf32> to vector<32x16xbf16>
      %cst_141 = arith.constant dense<0.000000e+00> : vector<16x16xf32>
      %243 = tpu.matmul %241, %242, %cst_141 {dimension_numbers = #tpu.dot_dimension_numbers<[1], [0], [0], [1], [0, 0, 1, 1], [], []>} : vector<16x32xbf16>, vector<32x16xbf16>, vector<16x16xf32> -> vector<16x16xf32>
      %244 = vector.broadcast %205 : vector<1x16xf32> to vector<16x16xf32>
      %245 = arith.addf %243, %244 : vector<16x16xf32>
      %c1_142 = arith.constant 1 : index
      %c0_143 = arith.constant 0 : index
      %c0_144 = arith.constant 0 : index
      %246 = vector.load %arg11[%c1_142, %c0_143, %c0_144] : memref<2x16x16xf32, #tpu.memory_space<vmem>>, vector<1x16x16xf32>
      %247 = vector.shape_cast %246 : vector<1x16x16xf32> to vector<16x16xf32>
      %c1_145 = arith.constant 1 : index
      %c0_146 = arith.constant 0 : index
      %c0_147 = arith.constant 0 : index
      %248 = vector.load %arg12[%c1_145, %c0_146, %c0_147] : memref<2x1x16xf32, #tpu.memory_space<vmem>>, vector<1x1x16xf32>
      %249 = vector.shape_cast %248 : vector<1x1x16xf32> to vector<1x16xf32>
      %250 = arith.truncf %245 : vector<16x16xf32> to vector<16x16xbf16>
      %251 = arith.truncf %247 : vector<16x16xf32> to vector<16x16xbf16>
      %cst_148 = arith.constant dense<0.000000e+00> : vector<16x16xf32>
      %252 = tpu.matmul %250, %251, %cst_148 {dimension_numbers = #tpu.dot_dimension_numbers<[1], [0], [0], [1], [0, 0, 1, 1], [], []>} : vector<16x16xbf16>, vector<16x16xbf16>, vector<16x16xf32> -> vector<16x16xf32>
      %253 = vector.broadcast %249 : vector<1x16xf32> to vector<16x16xf32>
      %254 = arith.addf %252, %253 : vector<16x16xf32>
      %255 = arith.mulf %254, %254 : vector<16x16xf32>
      %cst_149 = arith.constant dense<0.000000e+00> : vector<16xf32>
      %256 = vector.multi_reduction <add>, %255, %cst_149 [1] : vector<16x16xf32> to vector<16xf32>
      %257 = vector.shape_cast %256 : vector<16xf32> to vector<16x1xf32>
      %cst_150 = arith.constant 1.000000e-24 : f32
      %258 = vector.broadcast %cst_150 : f32 to vector<16x1xf32>
      %259 = arith.maximumf %257, %258 : vector<16x1xf32>
      %260 = math.rsqrt %259 : vector<16x1xf32>
      %261 = vector.broadcast %260 : vector<16x1xf32> to vector<16x16xf32>
      %262 = arith.mulf %254, %261 : vector<16x16xf32>
      %c1_151 = arith.constant 1 : index
      %c0_152 = arith.constant 0 : index
      %c0_153 = arith.constant 0 : index
      %263 = vector.load %arg13[%c1_151, %c0_152, %c0_153] : memref<2x24x32xf32, #tpu.memory_space<vmem>>, vector<1x24x32xf32>
      %264 = vector.shape_cast %263 : vector<1x24x32xf32> to vector<24x32xf32>
      %c1_154 = arith.constant 1 : index
      %c0_155 = arith.constant 0 : index
      %c0_156 = arith.constant 0 : index
      %265 = vector.load %arg14[%c1_154, %c0_155, %c0_156] : memref<2x1x32xf32, #tpu.memory_space<vmem>>, vector<1x1x32xf32>
      %266 = vector.shape_cast %265 : vector<1x1x32xf32> to vector<1x32xf32>
      %c1_157 = arith.constant 1 : index
      %c0_158 = arith.constant 0 : index
      %c0_159 = arith.constant 0 : index
      %267 = vector.load %arg15[%c1_157, %c0_158, %c0_159] : memref<2x1x32xf32, #tpu.memory_space<vmem>>, vector<1x1x32xf32>
      %268 = vector.shape_cast %267 : vector<1x1x32xf32> to vector<1x32xf32>
      %c1_160 = arith.constant 1 : index
      %c0_161 = arith.constant 0 : index
      %c0_162 = arith.constant 0 : index
      %269 = vector.load %arg16[%c1_160, %c0_161, %c0_162] : memref<2x1x32xf32, #tpu.memory_space<vmem>>, vector<1x1x32xf32>
      %270 = vector.shape_cast %269 : vector<1x1x32xf32> to vector<1x32xf32>
      %c1_163 = arith.constant 1 : index
      %c0_164 = arith.constant 0 : index
      %c0_165 = arith.constant 0 : index
      %271 = vector.load %arg17[%c1_163, %c0_164, %c0_165] : memref<2x32x16xf32, #tpu.memory_space<vmem>>, vector<1x32x16xf32>
      %272 = vector.shape_cast %271 : vector<1x32x16xf32> to vector<32x16xf32>
      %c1_166 = arith.constant 1 : index
      %c0_167 = arith.constant 0 : index
      %c0_168 = arith.constant 0 : index
      %273 = vector.load %arg18[%c1_166, %c0_167, %c0_168] : memref<2x1x16xf32, #tpu.memory_space<vmem>>, vector<1x1x16xf32>
      %274 = vector.shape_cast %273 : vector<1x1x16xf32> to vector<1x16xf32>
      %275 = arith.truncf %41 : vector<16x24xf32> to vector<16x24xbf16>
      %276 = arith.truncf %264 : vector<24x32xf32> to vector<24x32xbf16>
      %cst_169 = arith.constant dense<0.000000e+00> : vector<16x32xf32>
      %277 = tpu.matmul %275, %276, %cst_169 {dimension_numbers = #tpu.dot_dimension_numbers<[1], [0], [0], [1], [0, 0, 1, 1], [], []>} : vector<16x24xbf16>, vector<24x32xbf16>, vector<16x32xf32> -> vector<16x32xf32>
      %278 = vector.broadcast %266 : vector<1x32xf32> to vector<16x32xf32>
      %279 = arith.addf %277, %278 : vector<16x32xf32>
      %cst_170 = arith.constant dense<0.000000e+00> : vector<16xf32>
      %280 = vector.multi_reduction <add>, %279, %cst_170 [1] : vector<16x32xf32> to vector<16xf32>
      %281 = vector.shape_cast %280 : vector<16xf32> to vector<16x1xf32>
      %cst_171 = arith.constant 3.200000e+01 : f32
      %282 = vector.broadcast %cst_171 : f32 to vector<16x1xf32>
      %283 = arith.divf %281, %282 : vector<16x1xf32>
      %284 = vector.broadcast %283 : vector<16x1xf32> to vector<16x32xf32>
      %285 = arith.subf %279, %284 : vector<16x32xf32>
      %286 = vector.broadcast %283 : vector<16x1xf32> to vector<16x32xf32>
      %287 = arith.subf %279, %286 : vector<16x32xf32>
      %288 = arith.mulf %285, %287 : vector<16x32xf32>
      %cst_172 = arith.constant dense<0.000000e+00> : vector<16xf32>
      %289 = vector.multi_reduction <add>, %288, %cst_172 [1] : vector<16x32xf32> to vector<16xf32>
      %290 = vector.shape_cast %289 : vector<16xf32> to vector<16x1xf32>
      %cst_173 = arith.constant 3.200000e+01 : f32
      %291 = vector.broadcast %cst_173 : f32 to vector<16x1xf32>
      %292 = arith.divf %290, %291 : vector<16x1xf32>
      %293 = vector.broadcast %283 : vector<16x1xf32> to vector<16x32xf32>
      %294 = arith.subf %279, %293 : vector<16x32xf32>
      %cst_174 = arith.constant 9.99999974E-6 : f32
      %295 = vector.broadcast %cst_174 : f32 to vector<16x1xf32>
      %296 = arith.addf %292, %295 : vector<16x1xf32>
      %297 = math.rsqrt %296 : vector<16x1xf32>
      %298 = vector.broadcast %297 : vector<16x1xf32> to vector<16x32xf32>
      %299 = arith.mulf %294, %298 : vector<16x32xf32>
      %300 = vector.broadcast %268 : vector<1x32xf32> to vector<16x32xf32>
      %301 = arith.mulf %299, %300 : vector<16x32xf32>
      %302 = vector.broadcast %270 : vector<1x32xf32> to vector<16x32xf32>
      %303 = arith.addf %301, %302 : vector<16x32xf32>
      %304 = arith.negf %303 : vector<16x32xf32>
      %305 = math.exp %304 : vector<16x32xf32>
      %cst_175 = arith.constant 1.000000e+00 : f32
      %306 = vector.broadcast %cst_175 : f32 to vector<16x32xf32>
      %307 = arith.addf %306, %305 : vector<16x32xf32>
      %308 = arith.divf %306, %307 : vector<16x32xf32>
      %309 = arith.mulf %303, %308 : vector<16x32xf32>
      %310 = arith.truncf %309 : vector<16x32xf32> to vector<16x32xbf16>
      %311 = arith.truncf %272 : vector<32x16xf32> to vector<32x16xbf16>
      %cst_176 = arith.constant dense<0.000000e+00> : vector<16x16xf32>
      %312 = tpu.matmul %310, %311, %cst_176 {dimension_numbers = #tpu.dot_dimension_numbers<[1], [0], [0], [1], [0, 0, 1, 1], [], []>} : vector<16x32xbf16>, vector<32x16xbf16>, vector<16x16xf32> -> vector<16x16xf32>
      %313 = vector.broadcast %274 : vector<1x16xf32> to vector<16x16xf32>
      %314 = arith.addf %312, %313 : vector<16x16xf32>
      %c1_177 = arith.constant 1 : index
      %c0_178 = arith.constant 0 : index
      %c0_179 = arith.constant 0 : index
      %315 = vector.load %arg19[%c1_177, %c0_178, %c0_179] : memref<2x16x16xf32, #tpu.memory_space<vmem>>, vector<1x16x16xf32>
      %316 = vector.shape_cast %315 : vector<1x16x16xf32> to vector<16x16xf32>
      %c1_180 = arith.constant 1 : index
      %c0_181 = arith.constant 0 : index
      %c0_182 = arith.constant 0 : index
      %317 = vector.load %arg20[%c1_180, %c0_181, %c0_182] : memref<2x1x16xf32, #tpu.memory_space<vmem>>, vector<1x1x16xf32>
      %318 = vector.shape_cast %317 : vector<1x1x16xf32> to vector<1x16xf32>
      %319 = arith.truncf %314 : vector<16x16xf32> to vector<16x16xbf16>
      %320 = arith.truncf %316 : vector<16x16xf32> to vector<16x16xbf16>
      %cst_183 = arith.constant dense<0.000000e+00> : vector<16x16xf32>
      %321 = tpu.matmul %319, %320, %cst_183 {dimension_numbers = #tpu.dot_dimension_numbers<[1], [0], [0], [1], [0, 0, 1, 1], [], []>} : vector<16x16xbf16>, vector<16x16xbf16>, vector<16x16xf32> -> vector<16x16xf32>
      %322 = vector.broadcast %318 : vector<1x16xf32> to vector<16x16xf32>
      %323 = arith.addf %321, %322 : vector<16x16xf32>
      %324 = arith.mulf %323, %323 : vector<16x16xf32>
      %cst_184 = arith.constant dense<0.000000e+00> : vector<16xf32>
      %325 = vector.multi_reduction <add>, %324, %cst_184 [1] : vector<16x16xf32> to vector<16xf32>
      %326 = vector.shape_cast %325 : vector<16xf32> to vector<16x1xf32>
      %cst_185 = arith.constant 1.000000e-24 : f32
      %327 = vector.broadcast %cst_185 : f32 to vector<16x1xf32>
      %328 = arith.maximumf %326, %327 : vector<16x1xf32>
      %329 = math.rsqrt %328 : vector<16x1xf32>
      %330 = vector.broadcast %329 : vector<16x1xf32> to vector<16x16xf32>
      %331 = arith.mulf %323, %330 : vector<16x16xf32>
      %c2 = arith.constant 2 : index
      %c0_186 = arith.constant 0 : index
      %c0_187 = arith.constant 0 : index
      %332 = vector.load %arg23[%c2, %c0_186, %c0_187] : memref<4x16x16xf32, #tpu.memory_space<vmem>>, vector<1x16x16xf32>
      %333 = vector.shape_cast %332 : vector<1x16x16xf32> to vector<16x16xf32>
      %334 = vector.shape_cast %262 : vector<16x16xf32> to vector<1x16x16xf32>
      tpu.vector_store %arg23[%c2, %c0_186, %c0_187], %334 {strides = array<i32>} : memref<4x16x16xf32, #tpu.memory_space<vmem>>, vector<1x16x16xf32>,
      %c3 = arith.constant 3 : index
      %c0_188 = arith.constant 0 : index
      %c0_189 = arith.constant 0 : index
      %335 = vector.load %arg23[%c3, %c0_188, %c0_189] : memref<4x16x16xf32, #tpu.memory_space<vmem>>, vector<1x16x16xf32>
      %336 = vector.shape_cast %335 : vector<1x16x16xf32> to vector<16x16xf32>
      %337 = vector.shape_cast %331 : vector<16x16xf32> to vector<1x16x16xf32>
      tpu.vector_store %arg23[%c3, %c0_188, %c0_189], %337 {strides = array<i32>} : memref<4x16x16xf32, #tpu.memory_space<vmem>>, vector<1x16x16xf32>,
      %cst_190 = arith.constant 0.000000e+00 : f32
      %338 = vector.broadcast %cst_190 : f32 to vector<2x16x1xf32>
      %c0_191 = arith.constant 0 : index
      %c0_192 = arith.constant 0 : index
      %c0_193 = arith.constant 0 : index
      %339 = vector.load %arg26[%c0_191, %c0_192, %c0_193] : memref<2x16x1xf32, #tpu.memory_space<vmem>>, vector<2x16x1xf32>
      tpu.vector_store %arg26[%c0_191, %c0_192, %c0_193], %338 {strides = array<i32>} : memref<2x16x1xf32, #tpu.memory_space<vmem>>, vector<2x16x1xf32>,
    } else {
    }
    %c0 = arith.constant 0 : index
    %c0_1 = arith.constant 0 : index
    %c0_2 = arith.constant 0 : index
    %3 = vector.load %arg25[%c0, %c0_1, %c0_2] : memref<2x16x16xbf16, #tpu.memory_space<vmem>>, vector<1x16x16xbf16>
    %4 = vector.shape_cast %3 : vector<1x16x16xbf16> to vector<16x16xbf16>
    %c0_3 = arith.constant 0 : index
    %c0_4 = arith.constant 0 : index
    %5 = vector.load %arg21[%c0_3, %c0_4] : memref<16x256xbf16, #tpu.memory_space<vmem>>, vector<16x256xbf16>
    %cst = arith.constant dense<0.000000e+00> : vector<16x256xf32>
    %6 = tpu.matmul %4, %5, %cst {dimension_numbers = #tpu.dot_dimension_numbers<[1], [0], [0], [1], [0, 0, 1, 1], [], []>} : vector<16x16xbf16>, vector<16x256xbf16>, vector<16x256xf32> -> vector<16x256xf32>
    %cst_5 = arith.constant 14.2857141 : f32
    %7 = vector.broadcast %cst_5 : f32 to vector<16x256xf32>
    %8 = arith.mulf %6, %7 : vector<16x256xf32>
    %c1 = arith.constant 1 : index
    %c0_6 = arith.constant 0 : index
    %c0_7 = arith.constant 0 : index
    %9 = vector.load %arg25[%c1, %c0_6, %c0_7] : memref<2x16x16xbf16, #tpu.memory_space<vmem>>, vector<1x16x16xbf16>
    %10 = vector.shape_cast %9 : vector<1x16x16xbf16> to vector<16x16xbf16>
    %c0_8 = arith.constant 0 : index
    %c0_9 = arith.constant 0 : index
    %11 = vector.load %arg22[%c0_8, %c0_9] : memref<16x256xbf16, #tpu.memory_space<vmem>>, vector<16x256xbf16>
    %cst_10 = arith.constant dense<0.000000e+00> : vector<16x256xf32>
    %12 = tpu.matmul %10, %11, %cst_10 {dimension_numbers = #tpu.dot_dimension_numbers<[1], [0], [0], [1], [0, 0, 1, 1], [], []>} : vector<16x16xbf16>, vector<16x256xbf16>, vector<16x256xf32> -> vector<16x256xf32>
    %cst_11 = arith.constant 14.2857141 : f32
    %13 = vector.broadcast %cst_11 : f32 to vector<16x256xf32>
    %14 = arith.mulf %12, %13 : vector<16x256xf32>
    %c0_12 = arith.constant 0 : index
    %c0_13 = arith.constant 0 : index
    %c0_14 = arith.constant 0 : index
    %15 = vector.load %arg26[%c0_12, %c0_13, %c0_14] : memref<2x16x1xf32, #tpu.memory_space<vmem>>, vector<1x16x1xf32>
    %16 = vector.shape_cast %15 : vector<1x16x1xf32> to vector<16x1xf32>
    %cst_15 = arith.constant 14.2857141 : f32
    %17 = vector.broadcast %cst_15 : f32 to vector<16x256xf32>
    %18 = arith.subf %8, %17 : vector<16x256xf32>
    %19 = math.exp %18 : vector<16x256xf32>
    %cst_16 = arith.constant dense<0.000000e+00> : vector<16xf32>
    %20 = vector.multi_reduction <add>, %19, %cst_16 [1] : vector<16x256xf32> to vector<16xf32>
    %21 = vector.shape_cast %20 : vector<16xf32> to vector<16x1xf32>
    %22 = arith.addf %16, %21 : vector<16x1xf32>
    %c0_17 = arith.constant 0 : index
    %c0_18 = arith.constant 0 : index
    %c0_19 = arith.constant 0 : index
    %23 = vector.load %arg26[%c0_17, %c0_18, %c0_19] : memref<2x16x1xf32, #tpu.memory_space<vmem>>, vector<1x16x1xf32>
    %24 = vector.shape_cast %23 : vector<1x16x1xf32> to vector<16x1xf32>
    %25 = vector.shape_cast %22 : vector<16x1xf32> to vector<1x16x1xf32>
    tpu.vector_store %arg26[%c0_17, %c0_18, %c0_19], %25 {strides = array<i32>} : memref<2x16x1xf32, #tpu.memory_space<vmem>>, vector<1x16x1xf32>,
    %c1_20 = arith.constant 1 : index
    %c0_21 = arith.constant 0 : index
    %c0_22 = arith.constant 0 : index
    %26 = vector.load %arg26[%c1_20, %c0_21, %c0_22] : memref<2x16x1xf32, #tpu.memory_space<vmem>>, vector<1x16x1xf32>
    %27 = vector.shape_cast %26 : vector<1x16x1xf32> to vector<16x1xf32>
    %cst_23 = arith.constant 14.2857141 : f32
    %28 = vector.broadcast %cst_23 : f32 to vector<16x256xf32>
    %29 = arith.subf %14, %28 : vector<16x256xf32>
    %30 = math.exp %29 : vector<16x256xf32>
    %cst_24 = arith.constant dense<0.000000e+00> : vector<16xf32>
    %31 = vector.multi_reduction <add>, %30, %cst_24 [1] : vector<16x256xf32> to vector<16xf32>
    %32 = vector.shape_cast %31 : vector<16xf32> to vector<16x1xf32>
    %33 = arith.addf %27, %32 : vector<16x1xf32>
    %c1_25 = arith.constant 1 : index
    %c0_26 = arith.constant 0 : index
    %c0_27 = arith.constant 0 : index
    %34 = vector.load %arg26[%c1_25, %c0_26, %c0_27] : memref<2x16x1xf32, #tpu.memory_space<vmem>>, vector<1x16x1xf32>
    %35 = vector.shape_cast %34 : vector<1x16x1xf32> to vector<16x1xf32>
    %36 = vector.shape_cast %33 : vector<16x1xf32> to vector<1x16x1xf32>
    tpu.vector_store %arg26[%c1_25, %c0_26, %c0_27], %36 {strides = array<i32>} : memref<2x16x1xf32, #tpu.memory_space<vmem>>, vector<1x16x1xf32>,
    %c0_i32_28 = arith.constant 0 : i32
    %37 = arith.cmpi eq, %arg2, %c0_i32_28 : i32
    %38 = arith.extui %37 : i1 to i32
    %c0_i32_29 = arith.constant 0 : i32
    %39 = arith.cmpi ne, %38, %c0_i32_29 : i32
    scf.if %39 {
      %c0_30 = arith.constant 0 : index
      %c0_31 = arith.constant 0 : index
      %c0_32 = arith.constant 0 : index
      %40 = vector.load %arg26[%c0_30, %c0_31, %c0_32] : memref<2x16x1xf32, #tpu.memory_space<vmem>>, vector<1x16x1xf32>
      %41 = vector.shape_cast %40 : vector<1x16x1xf32> to vector<16x1xf32>
      %c0_33 = arith.constant 0 : index
      %c0_34 = arith.constant 0 : index
      %c0_35 = arith.constant 0 : index
      %42 = vector.load %arg24[%c0_33, %c0_34, %c0_35] : memref<1x16x2xf32, #tpu.memory_space<vmem>>, vector<1x16x1xf32>
      %43 = vector.shape_cast %42 : vector<1x16x1xf32> to vector<16x1xf32>
      %44 = vector.shape_cast %41 : vector<16x1xf32> to vector<1x16x1xf32>
      tpu.vector_store %arg24[%c0_33, %c0_34, %c0_35], %44 {strides = array<i32>} : memref<1x16x2xf32, #tpu.memory_space<vmem>>, vector<1x16x1xf32>,
      %c1_36 = arith.constant 1 : index
      %c0_37 = arith.constant 0 : index
      %c0_38 = arith.constant 0 : index
      %45 = vector.load %arg26[%c1_36, %c0_37, %c0_38] : memref<2x16x1xf32, #tpu.memory_space<vmem>>, vector<1x16x1xf32>
      %46 = vector.shape_cast %45 : vector<1x16x1xf32> to vector<16x1xf32>
      %c0_39 = arith.constant 0 : index
      %c0_40 = arith.constant 0 : index
      %c1_41 = arith.constant 1 : index
      %47 = vector.load %arg24[%c0_39, %c0_40, %c1_41] : memref<1x16x2xf32, #tpu.memory_space<vmem>>, vector<1x16x1xf32>
      %48 = vector.shape_cast %47 : vector<1x16x1xf32> to vector<16x1xf32>
      %49 = vector.shape_cast %46 : vector<16x1xf32> to vector<1x16x1xf32>
      tpu.vector_store %arg24[%c0_39, %c0_40, %c1_41], %49 {strides = array<i32>} : memref<1x16x2xf32, #tpu.memory_space<vmem>>, vector<1x16x1xf32>,
    } else {
    }
    return
  }
  func.func @transform_0(%arg0: i32, %arg1: i32, %arg2: i32) -> (i32, i32) {
    %c0_i32 = arith.constant 0 : i32
    %c0_i32_0 = arith.constant 0 : i32
    return %arg1, %c0_i32 : i32, i32
  }
  func.func @transform_1(%arg0: i32, %arg1: i32, %arg2: i32) -> (i32, i32) {
    %c0_i32 = arith.constant 0 : i32
    %c0_i32_0 = arith.constant 0 : i32
    return %arg1, %c0_i32 : i32, i32
  }
  func.func @transform_2(%arg0: i32, %arg1: i32, %arg2: i32) -> (i32, i32, i32) {
    %c0_i32 = arith.constant 0 : i32
    %c0_i32_0 = arith.constant 0 : i32
    %c0_i32_1 = arith.constant 0 : i32
    %c0_i32_2 = arith.constant 0 : i32
    return %c0_i32, %c0_i32_0, %c0_i32_1 : i32, i32, i32
  }
  func.func @transform_3(%arg0: i32, %arg1: i32, %arg2: i32) -> (i32, i32, i32) {
    %c0_i32 = arith.constant 0 : i32
    %c0_i32_0 = arith.constant 0 : i32
    %c0_i32_1 = arith.constant 0 : i32
    %c0_i32_2 = arith.constant 0 : i32
    return %c0_i32, %c0_i32_0, %c0_i32_1 : i32, i32, i32
  }
  func.func @transform_4(%arg0: i32, %arg1: i32, %arg2: i32) -> (i32, i32, i32) {
    %c0_i32 = arith.constant 0 : i32
    %c0_i32_0 = arith.constant 0 : i32
    %c0_i32_1 = arith.constant 0 : i32
    %c0_i32_2 = arith.constant 0 : i32
    return %c0_i32, %c0_i32_0, %c0_i32_1 : i32, i32, i32
  }
  func.func @transform_5(%arg0: i32, %arg1: i32, %arg2: i32) -> (i32, i32, i32) {
    %c0_i32 = arith.constant 0 : i32
    %c0_i32_0 = arith.constant 0 : i32
    %c0_i32_1 = arith.constant 0 : i32
    %c0_i32_2 = arith.constant 0 : i32
    return %c0_i32, %c0_i32_0, %c0_i32_1 : i32, i32, i32
  }
  func.func @transform_6(%arg0: i32, %arg1: i32, %arg2: i32) -> (i32, i32, i32) {
    %c0_i32 = arith.constant 0 : i32
    %c0_i32_0 = arith.constant 0 : i32
    %c0_i32_1 = arith.constant 0 : i32
    %c0_i32_2 = arith.constant 0 : i32
    return %c0_i32, %c0_i32_0, %c0_i32_1 : i32, i32, i32
  }
  func.func @transform_7(%arg0: i32, %arg1: i32, %arg2: i32) -> (i32, i32, i32) {
    %c0_i32 = arith.constant 0 : i32
    %c0_i32_0 = arith.constant 0 : i32
    %c0_i32_1 = arith.constant 0 : i32
    %c0_i32_2 = arith.constant 0 : i32
    return %c0_i32, %c0_i32_0, %c0_i32_1 : i32, i32, i32
  }
  func.func @transform_8(%arg0: i32, %arg1: i32, %arg2: i32) -> (i32, i32, i32) {
    %c0_i32 = arith.constant 0 : i32
    %c0_i32_0 = arith.constant 0 : i32
    %c0_i32_1 = arith.constant 0 : i32
    %c0_i32_2 = arith.constant 0 : i32
    return %c0_i32, %c0_i32_0, %c0_i32_1 : i32, i32, i32
  }
  func.func @transform_9(%arg0: i32, %arg1: i32, %arg2: i32) -> (i32, i32, i32) {
    %c0_i32 = arith.constant 0 : i32
    %c0_i32_0 = arith.constant 0 : i32
    %c0_i32_1 = arith.constant 0 : i32
    %c0_i32_2 = arith.constant 0 : i32
    return %c0_i32, %c0_i32_0, %c0_i32_1 : i32, i32, i32
  }
  func.func @transform_10(%arg0: i32, %arg1: i32, %arg2: i32) -> (i32, i32, i32) {
    %c0_i32 = arith.constant 0 : i32
    %c0_i32_0 = arith.constant 0 : i32
    %c0_i32_1 = arith.constant 0 : i32
    %c0_i32_2 = arith.constant 0 : i32
    return %c0_i32, %c0_i32_0, %c0_i32_1 : i32, i32, i32
  }
  func.func @transform_11(%arg0: i32, %arg1: i32, %arg2: i32) -> (i32, i32, i32) {
    %c0_i32 = arith.constant 0 : i32
    %c0_i32_0 = arith.constant 0 : i32
    %c0_i32_1 = arith.constant 0 : i32
    %c0_i32_2 = arith.constant 0 : i32
    return %c0_i32, %c0_i32_0, %c0_i32_1 : i32, i32, i32
  }
  func.func @transform_12(%arg0: i32, %arg1: i32, %arg2: i32) -> (i32, i32, i32) {
    %c0_i32 = arith.constant 0 : i32
    %c0_i32_0 = arith.constant 0 : i32
    %c0_i32_1 = arith.constant 0 : i32
    %c0_i32_2 = arith.constant 0 : i32
    return %c0_i32, %c0_i32_0, %c0_i32_1 : i32, i32, i32
  }
  func.func @transform_13(%arg0: i32, %arg1: i32, %arg2: i32) -> (i32, i32, i32) {
    %c0_i32 = arith.constant 0 : i32
    %c0_i32_0 = arith.constant 0 : i32
    %c0_i32_1 = arith.constant 0 : i32
    %c0_i32_2 = arith.constant 0 : i32
    return %c0_i32, %c0_i32_0, %c0_i32_1 : i32, i32, i32
  }
  func.func @transform_14(%arg0: i32, %arg1: i32, %arg2: i32) -> (i32, i32, i32) {
    %c0_i32 = arith.constant 0 : i32
    %c0_i32_0 = arith.constant 0 : i32
    %c0_i32_1 = arith.constant 0 : i32
    %c0_i32_2 = arith.constant 0 : i32
    return %c0_i32, %c0_i32_0, %c0_i32_1 : i32, i32, i32
  }
  func.func @transform_15(%arg0: i32, %arg1: i32, %arg2: i32) -> (i32, i32, i32) {
    %c0_i32 = arith.constant 0 : i32
    %c0_i32_0 = arith.constant 0 : i32
    %c0_i32_1 = arith.constant 0 : i32
    %c0_i32_2 = arith.constant 0 : i32
    return %c0_i32, %c0_i32_0, %c0_i32_1 : i32, i32, i32
  }
  func.func @transform_16(%arg0: i32, %arg1: i32, %arg2: i32) -> (i32, i32, i32) {
    %c0_i32 = arith.constant 0 : i32
    %c0_i32_0 = arith.constant 0 : i32
    %c0_i32_1 = arith.constant 0 : i32
    %c0_i32_2 = arith.constant 0 : i32
    return %c0_i32, %c0_i32_0, %c0_i32_1 : i32, i32, i32
  }
  func.func @transform_17(%arg0: i32, %arg1: i32, %arg2: i32) -> (i32, i32, i32) {
    %c0_i32 = arith.constant 0 : i32
    %c0_i32_0 = arith.constant 0 : i32
    %c0_i32_1 = arith.constant 0 : i32
    %c0_i32_2 = arith.constant 0 : i32
    return %c0_i32, %c0_i32_0, %c0_i32_1 : i32, i32, i32
  }
  func.func @transform_18(%arg0: i32, %arg1: i32, %arg2: i32) -> (i32, i32) {
    %c1_i32 = arith.constant 1 : i32
    %0 = arith.muli %arg0, %c1_i32 : i32
    %1 = arith.addi %0, %arg2 : i32
    %c0_i32 = arith.constant 0 : i32
    %c0_i32_0 = arith.constant 0 : i32
    return %c0_i32, %1 : i32, i32
  }
  func.func @transform_19(%arg0: i32, %arg1: i32, %arg2: i32) -> (i32, i32) {
    %c1_i32 = arith.constant 1 : i32
    %0 = arith.muli %arg0, %c1_i32 : i32
    %1 = arith.addi %0, %arg2 : i32
    %c0_i32 = arith.constant 0 : i32
    %c0_i32_0 = arith.constant 0 : i32
    return %c0_i32, %1 : i32, i32
  }
  func.func @transform_20(%arg0: i32, %arg1: i32, %arg2: i32) -> (i32, i32, i32) {
    %c0_i32 = arith.constant 0 : i32
    %c0_i32_0 = arith.constant 0 : i32
    return %arg0, %arg1, %c0_i32 : i32, i32, i32
  }
  func.func @transform_21(%arg0: i32, %arg1: i32, %arg2: i32) -> (i32, i32, i32) {
    %c0_i32 = arith.constant 0 : i32
    %c0_i32_0 = arith.constant 0 : i32
    return %arg0, %arg1, %c0_i32 : i32, i32, i32
  }
}

module attributes {stable_mosaic.version = 11 : i64} {
  func.func @_moco_pair_kernel(%arg0: i32, %arg1: i32, %arg2: i32, %arg3: memref<16x32xf32, #tpu.memory_space<vmem>>, %arg4: memref<16x24xf32, #tpu.memory_space<vmem>>, %arg5: memref<2x32x32xf32, #tpu.memory_space<vmem>>, %arg6: memref<2x1x32xf32, #tpu.memory_space<vmem>>, %arg7: memref<2x1x32xf32, #tpu.memory_space<vmem>>, %arg8: memref<2x1x32xf32, #tpu.memory_space<vmem>>, %arg9: memref<2x32x16xf32, #tpu.memory_space<vmem>>, %arg10: memref<2x1x16xf32, #tpu.memory_space<vmem>>, %arg11: memref<2x16x16xf32, #tpu.memory_space<vmem>>, %arg12: memref<2x1x16xf32, #tpu.memory_space<vmem>>, %arg13: memref<2x24x32xf32, #tpu.memory_space<vmem>>, %arg14: memref<2x1x32xf32, #tpu.memory_space<vmem>>, %arg15: memref<2x1x32xf32, #tpu.memory_space<vmem>>, %arg16: memref<2x1x32xf32, #tpu.memory_space<vmem>>, %arg17: memref<2x32x16xf32, #tpu.memory_space<vmem>>, %arg18: memref<2x1x16xf32, #tpu.memory_space<vmem>>, %arg19: memref<2x16x16xf32, #tpu.memory_space<vmem>>, %arg20: memref<2x1x16xf32, #tpu.memory_space<vmem>>, %arg21: memref<16x256xbf16, #tpu.memory_space<vmem>>, %arg22: memref<16x256xbf16, #tpu.memory_space<vmem>>, %arg23: memref<4x16x16xf32, #tpu.memory_space<vmem>>, %arg24: memref<1x16x2xf32, #tpu.memory_space<vmem>>, %arg25: memref<2x16x16xbf16, #tpu.memory_space<vmem>>, %arg26: memref<2x16x1xf32, #tpu.memory_space<vmem>>) attributes {dimension_semantics = [#tpu.dimension_semantics<parallel>, #tpu.dimension_semantics<parallel>, #tpu.dimension_semantics<arbitrary>], iteration_bounds = array<i64: 2, 1, 1>, scalar_prefetch = 0 : i64, scratch_operands = 2 : i64, tpu.core_type = #tpu.core_type<tc>, window_params = [{transform_indices = @transform_0, window_bounds = array<i64: 16, 32>}, {transform_indices = @transform_1, window_bounds = array<i64: 16, 24>}, {pipeline_mode = #tpu.pipeline_mode<synchronous>, transform_indices = @transform_2, window_bounds = array<i64: 2, 32, 32>}, {pipeline_mode = #tpu.pipeline_mode<synchronous>, transform_indices = @transform_3, window_bounds = array<i64: 2, 1, 32>}, {pipeline_mode = #tpu.pipeline_mode<synchronous>, transform_indices = @transform_4, window_bounds = array<i64: 2, 1, 32>}, {pipeline_mode = #tpu.pipeline_mode<synchronous>, transform_indices = @transform_5, window_bounds = array<i64: 2, 1, 32>}, {pipeline_mode = #tpu.pipeline_mode<synchronous>, transform_indices = @transform_6, window_bounds = array<i64: 2, 32, 16>}, {pipeline_mode = #tpu.pipeline_mode<synchronous>, transform_indices = @transform_7, window_bounds = array<i64: 2, 1, 16>}, {pipeline_mode = #tpu.pipeline_mode<synchronous>, transform_indices = @transform_8, window_bounds = array<i64: 2, 16, 16>}, {pipeline_mode = #tpu.pipeline_mode<synchronous>, transform_indices = @transform_9, window_bounds = array<i64: 2, 1, 16>}, {pipeline_mode = #tpu.pipeline_mode<synchronous>, transform_indices = @transform_10, window_bounds = array<i64: 2, 24, 32>}, {pipeline_mode = #tpu.pipeline_mode<synchronous>, transform_indices = @transform_11, window_bounds = array<i64: 2, 1, 32>}, {pipeline_mode = #tpu.pipeline_mode<synchronous>, transform_indices = @transform_12, window_bounds = array<i64: 2, 1, 32>}, {pipeline_mode = #tpu.pipeline_mode<synchronous>, transform_indices = @transform_13, window_bounds = array<i64: 2, 1, 32>}, {pipeline_mode = #tpu.pipeline_mode<synchronous>, transform_indices = @transform_14, window_bounds = array<i64: 2, 32, 16>}, {pipeline_mode = #tpu.pipeline_mode<synchronous>, transform_indices = @transform_15, window_bounds = array<i64: 2, 1, 16>}, {pipeline_mode = #tpu.pipeline_mode<synchronous>, transform_indices = @transform_16, window_bounds = array<i64: 2, 16, 16>}, {pipeline_mode = #tpu.pipeline_mode<synchronous>, transform_indices = @transform_17, window_bounds = array<i64: 2, 1, 16>}, {transform_indices = @transform_18, window_bounds = array<i64: 16, 256>}, {transform_indices = @transform_19, window_bounds = array<i64: 16, 256>}, {transform_indices = @transform_20, window_bounds = array<i64: 4, 16, 16>}, {transform_indices = @transform_21, window_bounds = array<i64: 1, 16, 2>}]} {
    %c0_i32 = arith.constant 0 : i32
    %0 = arith.cmpi eq, %arg2, %c0_i32 : i32
    %1 = arith.extui %0 : i1 to i32
    %c0_i32_0 = arith.constant 0 : i32
    %2 = arith.cmpi ne, %1, %c0_i32_0 : i32
    scf.if %2 {
      %c0_30 = arith.constant 0 : index
      %c0_31 = arith.constant 0 : index
      %40 = vector.load %arg3[%c0_30, %c0_31] : memref<16x32xf32, #tpu.memory_space<vmem>>, vector<16x32xf32>
      %c0_32 = arith.constant 0 : index
      %c0_33 = arith.constant 0 : index
      %41 = vector.load %arg4[%c0_32, %c0_33] : memref<16x24xf32, #tpu.memory_space<vmem>>, vector<16x24xf32>
      %c0_34 = arith.constant 0 : index
      %c0_35 = arith.constant 0 : index
      %c0_36 = arith.constant 0 : index
      %42 = vector.load %arg5[%c0_34, %c0_35, %c0_36] : memref<2x32x32xf32, #tpu.memory_space<vmem>>, vector<1x32x32xf32>
      %43 = vector.shape_cast %42 : vector<1x32x32xf32> to vector<32x32xf32>
      %c0_37 = arith.constant 0 : index
      %c0_38 = arith.constant 0 : index
      %c0_39 = arith.constant 0 : index
      %44 = vector.load %arg6[%c0_37, %c0_38, %c0_39] : memref<2x1x32xf32, #tpu.memory_space<vmem>>, vector<1x1x32xf32>
      %45 = vector.shape_cast %44 : vector<1x1x32xf32> to vector<1x32xf32>
      %c0_40 = arith.constant 0 : index
      %c0_41 = arith.constant 0 : index
      %c0_42 = arith.constant 0 : index
      %46 = vector.load %arg7[%c0_40, %c0_41, %c0_42] : memref<2x1x32xf32, #tpu.memory_space<vmem>>, vector<1x1x32xf32>
      %47 = vector.shape_cast %46 : vector<1x1x32xf32> to vector<1x32xf32>
      %c0_43 = arith.constant 0 : index
      %c0_44 = arith.constant 0 : index
      %c0_45 = arith.constant 0 : index
      %48 = vector.load %arg8[%c0_43, %c0_44, %c0_45] : memref<2x1x32xf32, #tpu.memory_space<vmem>>, vector<1x1x32xf32>
      %49 = vector.shape_cast %48 : vector<1x1x32xf32> to vector<1x32xf32>
      %c0_46 = arith.constant 0 : index
      %c0_47 = arith.constant 0 : index
      %c0_48 = arith.constant 0 : index
      %50 = vector.load %arg9[%c0_46, %c0_47, %c0_48] : memref<2x32x16xf32, #tpu.memory_space<vmem>>, vector<1x32x16xf32>
      %51 = vector.shape_cast %50 : vector<1x32x16xf32> to vector<32x16xf32>
      %c0_49 = arith.constant 0 : index
      %c0_50 = arith.constant 0 : index
      %c0_51 = arith.constant 0 : index
      %52 = vector.load %arg10[%c0_49, %c0_50, %c0_51] : memref<2x1x16xf32, #tpu.memory_space<vmem>>, vector<1x1x16xf32>
      %53 = vector.shape_cast %52 : vector<1x1x16xf32> to vector<1x16xf32>
      %54 = arith.truncf %40 : vector<16x32xf32> to vector<16x32xbf16>
      %55 = arith.truncf %43 : vector<32x32xf32> to vector<32x32xbf16>
      %cst_52 = arith.constant dense<0.000000e+00> : vector<16x32xf32>
      %56 = tpu.matmul %54, %55, %cst_52 {dimension_numbers = #tpu.dot_dimension_numbers<[1], [0], [0], [1], [0, 0, 1, 1], [], []>} : vector<16x32xbf16>, vector<32x32xbf16>, vector<16x32xf32> -> vector<16x32xf32>
      %57 = vector.broadcast %45 : vector<1x32xf32> to vector<16x32xf32>
      %58 = arith.addf %56, %57 : vector<16x32xf32>
      %cst_53 = arith.constant dense<0.000000e+00> : vector<16xf32>
      %59 = vector.multi_reduction <add>, %58, %cst_53 [1] : vector<16x32xf32> to vector<16xf32>
      %60 = vector.shape_cast %59 : vector<16xf32> to vector<16x1xf32>
      %cst_54 = arith.constant 3.200000e+01 : f32
      %61 = vector.broadcast %cst_54 : f32 to vector<16x1xf32>
      %62 = arith.divf %60, %61 : vector<16x1xf32>
      %63 = vector.broadcast %62 : vector<16x1xf32> to vector<16x32xf32>
      %64 = arith.subf %58, %63 : vector<16x32xf32>
      %65 = vector.broadcast %62 : vector<16x1xf32> to vector<16x32xf32>
      %66 = arith.subf %58, %65 : vector<16x32xf32>
      %67 = arith.mulf %64, %66 : vector<16x32xf32>
      %cst_55 = arith.constant dense<0.000000e+00> : vector<16xf32>
      %68 = vector.multi_reduction <add>, %67, %cst_55 [1] : vector<16x32xf32> to vector<16xf32>
      %69 = vector.shape_cast %68 : vector<16xf32> to vector<16x1xf32>
      %cst_56 = arith.constant 3.200000e+01 : f32
      %70 = vector.broadcast %cst_56 : f32 to vector<16x1xf32>
      %71 = arith.divf %69, %70 : vector<16x1xf32>
      %72 = vector.broadcast %62 : vector<16x1xf32> to vector<16x32xf32>
      %73 = arith.subf %58, %72 : vector<16x32xf32>
      %cst_57 = arith.constant 9.99999974E-6 : f32
      %74 = vector.broadcast %cst_57 : f32 to vector<16x1xf32>
      %75 = arith.addf %71, %74 : vector<16x1xf32>
      %76 = math.rsqrt %75 : vector<16x1xf32>
      %77 = vector.broadcast %76 : vector<16x1xf32> to vector<16x32xf32>
      %78 = arith.mulf %73, %77 : vector<16x32xf32>
      %79 = vector.broadcast %47 : vector<1x32xf32> to vector<16x32xf32>
      %80 = arith.mulf %78, %79 : vector<16x32xf32>
      %81 = vector.broadcast %49 : vector<1x32xf32> to vector<16x32xf32>
      %82 = arith.addf %80, %81 : vector<16x32xf32>
      %83 = arith.negf %82 : vector<16x32xf32>
      %84 = math.exp %83 : vector<16x32xf32>
      %cst_58 = arith.constant 1.000000e+00 : f32
      %85 = vector.broadcast %cst_58 : f32 to vector<16x32xf32>
      %86 = arith.addf %85, %84 : vector<16x32xf32>
      %87 = arith.divf %85, %86 : vector<16x32xf32>
      %88 = arith.mulf %82, %87 : vector<16x32xf32>
      %89 = arith.truncf %88 : vector<16x32xf32> to vector<16x32xbf16>
      %90 = arith.truncf %51 : vector<32x16xf32> to vector<32x16xbf16>
      %cst_59 = arith.constant dense<0.000000e+00> : vector<16x16xf32>
      %91 = tpu.matmul %89, %90, %cst_59 {dimension_numbers = #tpu.dot_dimension_numbers<[1], [0], [0], [1], [0, 0, 1, 1], [], []>} : vector<16x32xbf16>, vector<32x16xbf16>, vector<16x16xf32> -> vector<16x16xf32>
      %92 = vector.broadcast %53 : vector<1x16xf32> to vector<16x16xf32>
      %93 = arith.addf %91, %92 : vector<16x16xf32>
      %c0_60 = arith.constant 0 : index
      %c0_61 = arith.constant 0 : index
      %c0_62 = arith.constant 0 : index
      %94 = vector.load %arg11[%c0_60, %c0_61, %c0_62] : memref<2x16x16xf32, #tpu.memory_space<vmem>>, vector<1x16x16xf32>
      %95 = vector.shape_cast %94 : vector<1x16x16xf32> to vector<16x16xf32>
      %c0_63 = arith.constant 0 : index
      %c0_64 = arith.constant 0 : index
      %c0_65 = arith.constant 0 : index
      %96 = vector.load %arg12[%c0_63, %c0_64, %c0_65] : memref<2x1x16xf32, #tpu.memory_space<vmem>>, vector<1x1x16xf32>
      %97 = vector.shape_cast %96 : vector<1x1x16xf32> to vector<1x16xf32>
      %98 = arith.truncf %93 : vector<16x16xf32> to vector<16x16xbf16>
      %99 = arith.truncf %95 : vector<16x16xf32> to vector<16x16xbf16>
      %cst_66 = arith.constant dense<0.000000e+00> : vector<16x16xf32>
      %100 = tpu.matmul %98, %99, %cst_66 {dimension_numbers = #tpu.dot_dimension_numbers<[1], [0], [0], [1], [0, 0, 1, 1], [], []>} : vector<16x16xbf16>, vector<16x16xbf16>, vector<16x16xf32> -> vector<16x16xf32>
      %101 = vector.broadcast %97 : vector<1x16xf32> to vector<16x16xf32>
      %102 = arith.addf %100, %101 : vector<16x16xf32>
      %103 = arith.mulf %102, %102 : vector<16x16xf32>
      %cst_67 = arith.constant dense<0.000000e+00> : vector<16xf32>
      %104 = vector.multi_reduction <add>, %103, %cst_67 [1] : vector<16x16xf32> to vector<16xf32>
      %105 = vector.shape_cast %104 : vector<16xf32> to vector<16x1xf32>
      %cst_68 = arith.constant 1.000000e-24 : f32
      %106 = vector.broadcast %cst_68 : f32 to vector<16x1xf32>
      %107 = arith.maximumf %105, %106 : vector<16x1xf32>
      %108 = math.rsqrt %107 : vector<16x1xf32>
      %109 = vector.broadcast %108 : vector<16x1xf32> to vector<16x16xf32>
      %110 = arith.mulf %102, %109 : vector<16x16xf32>
      %c0_69 = arith.constant 0 : index
      %c0_70 = arith.constant 0 : index
      %c0_71 = arith.constant 0 : index
      %111 = vector.load %arg13[%c0_69, %c0_70, %c0_71] : memref<2x24x32xf32, #tpu.memory_space<vmem>>, vector<1x24x32xf32>
      %112 = vector.shape_cast %111 : vector<1x24x32xf32> to vector<24x32xf32>
      %c0_72 = arith.constant 0 : index
      %c0_73 = arith.constant 0 : index
      %c0_74 = arith.constant 0 : index
      %113 = vector.load %arg14[%c0_72, %c0_73, %c0_74] : memref<2x1x32xf32, #tpu.memory_space<vmem>>, vector<1x1x32xf32>
      %114 = vector.shape_cast %113 : vector<1x1x32xf32> to vector<1x32xf32>
      %c0_75 = arith.constant 0 : index
      %c0_76 = arith.constant 0 : index
      %c0_77 = arith.constant 0 : index
      %115 = vector.load %arg15[%c0_75, %c0_76, %c0_77] : memref<2x1x32xf32, #tpu.memory_space<vmem>>, vector<1x1x32xf32>
      %116 = vector.shape_cast %115 : vector<1x1x32xf32> to vector<1x32xf32>
      %c0_78 = arith.constant 0 : index
      %c0_79 = arith.constant 0 : index
      %c0_80 = arith.constant 0 : index
      %117 = vector.load %arg16[%c0_78, %c0_79, %c0_80] : memref<2x1x32xf32, #tpu.memory_space<vmem>>, vector<1x1x32xf32>
      %118 = vector.shape_cast %117 : vector<1x1x32xf32> to vector<1x32xf32>
      %c0_81 = arith.constant 0 : index
      %c0_82 = arith.constant 0 : index
      %c0_83 = arith.constant 0 : index
      %119 = vector.load %arg17[%c0_81, %c0_82, %c0_83] : memref<2x32x16xf32, #tpu.memory_space<vmem>>, vector<1x32x16xf32>
      %120 = vector.shape_cast %119 : vector<1x32x16xf32> to vector<32x16xf32>
      %c0_84 = arith.constant 0 : index
      %c0_85 = arith.constant 0 : index
      %c0_86 = arith.constant 0 : index
      %121 = vector.load %arg18[%c0_84, %c0_85, %c0_86] : memref<2x1x16xf32, #tpu.memory_space<vmem>>, vector<1x1x16xf32>
      %122 = vector.shape_cast %121 : vector<1x1x16xf32> to vector<1x16xf32>
      %123 = arith.truncf %41 : vector<16x24xf32> to vector<16x24xbf16>
      %124 = arith.truncf %112 : vector<24x32xf32> to vector<24x32xbf16>
      %cst_87 = arith.constant dense<0.000000e+00> : vector<16x32xf32>
      %125 = tpu.matmul %123, %124, %cst_87 {dimension_numbers = #tpu.dot_dimension_numbers<[1], [0], [0], [1], [0, 0, 1, 1], [], []>} : vector<16x24xbf16>, vector<24x32xbf16>, vector<16x32xf32> -> vector<16x32xf32>
      %126 = vector.broadcast %114 : vector<1x32xf32> to vector<16x32xf32>
      %127 = arith.addf %125, %126 : vector<16x32xf32>
      %cst_88 = arith.constant dense<0.000000e+00> : vector<16xf32>
      %128 = vector.multi_reduction <add>, %127, %cst_88 [1] : vector<16x32xf32> to vector<16xf32>
      %129 = vector.shape_cast %128 : vector<16xf32> to vector<16x1xf32>
      %cst_89 = arith.constant 3.200000e+01 : f32
      %130 = vector.broadcast %cst_89 : f32 to vector<16x1xf32>
      %131 = arith.divf %129, %130 : vector<16x1xf32>
      %132 = vector.broadcast %131 : vector<16x1xf32> to vector<16x32xf32>
      %133 = arith.subf %127, %132 : vector<16x32xf32>
      %134 = vector.broadcast %131 : vector<16x1xf32> to vector<16x32xf32>
      %135 = arith.subf %127, %134 : vector<16x32xf32>
      %136 = arith.mulf %133, %135 : vector<16x32xf32>
      %cst_90 = arith.constant dense<0.000000e+00> : vector<16xf32>
      %137 = vector.multi_reduction <add>, %136, %cst_90 [1] : vector<16x32xf32> to vector<16xf32>
      %138 = vector.shape_cast %137 : vector<16xf32> to vector<16x1xf32>
      %cst_91 = arith.constant 3.200000e+01 : f32
      %139 = vector.broadcast %cst_91 : f32 to vector<16x1xf32>
      %140 = arith.divf %138, %139 : vector<16x1xf32>
      %141 = vector.broadcast %131 : vector<16x1xf32> to vector<16x32xf32>
      %142 = arith.subf %127, %141 : vector<16x32xf32>
      %cst_92 = arith.constant 9.99999974E-6 : f32
      %143 = vector.broadcast %cst_92 : f32 to vector<16x1xf32>
      %144 = arith.addf %140, %143 : vector<16x1xf32>
      %145 = math.rsqrt %144 : vector<16x1xf32>
      %146 = vector.broadcast %145 : vector<16x1xf32> to vector<16x32xf32>
      %147 = arith.mulf %142, %146 : vector<16x32xf32>
      %148 = vector.broadcast %116 : vector<1x32xf32> to vector<16x32xf32>
      %149 = arith.mulf %147, %148 : vector<16x32xf32>
      %150 = vector.broadcast %118 : vector<1x32xf32> to vector<16x32xf32>
      %151 = arith.addf %149, %150 : vector<16x32xf32>
      %152 = arith.negf %151 : vector<16x32xf32>
      %153 = math.exp %152 : vector<16x32xf32>
      %cst_93 = arith.constant 1.000000e+00 : f32
      %154 = vector.broadcast %cst_93 : f32 to vector<16x32xf32>
      %155 = arith.addf %154, %153 : vector<16x32xf32>
      %156 = arith.divf %154, %155 : vector<16x32xf32>
      %157 = arith.mulf %151, %156 : vector<16x32xf32>
      %158 = arith.truncf %157 : vector<16x32xf32> to vector<16x32xbf16>
      %159 = arith.truncf %120 : vector<32x16xf32> to vector<32x16xbf16>
      %cst_94 = arith.constant dense<0.000000e+00> : vector<16x16xf32>
      %160 = tpu.matmul %158, %159, %cst_94 {dimension_numbers = #tpu.dot_dimension_numbers<[1], [0], [0], [1], [0, 0, 1, 1], [], []>} : vector<16x32xbf16>, vector<32x16xbf16>, vector<16x16xf32> -> vector<16x16xf32>
      %161 = vector.broadcast %122 : vector<1x16xf32> to vector<16x16xf32>
      %162 = arith.addf %160, %161 : vector<16x16xf32>
      %c0_95 = arith.constant 0 : index
      %c0_96 = arith.constant 0 : index
      %c0_97 = arith.constant 0 : index
      %163 = vector.load %arg19[%c0_95, %c0_96, %c0_97] : memref<2x16x16xf32, #tpu.memory_space<vmem>>, vector<1x16x16xf32>
      %164 = vector.shape_cast %163 : vector<1x16x16xf32> to vector<16x16xf32>
      %c0_98 = arith.constant 0 : index
      %c0_99 = arith.constant 0 : index
      %c0_100 = arith.constant 0 : index
      %165 = vector.load %arg20[%c0_98, %c0_99, %c0_100] : memref<2x1x16xf32, #tpu.memory_space<vmem>>, vector<1x1x16xf32>
      %166 = vector.shape_cast %165 : vector<1x1x16xf32> to vector<1x16xf32>
      %167 = arith.truncf %162 : vector<16x16xf32> to vector<16x16xbf16>
      %168 = arith.truncf %164 : vector<16x16xf32> to vector<16x16xbf16>
      %cst_101 = arith.constant dense<0.000000e+00> : vector<16x16xf32>
      %169 = tpu.matmul %167, %168, %cst_101 {dimension_numbers = #tpu.dot_dimension_numbers<[1], [0], [0], [1], [0, 0, 1, 1], [], []>} : vector<16x16xbf16>, vector<16x16xbf16>, vector<16x16xf32> -> vector<16x16xf32>
      %170 = vector.broadcast %166 : vector<1x16xf32> to vector<16x16xf32>
      %171 = arith.addf %169, %170 : vector<16x16xf32>
      %172 = arith.mulf %171, %171 : vector<16x16xf32>
      %cst_102 = arith.constant dense<0.000000e+00> : vector<16xf32>
      %173 = vector.multi_reduction <add>, %172, %cst_102 [1] : vector<16x16xf32> to vector<16xf32>
      %174 = vector.shape_cast %173 : vector<16xf32> to vector<16x1xf32>
      %cst_103 = arith.constant 1.000000e-24 : f32
      %175 = vector.broadcast %cst_103 : f32 to vector<16x1xf32>
      %176 = arith.maximumf %174, %175 : vector<16x1xf32>
      %177 = math.rsqrt %176 : vector<16x1xf32>
      %178 = vector.broadcast %177 : vector<16x1xf32> to vector<16x16xf32>
      %179 = arith.mulf %171, %178 : vector<16x16xf32>
      %c0_104 = arith.constant 0 : index
      %c0_105 = arith.constant 0 : index
      %c0_106 = arith.constant 0 : index
      %180 = vector.load %arg23[%c0_104, %c0_105, %c0_106] : memref<4x16x16xf32, #tpu.memory_space<vmem>>, vector<1x16x16xf32>
      %181 = vector.shape_cast %180 : vector<1x16x16xf32> to vector<16x16xf32>
      %182 = vector.shape_cast %110 : vector<16x16xf32> to vector<1x16x16xf32>
      tpu.vector_store %arg23[%c0_104, %c0_105, %c0_106], %182 {strides = array<i32>} : memref<4x16x16xf32, #tpu.memory_space<vmem>>, vector<1x16x16xf32>,
      %c1_107 = arith.constant 1 : index
      %c0_108 = arith.constant 0 : index
      %c0_109 = arith.constant 0 : index
      %183 = vector.load %arg23[%c1_107, %c0_108, %c0_109] : memref<4x16x16xf32, #tpu.memory_space<vmem>>, vector<1x16x16xf32>
      %184 = vector.shape_cast %183 : vector<1x16x16xf32> to vector<16x16xf32>
      %185 = vector.shape_cast %179 : vector<16x16xf32> to vector<1x16x16xf32>
      tpu.vector_store %arg23[%c1_107, %c0_108, %c0_109], %185 {strides = array<i32>} : memref<4x16x16xf32, #tpu.memory_space<vmem>>, vector<1x16x16xf32>,
      %186 = arith.truncf %110 : vector<16x16xf32> to vector<16x16xbf16>
      %c0_110 = arith.constant 0 : index
      %c0_111 = arith.constant 0 : index
      %c0_112 = arith.constant 0 : index
      %187 = vector.load %arg25[%c0_110, %c0_111, %c0_112] : memref<2x16x16xbf16, #tpu.memory_space<vmem>>, vector<1x16x16xbf16>
      %188 = vector.shape_cast %187 : vector<1x16x16xbf16> to vector<16x16xbf16>
      %189 = vector.shape_cast %186 : vector<16x16xbf16> to vector<1x16x16xbf16>
      tpu.vector_store %arg25[%c0_110, %c0_111, %c0_112], %189 {strides = array<i32>} : memref<2x16x16xbf16, #tpu.memory_space<vmem>>, vector<1x16x16xbf16>,
      %190 = arith.truncf %179 : vector<16x16xf32> to vector<16x16xbf16>
      %c1_113 = arith.constant 1 : index
      %c0_114 = arith.constant 0 : index
      %c0_115 = arith.constant 0 : index
      %191 = vector.load %arg25[%c1_113, %c0_114, %c0_115] : memref<2x16x16xbf16, #tpu.memory_space<vmem>>, vector<1x16x16xbf16>
      %192 = vector.shape_cast %191 : vector<1x16x16xbf16> to vector<16x16xbf16>
      %193 = vector.shape_cast %190 : vector<16x16xbf16> to vector<1x16x16xbf16>
      tpu.vector_store %arg25[%c1_113, %c0_114, %c0_115], %193 {strides = array<i32>} : memref<2x16x16xbf16, #tpu.memory_space<vmem>>, vector<1x16x16xbf16>,
      %c1_116 = arith.constant 1 : index
      %c0_117 = arith.constant 0 : index
      %c0_118 = arith.constant 0 : index
      %194 = vector.load %arg5[%c1_116, %c0_117, %c0_118] : memref<2x32x32xf32, #tpu.memory_space<vmem>>, vector<1x32x32xf32>
      %195 = vector.shape_cast %194 : vector<1x32x32xf32> to vector<32x32xf32>
      %c1_119 = arith.constant 1 : index
      %c0_120 = arith.constant 0 : index
      %c0_121 = arith.constant 0 : index
      %196 = vector.load %arg6[%c1_119, %c0_120, %c0_121] : memref<2x1x32xf32, #tpu.memory_space<vmem>>, vector<1x1x32xf32>
      %197 = vector.shape_cast %196 : vector<1x1x32xf32> to vector<1x32xf32>
      %c1_122 = arith.constant 1 : index
      %c0_123 = arith.constant 0 : index
      %c0_124 = arith.constant 0 : index
      %198 = vector.load %arg7[%c1_122, %c0_123, %c0_124] : memref<2x1x32xf32, #tpu.memory_space<vmem>>, vector<1x1x32xf32>
      %199 = vector.shape_cast %198 : vector<1x1x32xf32> to vector<1x32xf32>
      %c1_125 = arith.constant 1 : index
      %c0_126 = arith.constant 0 : index
      %c0_127 = arith.constant 0 : index
      %200 = vector.load %arg8[%c1_125, %c0_126, %c0_127] : memref<2x1x32xf32, #tpu.memory_space<vmem>>, vector<1x1x32xf32>
      %201 = vector.shape_cast %200 : vector<1x1x32xf32> to vector<1x32xf32>
      %c1_128 = arith.constant 1 : index
      %c0_129 = arith.constant 0 : index
      %c0_130 = arith.constant 0 : index
      %202 = vector.load %arg9[%c1_128, %c0_129, %c0_130] : memref<2x32x16xf32, #tpu.memory_space<vmem>>, vector<1x32x16xf32>
      %203 = vector.shape_cast %202 : vector<1x32x16xf32> to vector<32x16xf32>
      %c1_131 = arith.constant 1 : index
      %c0_132 = arith.constant 0 : index
      %c0_133 = arith.constant 0 : index
      %204 = vector.load %arg10[%c1_131, %c0_132, %c0_133] : memref<2x1x16xf32, #tpu.memory_space<vmem>>, vector<1x1x16xf32>
      %205 = vector.shape_cast %204 : vector<1x1x16xf32> to vector<1x16xf32>
      %206 = arith.truncf %40 : vector<16x32xf32> to vector<16x32xbf16>
      %207 = arith.truncf %195 : vector<32x32xf32> to vector<32x32xbf16>
      %cst_134 = arith.constant dense<0.000000e+00> : vector<16x32xf32>
      %208 = tpu.matmul %206, %207, %cst_134 {dimension_numbers = #tpu.dot_dimension_numbers<[1], [0], [0], [1], [0, 0, 1, 1], [], []>} : vector<16x32xbf16>, vector<32x32xbf16>, vector<16x32xf32> -> vector<16x32xf32>
      %209 = vector.broadcast %197 : vector<1x32xf32> to vector<16x32xf32>
      %210 = arith.addf %208, %209 : vector<16x32xf32>
      %cst_135 = arith.constant dense<0.000000e+00> : vector<16xf32>
      %211 = vector.multi_reduction <add>, %210, %cst_135 [1] : vector<16x32xf32> to vector<16xf32>
      %212 = vector.shape_cast %211 : vector<16xf32> to vector<16x1xf32>
      %cst_136 = arith.constant 3.200000e+01 : f32
      %213 = vector.broadcast %cst_136 : f32 to vector<16x1xf32>
      %214 = arith.divf %212, %213 : vector<16x1xf32>
      %215 = vector.broadcast %214 : vector<16x1xf32> to vector<16x32xf32>
      %216 = arith.subf %210, %215 : vector<16x32xf32>
      %217 = vector.broadcast %214 : vector<16x1xf32> to vector<16x32xf32>
      %218 = arith.subf %210, %217 : vector<16x32xf32>
      %219 = arith.mulf %216, %218 : vector<16x32xf32>
      %cst_137 = arith.constant dense<0.000000e+00> : vector<16xf32>
      %220 = vector.multi_reduction <add>, %219, %cst_137 [1] : vector<16x32xf32> to vector<16xf32>
      %221 = vector.shape_cast %220 : vector<16xf32> to vector<16x1xf32>
      %cst_138 = arith.constant 3.200000e+01 : f32
      %222 = vector.broadcast %cst_138 : f32 to vector<16x1xf32>
      %223 = arith.divf %221, %222 : vector<16x1xf32>
      %224 = vector.broadcast %214 : vector<16x1xf32> to vector<16x32xf32>
      %225 = arith.subf %210, %224 : vector<16x32xf32>
      %cst_139 = arith.constant 9.99999974E-6 : f32
      %226 = vector.broadcast %cst_139 : f32 to vector<16x1xf32>
      %227 = arith.addf %223, %226 : vector<16x1xf32>
      %228 = math.rsqrt %227 : vector<16x1xf32>
      %229 = vector.broadcast %228 : vector<16x1xf32> to vector<16x32xf32>
      %230 = arith.mulf %225, %229 : vector<16x32xf32>
      %231 = vector.broadcast %199 : vector<1x32xf32> to vector<16x32xf32>
      %232 = arith.mulf %230, %231 : vector<16x32xf32>
      %233 = vector.broadcast %201 : vector<1x32xf32> to vector<16x32xf32>
      %234 = arith.addf %232, %233 : vector<16x32xf32>
      %235 = arith.negf %234 : vector<16x32xf32>
      %236 = math.exp %235 : vector<16x32xf32>
      %cst_140 = arith.constant 1.000000e+00 : f32
      %237 = vector.broadcast %cst_140 : f32 to vector<16x32xf32>
      %238 = arith.addf %237, %236 : vector<16x32xf32>
      %239 = arith.divf %237, %238 : vector<16x32xf32>
      %240 = arith.mulf %234, %239 : vector<16x32xf32>
      %241 = arith.truncf %240 : vector<16x32xf32> to vector<16x32xbf16>
      %242 = arith.truncf %203 : vector<32x16xf32> to vector<32x16xbf16>
      %cst_141 = arith.constant dense<0.000000e+00> : vector<16x16xf32>
      %243 = tpu.matmul %241, %242, %cst_141 {dimension_numbers = #tpu.dot_dimension_numbers<[1], [0], [0], [1], [0, 0, 1, 1], [], []>} : vector<16x32xbf16>, vector<32x16xbf16>, vector<16x16xf32> -> vector<16x16xf32>
      %244 = vector.broadcast %205 : vector<1x16xf32> to vector<16x16xf32>
      %245 = arith.addf %243, %244 : vector<16x16xf32>
      %c1_142 = arith.constant 1 : index
      %c0_143 = arith.constant 0 : index
      %c0_144 = arith.constant 0 : index
      %246 = vector.load %arg11[%c1_142, %c0_143, %c0_144] : memref<2x16x16xf32, #tpu.memory_space<vmem>>, vector<1x16x16xf32>
      %247 = vector.shape_cast %246 : vector<1x16x16xf32> to vector<16x16xf32>
      %c1_145 = arith.constant 1 : index
      %c0_146 = arith.constant 0 : index
      %c0_147 = arith.constant 0 : index
      %248 = vector.load %arg12[%c1_145, %c0_146, %c0_147] : memref<2x1x16xf32, #tpu.memory_space<vmem>>, vector<1x1x16xf32>
      %249 = vector.shape_cast %248 : vector<1x1x16xf32> to vector<1x16xf32>
      %250 = arith.truncf %245 : vector<16x16xf32> to vector<16x16xbf16>
      %251 = arith.truncf %247 : vector<16x16xf32> to vector<16x16xbf16>
      %cst_148 = arith.constant dense<0.000000e+00> : vector<16x16xf32>
      %252 = tpu.matmul %250, %251, %cst_148 {dimension_numbers = #tpu.dot_dimension_numbers<[1], [0], [0], [1], [0, 0, 1, 1], [], []>} : vector<16x16xbf16>, vector<16x16xbf16>, vector<16x16xf32> -> vector<16x16xf32>
      %253 = vector.broadcast %249 : vector<1x16xf32> to vector<16x16xf32>
      %254 = arith.addf %252, %253 : vector<16x16xf32>
      %255 = arith.mulf %254, %254 : vector<16x16xf32>
      %cst_149 = arith.constant dense<0.000000e+00> : vector<16xf32>
      %256 = vector.multi_reduction <add>, %255, %cst_149 [1] : vector<16x16xf32> to vector<16xf32>
      %257 = vector.shape_cast %256 : vector<16xf32> to vector<16x1xf32>
      %cst_150 = arith.constant 1.000000e-24 : f32
      %258 = vector.broadcast %cst_150 : f32 to vector<16x1xf32>
      %259 = arith.maximumf %257, %258 : vector<16x1xf32>
      %260 = math.rsqrt %259 : vector<16x1xf32>
      %261 = vector.broadcast %260 : vector<16x1xf32> to vector<16x16xf32>
      %262 = arith.mulf %254, %261 : vector<16x16xf32>
      %c1_151 = arith.constant 1 : index
      %c0_152 = arith.constant 0 : index
      %c0_153 = arith.constant 0 : index
      %263 = vector.load %arg13[%c1_151, %c0_152, %c0_153] : memref<2x24x32xf32, #tpu.memory_space<vmem>>, vector<1x24x32xf32>
      %264 = vector.shape_cast %263 : vector<1x24x32xf32> to vector<24x32xf32>
      %c1_154 = arith.constant 1 : index
      %c0_155 = arith.constant 0 : index
      %c0_156 = arith.constant 0 : index
      %265 = vector.load %arg14[%c1_154, %c0_155, %c0_156] : memref<2x1x32xf32, #tpu.memory_space<vmem>>, vector<1x1x32xf32>
      %266 = vector.shape_cast %265 : vector<1x1x32xf32> to vector<1x32xf32>
      %c1_157 = arith.constant 1 : index
      %c0_158 = arith.constant 0 : index
      %c0_159 = arith.constant 0 : index
      %267 = vector.load %arg15[%c1_157, %c0_158, %c0_159] : memref<2x1x32xf32, #tpu.memory_space<vmem>>, vector<1x1x32xf32>
      %268 = vector.shape_cast %267 : vector<1x1x32xf32> to vector<1x32xf32>
      %c1_160 = arith.constant 1 : index
      %c0_161 = arith.constant 0 : index
      %c0_162 = arith.constant 0 : index
      %269 = vector.load %arg16[%c1_160, %c0_161, %c0_162] : memref<2x1x32xf32, #tpu.memory_space<vmem>>, vector<1x1x32xf32>
      %270 = vector.shape_cast %269 : vector<1x1x32xf32> to vector<1x32xf32>
      %c1_163 = arith.constant 1 : index
      %c0_164 = arith.constant 0 : index
      %c0_165 = arith.constant 0 : index
      %271 = vector.load %arg17[%c1_163, %c0_164, %c0_165] : memref<2x32x16xf32, #tpu.memory_space<vmem>>, vector<1x32x16xf32>
      %272 = vector.shape_cast %271 : vector<1x32x16xf32> to vector<32x16xf32>
      %c1_166 = arith.constant 1 : index
      %c0_167 = arith.constant 0 : index
      %c0_168 = arith.constant 0 : index
      %273 = vector.load %arg18[%c1_166, %c0_167, %c0_168] : memref<2x1x16xf32, #tpu.memory_space<vmem>>, vector<1x1x16xf32>
      %274 = vector.shape_cast %273 : vector<1x1x16xf32> to vector<1x16xf32>
      %275 = arith.truncf %41 : vector<16x24xf32> to vector<16x24xbf16>
      %276 = arith.truncf %264 : vector<24x32xf32> to vector<24x32xbf16>
      %cst_169 = arith.constant dense<0.000000e+00> : vector<16x32xf32>
      %277 = tpu.matmul %275, %276, %cst_169 {dimension_numbers = #tpu.dot_dimension_numbers<[1], [0], [0], [1], [0, 0, 1, 1], [], []>} : vector<16x24xbf16>, vector<24x32xbf16>, vector<16x32xf32> -> vector<16x32xf32>
      %278 = vector.broadcast %266 : vector<1x32xf32> to vector<16x32xf32>
      %279 = arith.addf %277, %278 : vector<16x32xf32>
      %cst_170 = arith.constant dense<0.000000e+00> : vector<16xf32>
      %280 = vector.multi_reduction <add>, %279, %cst_170 [1] : vector<16x32xf32> to vector<16xf32>
      %281 = vector.shape_cast %280 : vector<16xf32> to vector<16x1xf32>
      %cst_171 = arith.constant 3.200000e+01 : f32
      %282 = vector.broadcast %cst_171 : f32 to vector<16x1xf32>
      %283 = arith.divf %281, %282 : vector<16x1xf32>
      %284 = vector.broadcast %283 : vector<16x1xf32> to vector<16x32xf32>
      %285 = arith.subf %279, %284 : vector<16x32xf32>
      %286 = vector.broadcast %283 : vector<16x1xf32> to vector<16x32xf32>
      %287 = arith.subf %279, %286 : vector<16x32xf32>
      %288 = arith.mulf %285, %287 : vector<16x32xf32>
      %cst_172 = arith.constant dense<0.000000e+00> : vector<16xf32>
      %289 = vector.multi_reduction <add>, %288, %cst_172 [1] : vector<16x32xf32> to vector<16xf32>
      %290 = vector.shape_cast %289 : vector<16xf32> to vector<16x1xf32>
      %cst_173 = arith.constant 3.200000e+01 : f32
      %291 = vector.broadcast %cst_173 : f32 to vector<16x1xf32>
      %292 = arith.divf %290, %291 : vector<16x1xf32>
      %293 = vector.broadcast %283 : vector<16x1xf32> to vector<16x32xf32>
      %294 = arith.subf %279, %293 : vector<16x32xf32>
      %cst_174 = arith.constant 9.99999974E-6 : f32
      %295 = vector.broadcast %cst_174 : f32 to vector<16x1xf32>
      %296 = arith.addf %292, %295 : vector<16x1xf32>
      %297 = math.rsqrt %296 : vector<16x1xf32>
      %298 = vector.broadcast %297 : vector<16x1xf32> to vector<16x32xf32>
      %299 = arith.mulf %294, %298 : vector<16x32xf32>
      %300 = vector.broadcast %268 : vector<1x32xf32> to vector<16x32xf32>
      %301 = arith.mulf %299, %300 : vector<16x32xf32>
      %302 = vector.broadcast %270 : vector<1x32xf32> to vector<16x32xf32>
      %303 = arith.addf %301, %302 : vector<16x32xf32>
      %304 = arith.negf %303 : vector<16x32xf32>
      %305 = math.exp %304 : vector<16x32xf32>
      %cst_175 = arith.constant 1.000000e+00 : f32
      %306 = vector.broadcast %cst_175 : f32 to vector<16x32xf32>
      %307 = arith.addf %306, %305 : vector<16x32xf32>
      %308 = arith.divf %306, %307 : vector<16x32xf32>
      %309 = arith.mulf %303, %308 : vector<16x32xf32>
      %310 = arith.truncf %309 : vector<16x32xf32> to vector<16x32xbf16>
      %311 = arith.truncf %272 : vector<32x16xf32> to vector<32x16xbf16>
      %cst_176 = arith.constant dense<0.000000e+00> : vector<16x16xf32>
      %312 = tpu.matmul %310, %311, %cst_176 {dimension_numbers = #tpu.dot_dimension_numbers<[1], [0], [0], [1], [0, 0, 1, 1], [], []>} : vector<16x32xbf16>, vector<32x16xbf16>, vector<16x16xf32> -> vector<16x16xf32>
      %313 = vector.broadcast %274 : vector<1x16xf32> to vector<16x16xf32>
      %314 = arith.addf %312, %313 : vector<16x16xf32>
      %c1_177 = arith.constant 1 : index
      %c0_178 = arith.constant 0 : index
      %c0_179 = arith.constant 0 : index
      %315 = vector.load %arg19[%c1_177, %c0_178, %c0_179] : memref<2x16x16xf32, #tpu.memory_space<vmem>>, vector<1x16x16xf32>
      %316 = vector.shape_cast %315 : vector<1x16x16xf32> to vector<16x16xf32>
      %c1_180 = arith.constant 1 : index
      %c0_181 = arith.constant 0 : index
      %c0_182 = arith.constant 0 : index
      %317 = vector.load %arg20[%c1_180, %c0_181, %c0_182] : memref<2x1x16xf32, #tpu.memory_space<vmem>>, vector<1x1x16xf32>
      %318 = vector.shape_cast %317 : vector<1x1x16xf32> to vector<1x16xf32>
      %319 = arith.truncf %314 : vector<16x16xf32> to vector<16x16xbf16>
      %320 = arith.truncf %316 : vector<16x16xf32> to vector<16x16xbf16>
      %cst_183 = arith.constant dense<0.000000e+00> : vector<16x16xf32>
      %321 = tpu.matmul %319, %320, %cst_183 {dimension_numbers = #tpu.dot_dimension_numbers<[1], [0], [0], [1], [0, 0, 1, 1], [], []>} : vector<16x16xbf16>, vector<16x16xbf16>, vector<16x16xf32> -> vector<16x16xf32>
      %322 = vector.broadcast %318 : vector<1x16xf32> to vector<16x16xf32>
      %323 = arith.addf %321, %322 : vector<16x16xf32>
      %324 = arith.mulf %323, %323 : vector<16x16xf32>
      %cst_184 = arith.constant dense<0.000000e+00> : vector<16xf32>
      %325 = vector.multi_reduction <add>, %324, %cst_184 [1] : vector<16x16xf32> to vector<16xf32>
      %326 = vector.shape_cast %325 : vector<16xf32> to vector<16x1xf32>
      %cst_185 = arith.constant 1.000000e-24 : f32
      %327 = vector.broadcast %cst_185 : f32 to vector<16x1xf32>
      %328 = arith.maximumf %326, %327 : vector<16x1xf32>
      %329 = math.rsqrt %328 : vector<16x1xf32>
      %330 = vector.broadcast %329 : vector<16x1xf32> to vector<16x16xf32>
      %331 = arith.mulf %323, %330 : vector<16x16xf32>
      %c2 = arith.constant 2 : index
      %c0_186 = arith.constant 0 : index
      %c0_187 = arith.constant 0 : index
      %332 = vector.load %arg23[%c2, %c0_186, %c0_187] : memref<4x16x16xf32, #tpu.memory_space<vmem>>, vector<1x16x16xf32>
      %333 = vector.shape_cast %332 : vector<1x16x16xf32> to vector<16x16xf32>
      %334 = vector.shape_cast %262 : vector<16x16xf32> to vector<1x16x16xf32>
      tpu.vector_store %arg23[%c2, %c0_186, %c0_187], %334 {strides = array<i32>} : memref<4x16x16xf32, #tpu.memory_space<vmem>>, vector<1x16x16xf32>,
      %c3 = arith.constant 3 : index
      %c0_188 = arith.constant 0 : index
      %c0_189 = arith.constant 0 : index
      %335 = vector.load %arg23[%c3, %c0_188, %c0_189] : memref<4x16x16xf32, #tpu.memory_space<vmem>>, vector<1x16x16xf32>
      %336 = vector.shape_cast %335 : vector<1x16x16xf32> to vector<16x16xf32>
      %337 = vector.shape_cast %331 : vector<16x16xf32> to vector<1x16x16xf32>
      tpu.vector_store %arg23[%c3, %c0_188, %c0_189], %337 {strides = array<i32>} : memref<4x16x16xf32, #tpu.memory_space<vmem>>, vector<1x16x16xf32>,
      %cst_190 = arith.constant 0.000000e+00 : f32
      %338 = vector.broadcast %cst_190 : f32 to vector<2x16x1xf32>
      %c0_191 = arith.constant 0 : index
      %c0_192 = arith.constant 0 : index
      %c0_193 = arith.constant 0 : index
      %339 = vector.load %arg26[%c0_191, %c0_192, %c0_193] : memref<2x16x1xf32, #tpu.memory_space<vmem>>, vector<2x16x1xf32>
      tpu.vector_store %arg26[%c0_191, %c0_192, %c0_193], %338 {strides = array<i32>} : memref<2x16x1xf32, #tpu.memory_space<vmem>>, vector<2x16x1xf32>,
    } else {
    }
    %c0 = arith.constant 0 : index
    %c0_1 = arith.constant 0 : index
    %c0_2 = arith.constant 0 : index
    %3 = vector.load %arg25[%c0, %c0_1, %c0_2] : memref<2x16x16xbf16, #tpu.memory_space<vmem>>, vector<1x16x16xbf16>
    %4 = vector.shape_cast %3 : vector<1x16x16xbf16> to vector<16x16xbf16>
    %c0_3 = arith.constant 0 : index
    %c0_4 = arith.constant 0 : index
    %5 = vector.load %arg21[%c0_3, %c0_4] : memref<16x256xbf16, #tpu.memory_space<vmem>>, vector<16x256xbf16>
    %cst = arith.constant dense<0.000000e+00> : vector<16x256xf32>
    %6 = tpu.matmul %4, %5, %cst {dimension_numbers = #tpu.dot_dimension_numbers<[1], [0], [0], [1], [0, 0, 1, 1], [], []>} : vector<16x16xbf16>, vector<16x256xbf16>, vector<16x256xf32> -> vector<16x256xf32>
    %cst_5 = arith.constant 14.2857141 : f32
    %7 = vector.broadcast %cst_5 : f32 to vector<16x256xf32>
    %8 = arith.mulf %6, %7 : vector<16x256xf32>
    %c1 = arith.constant 1 : index
    %c0_6 = arith.constant 0 : index
    %c0_7 = arith.constant 0 : index
    %9 = vector.load %arg25[%c1, %c0_6, %c0_7] : memref<2x16x16xbf16, #tpu.memory_space<vmem>>, vector<1x16x16xbf16>
    %10 = vector.shape_cast %9 : vector<1x16x16xbf16> to vector<16x16xbf16>
    %c0_8 = arith.constant 0 : index
    %c0_9 = arith.constant 0 : index
    %11 = vector.load %arg22[%c0_8, %c0_9] : memref<16x256xbf16, #tpu.memory_space<vmem>>, vector<16x256xbf16>
    %cst_10 = arith.constant dense<0.000000e+00> : vector<16x256xf32>
    %12 = tpu.matmul %10, %11, %cst_10 {dimension_numbers = #tpu.dot_dimension_numbers<[1], [0], [0], [1], [0, 0, 1, 1], [], []>} : vector<16x16xbf16>, vector<16x256xbf16>, vector<16x256xf32> -> vector<16x256xf32>
    %cst_11 = arith.constant 14.2857141 : f32
    %13 = vector.broadcast %cst_11 : f32 to vector<16x256xf32>
    %14 = arith.mulf %12, %13 : vector<16x256xf32>
    %c0_12 = arith.constant 0 : index
    %c0_13 = arith.constant 0 : index
    %c0_14 = arith.constant 0 : index
    %15 = vector.load %arg26[%c0_12, %c0_13, %c0_14] : memref<2x16x1xf32, #tpu.memory_space<vmem>>, vector<1x16x1xf32>
    %16 = vector.shape_cast %15 : vector<1x16x1xf32> to vector<16x1xf32>
    %cst_15 = arith.constant 14.2857141 : f32
    %17 = vector.broadcast %cst_15 : f32 to vector<16x256xf32>
    %18 = arith.subf %8, %17 : vector<16x256xf32>
    %19 = math.exp %18 : vector<16x256xf32>
    %cst_16 = arith.constant dense<0.000000e+00> : vector<16xf32>
    %20 = vector.multi_reduction <add>, %19, %cst_16 [1] : vector<16x256xf32> to vector<16xf32>
    %21 = vector.shape_cast %20 : vector<16xf32> to vector<16x1xf32>
    %22 = arith.addf %16, %21 : vector<16x1xf32>
    %c0_17 = arith.constant 0 : index
    %c0_18 = arith.constant 0 : index
    %c0_19 = arith.constant 0 : index
    %23 = vector.load %arg26[%c0_17, %c0_18, %c0_19] : memref<2x16x1xf32, #tpu.memory_space<vmem>>, vector<1x16x1xf32>
    %24 = vector.shape_cast %23 : vector<1x16x1xf32> to vector<16x1xf32>
    %25 = vector.shape_cast %22 : vector<16x1xf32> to vector<1x16x1xf32>
    tpu.vector_store %arg26[%c0_17, %c0_18, %c0_19], %25 {strides = array<i32>} : memref<2x16x1xf32, #tpu.memory_space<vmem>>, vector<1x16x1xf32>,
    %c1_20 = arith.constant 1 : index
    %c0_21 = arith.constant 0 : index
    %c0_22 = arith.constant 0 : index
    %26 = vector.load %arg26[%c1_20, %c0_21, %c0_22] : memref<2x16x1xf32, #tpu.memory_space<vmem>>, vector<1x16x1xf32>
    %27 = vector.shape_cast %26 : vector<1x16x1xf32> to vector<16x1xf32>
    %cst_23 = arith.constant 14.2857141 : f32
    %28 = vector.broadcast %cst_23 : f32 to vector<16x256xf32>
    %29 = arith.subf %14, %28 : vector<16x256xf32>
    %30 = math.exp %29 : vector<16x256xf32>
    %cst_24 = arith.constant dense<0.000000e+00> : vector<16xf32>
    %31 = vector.multi_reduction <add>, %30, %cst_24 [1] : vector<16x256xf32> to vector<16xf32>
    %32 = vector.shape_cast %31 : vector<16xf32> to vector<16x1xf32>
    %33 = arith.addf %27, %32 : vector<16x1xf32>
    %c1_25 = arith.constant 1 : index
    %c0_26 = arith.constant 0 : index
    %c0_27 = arith.constant 0 : index
    %34 = vector.load %arg26[%c1_25, %c0_26, %c0_27] : memref<2x16x1xf32, #tpu.memory_space<vmem>>, vector<1x16x1xf32>
    %35 = vector.shape_cast %34 : vector<1x16x1xf32> to vector<16x1xf32>
    %36 = vector.shape_cast %33 : vector<16x1xf32> to vector<1x16x1xf32>
    tpu.vector_store %arg26[%c1_25, %c0_26, %c0_27], %36 {strides = array<i32>} : memref<2x16x1xf32, #tpu.memory_space<vmem>>, vector<1x16x1xf32>,
    %c0_i32_28 = arith.constant 0 : i32
    %37 = arith.cmpi eq, %arg2, %c0_i32_28 : i32
    %38 = arith.extui %37 : i1 to i32
    %c0_i32_29 = arith.constant 0 : i32
    %39 = arith.cmpi ne, %38, %c0_i32_29 : i32
    scf.if %39 {
      %c0_30 = arith.constant 0 : index
      %c0_31 = arith.constant 0 : index
      %c0_32 = arith.constant 0 : index
      %40 = vector.load %arg26[%c0_30, %c0_31, %c0_32] : memref<2x16x1xf32, #tpu.memory_space<vmem>>, vector<1x16x1xf32>
      %41 = vector.shape_cast %40 : vector<1x16x1xf32> to vector<16x1xf32>
      %c0_33 = arith.constant 0 : index
      %c0_34 = arith.constant 0 : index
      %c0_35 = arith.constant 0 : index
      %42 = vector.load %arg24[%c0_33, %c0_34, %c0_35] : memref<1x16x2xf32, #tpu.memory_space<vmem>>, vector<1x16x1xf32>
      %43 = vector.shape_cast %42 : vector<1x16x1xf32> to vector<16x1xf32>
      %44 = vector.shape_cast %41 : vector<16x1xf32> to vector<1x16x1xf32>
      tpu.vector_store %arg24[%c0_33, %c0_34, %c0_35], %44 {strides = array<i32>} : memref<1x16x2xf32, #tpu.memory_space<vmem>>, vector<1x16x1xf32>,
      %c1_36 = arith.constant 1 : index
      %c0_37 = arith.constant 0 : index
      %c0_38 = arith.constant 0 : index
      %45 = vector.load %arg26[%c1_36, %c0_37, %c0_38] : memref<2x16x1xf32, #tpu.memory_space<vmem>>, vector<1x16x1xf32>
      %46 = vector.shape_cast %45 : vector<1x16x1xf32> to vector<16x1xf32>
      %c0_39 = arith.constant 0 : index
      %c0_40 = arith.constant 0 : index
      %c1_41 = arith.constant 1 : index
      %47 = vector.load %arg24[%c0_39, %c0_40, %c1_41] : memref<1x16x2xf32, #tpu.memory_space<vmem>>, vector<1x16x1xf32>
      %48 = vector.shape_cast %47 : vector<1x16x1xf32> to vector<16x1xf32>
      %49 = vector.shape_cast %46 : vector<16x1xf32> to vector<1x16x1xf32>
      tpu.vector_store %arg24[%c0_39, %c0_40, %c1_41], %49 {strides = array<i32>} : memref<1x16x2xf32, #tpu.memory_space<vmem>>, vector<1x16x1xf32>,
    } else {
    }
    return
  }
  func.func @transform_0(%arg0: i32, %arg1: i32, %arg2: i32) -> (i32, i32) {
    %c0_i32 = arith.constant 0 : i32
    %c0_i32_0 = arith.constant 0 : i32
    return %arg1, %c0_i32 : i32, i32
  }
  func.func @transform_1(%arg0: i32, %arg1: i32, %arg2: i32) -> (i32, i32) {
    %c0_i32 = arith.constant 0 : i32
    %c0_i32_0 = arith.constant 0 : i32
    return %arg1, %c0_i32 : i32, i32
  }
  func.func @transform_2(%arg0: i32, %arg1: i32, %arg2: i32) -> (i32, i32, i32) {
    %c0_i32 = arith.constant 0 : i32
    %c0_i32_0 = arith.constant 0 : i32
    %c0_i32_1 = arith.constant 0 : i32
    %c0_i32_2 = arith.constant 0 : i32
    return %c0_i32, %c0_i32_0, %c0_i32_1 : i32, i32, i32
  }
  func.func @transform_3(%arg0: i32, %arg1: i32, %arg2: i32) -> (i32, i32, i32) {
    %c0_i32 = arith.constant 0 : i32
    %c0_i32_0 = arith.constant 0 : i32
    %c0_i32_1 = arith.constant 0 : i32
    %c0_i32_2 = arith.constant 0 : i32
    return %c0_i32, %c0_i32_0, %c0_i32_1 : i32, i32, i32
  }
  func.func @transform_4(%arg0: i32, %arg1: i32, %arg2: i32) -> (i32, i32, i32) {
    %c0_i32 = arith.constant 0 : i32
    %c0_i32_0 = arith.constant 0 : i32
    %c0_i32_1 = arith.constant 0 : i32
    %c0_i32_2 = arith.constant 0 : i32
    return %c0_i32, %c0_i32_0, %c0_i32_1 : i32, i32, i32
  }
  func.func @transform_5(%arg0: i32, %arg1: i32, %arg2: i32) -> (i32, i32, i32) {
    %c0_i32 = arith.constant 0 : i32
    %c0_i32_0 = arith.constant 0 : i32
    %c0_i32_1 = arith.constant 0 : i32
    %c0_i32_2 = arith.constant 0 : i32
    return %c0_i32, %c0_i32_0, %c0_i32_1 : i32, i32, i32
  }
  func.func @transform_6(%arg0: i32, %arg1: i32, %arg2: i32) -> (i32, i32, i32) {
    %c0_i32 = arith.constant 0 : i32
    %c0_i32_0 = arith.constant 0 : i32
    %c0_i32_1 = arith.constant 0 : i32
    %c0_i32_2 = arith.constant 0 : i32
    return %c0_i32, %c0_i32_0, %c0_i32_1 : i32, i32, i32
  }
  func.func @transform_7(%arg0: i32, %arg1: i32, %arg2: i32) -> (i32, i32, i32) {
    %c0_i32 = arith.constant 0 : i32
    %c0_i32_0 = arith.constant 0 : i32
    %c0_i32_1 = arith.constant 0 : i32
    %c0_i32_2 = arith.constant 0 : i32
    return %c0_i32, %c0_i32_0, %c0_i32_1 : i32, i32, i32
  }
  func.func @transform_8(%arg0: i32, %arg1: i32, %arg2: i32) -> (i32, i32, i32) {
    %c0_i32 = arith.constant 0 : i32
    %c0_i32_0 = arith.constant 0 : i32
    %c0_i32_1 = arith.constant 0 : i32
    %c0_i32_2 = arith.constant 0 : i32
    return %c0_i32, %c0_i32_0, %c0_i32_1 : i32, i32, i32
  }
  func.func @transform_9(%arg0: i32, %arg1: i32, %arg2: i32) -> (i32, i32, i32) {
    %c0_i32 = arith.constant 0 : i32
    %c0_i32_0 = arith.constant 0 : i32
    %c0_i32_1 = arith.constant 0 : i32
    %c0_i32_2 = arith.constant 0 : i32
    return %c0_i32, %c0_i32_0, %c0_i32_1 : i32, i32, i32
  }
  func.func @transform_10(%arg0: i32, %arg1: i32, %arg2: i32) -> (i32, i32, i32) {
    %c0_i32 = arith.constant 0 : i32
    %c0_i32_0 = arith.constant 0 : i32
    %c0_i32_1 = arith.constant 0 : i32
    %c0_i32_2 = arith.constant 0 : i32
    return %c0_i32, %c0_i32_0, %c0_i32_1 : i32, i32, i32
  }
  func.func @transform_11(%arg0: i32, %arg1: i32, %arg2: i32) -> (i32, i32, i32) {
    %c0_i32 = arith.constant 0 : i32
    %c0_i32_0 = arith.constant 0 : i32
    %c0_i32_1 = arith.constant 0 : i32
    %c0_i32_2 = arith.constant 0 : i32
    return %c0_i32, %c0_i32_0, %c0_i32_1 : i32, i32, i32
  }
  func.func @transform_12(%arg0: i32, %arg1: i32, %arg2: i32) -> (i32, i32, i32) {
    %c0_i32 = arith.constant 0 : i32
    %c0_i32_0 = arith.constant 0 : i32
    %c0_i32_1 = arith.constant 0 : i32
    %c0_i32_2 = arith.constant 0 : i32
    return %c0_i32, %c0_i32_0, %c0_i32_1 : i32, i32, i32
  }
  func.func @transform_13(%arg0: i32, %arg1: i32, %arg2: i32) -> (i32, i32, i32) {
    %c0_i32 = arith.constant 0 : i32
    %c0_i32_0 = arith.constant 0 : i32
    %c0_i32_1 = arith.constant 0 : i32
    %c0_i32_2 = arith.constant 0 : i32
    return %c0_i32, %c0_i32_0, %c0_i32_1 : i32, i32, i32
  }
  func.func @transform_14(%arg0: i32, %arg1: i32, %arg2: i32) -> (i32, i32, i32) {
    %c0_i32 = arith.constant 0 : i32
    %c0_i32_0 = arith.constant 0 : i32
    %c0_i32_1 = arith.constant 0 : i32
    %c0_i32_2 = arith.constant 0 : i32
    return %c0_i32, %c0_i32_0, %c0_i32_1 : i32, i32, i32
  }
  func.func @transform_15(%arg0: i32, %arg1: i32, %arg2: i32) -> (i32, i32, i32) {
    %c0_i32 = arith.constant 0 : i32
    %c0_i32_0 = arith.constant 0 : i32
    %c0_i32_1 = arith.constant 0 : i32
    %c0_i32_2 = arith.constant 0 : i32
    return %c0_i32, %c0_i32_0, %c0_i32_1 : i32, i32, i32
  }
  func.func @transform_16(%arg0: i32, %arg1: i32, %arg2: i32) -> (i32, i32, i32) {
    %c0_i32 = arith.constant 0 : i32
    %c0_i32_0 = arith.constant 0 : i32
    %c0_i32_1 = arith.constant 0 : i32
    %c0_i32_2 = arith.constant 0 : i32
    return %c0_i32, %c0_i32_0, %c0_i32_1 : i32, i32, i32
  }
  func.func @transform_17(%arg0: i32, %arg1: i32, %arg2: i32) -> (i32, i32, i32) {
    %c0_i32 = arith.constant 0 : i32
    %c0_i32_0 = arith.constant 0 : i32
    %c0_i32_1 = arith.constant 0 : i32
    %c0_i32_2 = arith.constant 0 : i32
    return %c0_i32, %c0_i32_0, %c0_i32_1 : i32, i32, i32
  }
  func.func @transform_18(%arg0: i32, %arg1: i32, %arg2: i32) -> (i32, i32) {
    %c1_i32 = arith.constant 1 : i32
    %0 = arith.muli %arg0, %c1_i32 : i32
    %1 = arith.addi %0, %arg2 : i32
    %c0_i32 = arith.constant 0 : i32
    %c0_i32_0 = arith.constant 0 : i32
    return %c0_i32, %1 : i32, i32
  }
  func.func @transform_19(%arg0: i32, %arg1: i32, %arg2: i32) -> (i32, i32) {
    %c1_i32 = arith.constant 1 : i32
    %0 = arith.muli %arg0, %c1_i32 : i32
    %1 = arith.addi %0, %arg2 : i32
    %c0_i32 = arith.constant 0 : i32
    %c0_i32_0 = arith.constant 0 : i32
    return %c0_i32, %1 : i32, i32
  }
  func.func @transform_20(%arg0: i32, %arg1: i32, %arg2: i32) -> (i32, i32, i32) {
    %c0_i32 = arith.constant 0 : i32
    %c0_i32_0 = arith.constant 0 : i32
    return %arg0, %arg1, %c0_i32 : i32, i32, i32
  }
  func.func @transform_21(%arg0: i32, %arg1: i32, %arg2: i32) -> (i32, i32, i32) {
    %c0_i32 = arith.constant 0 : i32
    %c0_i32_0 = arith.constant 0 : i32
    return %arg0, %arg1, %c0_i32 : i32, i32, i32
  }
}

</mosaic_0001>

<bundles_post_ra>
// kernel: moco_pair_forward.1
= control target key start
LH: loop header
LB: loop body
LE: loop exit
PB: predicated region body
PF: predicated region fallthrough
CT: control target
= control target key end

     0   :  { %s3146_s0 = inlined_call_operand.vmem [shape: f32[16,32], index: 0, kind: input, shape index: {}]   ;;  %s3147_s1 = inlined_call_operand.vmem [shape: f32[16,24], index: 1, kind: input, shape index: {}]   ;;  %s3148_s2 = inlined_call_operand.vmem [shape: f32[2,32,32], index: 2, kind: input, shape index: {}]   ;;  %s3149_s3 = inlined_call_operand.vmem [shape: f32[2,1,32], index: 3, kind: input, shape index: {}]   ;;  %s3150_s4 = inlined_call_operand.vmem [shape: f32[2,1,32], index: 4, kind: input, shape index: {}]   ;;  %s3151_s5 = inlined_call_operand.vmem [shape: f32[2,1,32], index: 5, kind: input, shape index: {}]   ;;  %s3152_s6 = inlined_call_operand.vmem [shape: f32[2,32,16], index: 6, kind: input, shape index: {}]   ;;  %s3153_s7 = inlined_call_operand.vmem [shape: f32[2,1,16], index: 7, kind: input, shape index: {}]   ;;  %s3154_s8 = inlined_call_operand.vmem [shape: f32[2,16,16], index: 8, kind: input, shape index: {}]   ;;  %s3155_s9 = inlined_call_operand.vmem [shape: f32[2,1,16], index: 9, kind: input, shape index: {}]   ;;  %s3156_s10 = inlined_call_operand.vmem [shape: f32[2,24,32], index: 10, kind: input, shape index: {}]   ;;  %s3157_s11 = inlined_call_operand.vmem [shape: f32[2,1,32], index: 11, kind: input, shape index: {}]   ;;  %s3158_s12 = inlined_call_operand.vmem [shape: f32[2,1,32], index: 12, kind: input, shape index: {}]   ;;  %s3159_s13 = inlined_call_operand.vmem [shape: f32[2,1,32], index: 13, kind: input, shape index: {}]   ;;  %s3160_s14 = inlined_call_operand.vmem [shape: f32[2,32,16], index: 14, kind: input, shape index: {}]   ;;  %s3161_s15 = inlined_call_operand.vmem [shape: f32[2,1,16], index: 15, kind: input, shape index: {}]   ;;  %s3162_s16 = inlined_call_operand.vmem [shape: f32[2,16,16], index: 16, kind: input, shape index: {}]   ;;  %s3163_s17 = inlined_call_operand.vmem [shape: f32[2,1,16], index: 17, kind: input, shape index: {}]   ;;  %s3164_s18 = inlined_call_operand.vmem [shape: bf16[16,512], index: 18, kind: input, shape index: {}]   ;;  %s3165_s19 = inlined_call_operand.vmem [shape: bf16[16,512], index: 19, kind: input, shape index: {}]   ;;  %s3166_s20 = inlined_call_operand.vmem [shape: f32[8,16,16], index: 20, kind: output, shape index: {0}]   ;;  %s3167_s21 = inlined_call_operand.vmem [shape: f32[2,16,2], index: 21, kind: output, shape index: {1}]  }
   0x1   :  { %3179 = sst [smem:[#allocation9_spill]] %s3146_s0 }
   0x2   :  { %3180 = sst [smem:[#allocation10_spill]] %s3147_s1 }
   0x3   :  { %3181 = sst [smem:[#allocation11_spill]] %s3148_s2 }
   0x4   :  { %3182 = sst [smem:[#allocation12_spill]] %s3149_s3 }
   0x5   :  { %3183 = sst [smem:[#allocation13_spill]] %s3150_s4 }
   0x6   :  { %3184 = sst [smem:[#allocation14_spill]] %s3151_s5 }
   0x7   :  { %3185 = sst [smem:[#allocation15_spill]] %s3156_s10 }
   0x8   :  { %3186 = sst [smem:[#allocation16_spill]] %s3157_s11 }
   0x9   :  { %3187 = sst [smem:[#allocation17_spill]] %s3166_s20 }
   0xa   :  { %3188 = sst [smem:[#allocation18_spill]] %s3167_s21 }
   0xb   :  { %s2556_s2 = smov 0   ;;  %s2558_s25 = smov 0  }
   0xc   :  { %s2560_s26 = smov 0   ;;  %s2562_s27 = smov 0  }
   0xd   :  { %s2564_s3 = smov 0  }
   0xe LB: > { %3189 = sst [smem:[#allocation6_spill]] %s2433_s26  ;;  %s51_s28 = sadd.s32 1, %s2437_s27  ;;  %s2441_s3 = sphi %s2564_s3, %s32_s3   ;;  %s2437_s27 = sphi %s2562_s27, %s3216_s27   ;;  %s2433_s26 = sphi %s2560_s26, %s3215_s26   ;;  %s2429_s25 = sphi %s2558_s25, %s3214_s25   ;;  %s2425_s2 = sphi %s2556_s2, %s3213_s2  }
   0xf   : > { %p53_p0 = scmp.ge.s32.totalorder %s51_s28, 2  ;;  %p455_p1 = scmp.ne.s32.totalorder %s2429_s25, %s2425_s2 }
  0x10   : > { %p456_p2 = scmp.eq.s32.totalorder %s2441_s3, 0  ;;  %s448_s4 = sadd.s32 1, %s2429_s25 }
  0x11   : > { %s3218_s28 = smov (%p53_p0, %s51_s28), 0  ;;  %p2140_p5 = scmp.ge.s32.totalorder %s2441_s3, 2 }
  0x12   : > { %3190 = sst [smem:[#allocation7_spill]] %s3218_s28  ;;  %p2587_p3 = por %p456_p2, %p455_p1 }
  0x13   : > { %s445_s0 = ssub.s32 %s2437_s27, %s3218_s28 }
  0x14   : > { %p446_p4 = scmp.eq.s32.totalorder %s445_s0, 0  ;;  %631 = sbr.rel (%p2140_p5) target bundleno = 37 (0x25), region = 88 }
  0x16   : > { %s2595_s30 = scalar_select %p446_p4, %s2429_s25, %s448_s4  }
  0x18   : > { %3192 = sst [smem:[#allocation8_spill]] %s2595_s30 }
  0x19   : > { %634 = sbr.rel (!%p2587_p3) target bundleno = 31 (0x1f), region = 92  ;;  %s636_s5 = sand.u32 (%p2587_p3), 1, %s2429_s25  }
  0x1a   : > { %s2248_s22 = sshll.u32 (%p2587_p3), %s2437_s27, 3  ;;  %s2141_s23 = sshll.u32 (%p2587_p3), %s636_s5, 4 }
  0x1b   : > { %s642_s21 = scalar_lea.vmem (%p2587_p3), %s3164_s18, %s2248_s22  ;;  %s638_s0 = scalar_lea.vmem (%p2587_p3), [#allocation4], %s2141_s23 }
  0x1c   : > { %v673_v0 = vld [vmem:[%s642_s21] sm:$0xff] (%p2587_p3)  ;;  %v675_v1 = vld [vmem:[%s642_s21 + $0x10] sm:$0xff] (%p2587_p3) }
  0x1d   : > { %674 = vst [vmem:[%s638_s0] sm:$0xff] (%p2587_p3), %v673_v0 }
  0x1e   : > { %676 = vst [vmem:[%s638_s0 + $0x8] sm:$0xff] %v675_v1 }
  0x1f PF: > { %682 = sbr.rel (!%p2587_p3) target bundleno = 37 (0x25), region = 130  ;;  %s684_s4 = sand.u32 (%p2587_p3), 1, %s2429_s25  }
  0x20   : > { %s2249_s28 = sshll.u32 (%p2587_p3), %s2437_s27, 3  ;;  %s2144_s30 = sshll.u32 (%p2587_p3), %s684_s4, 4 }
  0x21   : > { %s690_s26 = scalar_lea.vmem (%p2587_p3), %s3165_s19, %s2249_s28  ;;  %s686_s22 = scalar_lea.vmem (%p2587_p3), [#allocation5], %s2144_s30 }
  0x22   : > { %v721_v2 = vld [vmem:[%s690_s26] sm:$0xff] (%p2587_p3)  ;;  %v723_v3 = vld [vmem:[%s690_s26 + $0x10] sm:$0xff] (%p2587_p3) }
  0x23   : > { %722 = vst [vmem:[%s686_s22] sm:$0xff] (%p2587_p3), %v721_v2 }
  0x24   : > { %724 = vst [vmem:[%s686_s22 + $0x8] sm:$0xff] %v723_v3 }
  0x25 PF: > { %p2147_p6 = scmp.ge.s32.totalorder %s2441_s3, 1  ;;  %p729_p7 = scmp.lt.s32.totalorder %s2441_s3, 3 }
  0x27   : > { %p730_p8 = pnand %p2147_p6, %p729_p7 }
  0x28   : > { %s3193_s23 = sld [smem:[#allocation11_spill]] (!%p730_p8)  ;;  %s2445_s24 = smov (!%p730_p8), 1  }
  0x29   : > { %733 = sbr.rel (%p730_p8) target bundleno = 1785 (0x6f9), region = 168  ;;  %s3194_s10 = sld [smem:[#allocation15_spill]] (!%p730_p8) }
  0x2a   : > { %s3195_s26 = sld [smem:[#allocation9_spill]] (!%p730_p8) }
  0x2b   : > { %s3197_s5 = sld [smem:[#allocation10_spill]] (!%p730_p8) }
  0x2c   : > { %s3198_s20 = sld [smem:[#allocation12_spill]] (!%p730_p8) }
  0x2d   : > { %s3199_s11 = sld [smem:[#allocation16_spill]] (!%p730_p8) }
  0x2e   : > { %v879_v4 = vld [vmem:[%s3193_s23 + $0x10] sm:$0xff]  ;;  %v880_v5 = vld [vmem:[%s3193_s23 + $0x18] sm:$0xff]  ;;  %vm1116_vm0 = vcmask 1043456   ;;  %v877_v9 = vld [vmem:[%s3193_s23] sm:$0xff]  ;;  %vm895_vm1 = vcmask 261120   ;;  %vm1112_vm2 = vcmask 195584  }
  0x2f   : > { %v1097_v6 = vld [vmem:[%s3194_s10 + $0x10] sm:$0xff]  ;;  %v891_v7 = vpack.c.bf16 %v880_v5, %v879_v4  ;;  %v878_v10 = vld [vmem:[%s3193_s23 + $0x8] sm:$0xff]  ;;  %v1095_v11 = vld [vmem:[%s3194_s10] sm:$0xff]  ;;  %v2443_v36 = vmov 32.0   ;;  %s3200_s0 = sld [smem:[#allocation13_spill]] }
  0x30   : > { %v1108_v8 = vpack.c.bf16 %v1097_v6, %v1097_v6  ;;  %v1096_v12 = vld [vmem:[%s3194_s10 + $0x8] sm:$0xff]  ;;  %v890_v14 = vpack.c.bf16 %v878_v10, %v877_v9  ;;  %s3196_s28 = smov %s3195_s26  ;;  %v873_v15 = vld [vmem:[%s3195_s26] sm:$0xff]  ;;  %2321 = vrcp.f32 %v2443_v36  ;;  %v886_v4 = vld [vmem:[%s3152_s6 + $0x10] sm:$0xff]  ;;  %s3201_s21 = sld [smem:[#allocation14_spill]] }
  0x31   : > { %905 = vmatpush.bf16.msra.mxu0 %v891_v7  ;;  %v874_v16 = vld [vmem:[%s3196_s28 + $0x8] sm:$0xff]  ;;  %v1107_v17 = vpack.c.bf16 %v1096_v12, %v1095_v11  ;;  %v875_v18 = vld [vmem:[%s3197_s5] sm:$0xff]  ;;  %v887_v5 = vld [vmem:[%s3152_s6 + $0x18] sm:$0xff]  ;;  %s736_s26 = sand.u32 1, %s2425_s2   ;;  %s3202_s29 = sld [smem:[#allocation6_spill]] }
  0x32   : > { %v1118_v13 = vsel %vm1116_vm0, %v1108_v8, 0  ;;  %v876_v19 = vld [vmem:[%s3197_s5 + $0x8] sm:$0xff]  ;;  %v2648_v20 = vpack.c.bf16 %v874_v16, %v873_v15  ;;  %v2301_v22 = vld [vmem:[%s3198_s20] ss:$0 sm:$0xff]  ;;  %v1016_v7 = vpack.c.bf16 %v887_v5, %v886_v4  ;;  %s2870_s30 = sshll.u32 %s736_s26, 4  ;;  %s3205_s4 = sld [smem:[#allocation17_spill]] }
  0x33   : > { %1126 = vmatpush.bf16.msra.mxu3 %v1118_v13  ;;  %v2650_v21 = vpack.c.bf16 %v876_v19, %v875_v18  ;;  %v2302_v26 = vld [vmem:[%s3199_s11] ss:$0 sm:$0xff]  ;;  %v885_v8 = vld [vmem:[%s3152_s6 + $0x8] sm:$0xff]  ;;  %s2886_s22 = scalar_lea.vmem [#allocation4], %s2870_s30 }
  0x34   : > { %v884_v6 = vld [vmem:[%s3152_s6] sm:$0xff]  ;;  %1029 = vmatpush.bf16.msra.mxu1 %v1016_v7 }
  0x35   : > { %906 = vmatpush.bf16.msra.mxu0 %v890_v14  ;;  %v1015_v12 = vpack.c.bf16 %v885_v8, %v884_v6  ;;  %v2304_v19 = vld [vmem:[%s3200_s0] ss:$0 sm:$0xff] }
  0x36   : > { %v2322_v37 = vpop.eup %2321 }
  0x37   : > { %1127 = vmatpush.bf16.msra.mxu3 %v1107_v17  ;;  %v920_v38 = vmul.f32 32.0, %v2322_v37  ;;  %vm924_vm3 = vweird.f32 %v2322_v37  ;;  %s3177_s2 = sshll.u32 %s3202_s29, 2  ;;  %s3204_s1 = sshll.u32 %s3202_s29, 2 }
  0x38   : > { %2155 = vmatmul.msk.bf16.vlgmr.msra.gmra.mxu0 %vm895_vm1, %v2648_v20  ;;  %1030 = vmatpush.bf16.msra.mxu1 %v1015_v12  ;;  %p2907_p9 = scmp.lt.s32.totalorder %s3177_s2, 7  ;;  %p859_p10 = scmp.lt.s32.totalorder %s3202_s29, 1 }
  0x39   : > { %v921_v39 = vsub.f32 1.0, %v920_v38 }
  0x3a   : > { %2160 = vmatmul.msk.bf16.vlgmr.msra.gmra.mxu3 %vm1112_vm2, %v2650_v21  ;;  %s3220_s1 = smov (!%p2907_p9, %s3204_s1), 7  ;;  %s3222_s29 = smov (!%p859_p10, %s3202_s29), 1 }
  0x3b   : > { %v922_v40 = vmul.f32 %v2322_v37, %v921_v39  ;;  %s2250_s5 = sshll.u32 %s3220_s1, 4 }
  0x3c   : > { %s2974_s1 = scalar_lea.vmem %s3205_s4, %s2250_s5  ;;  %s2251_s4 = sshll.u32 %s3222_s29, 4 }
  0x3d   : > { %v923_v41 = vadd.f32 %v2322_v37, %v922_v40 }
  0x3f   : > { %v2666_v42 = vsel %vm924_vm3, %v2322_v37, %v923_v41 }
  0xb5   : > { %v908_v23 = vpop.f32.mrf.mxu0 }
  0xb6   : > { %v909_v24 = vadd.f32 %v2301_v22, %v908_v23 }
  0xb8   : > { %v913_v25 = vsel %vm895_vm1, %v909_v24, 0.0 }
  0xb9   : > { %914 = vadd.xlane.f32.xlu0 %v913_v25  ;;  %v2305_v25 = vld [vmem:[%s3201_s21] ss:$0 sm:$0xff] }
  0xbd   : > { %v1129_v27 = vpop.f32.mrf.mxu3  ;;  %v910_v29 = vpop.f32.mrf.mxu0 }
  0xbe   : > { %v1130_v28 = vadd.f32 %v2302_v26, %v1129_v27  ;;  %v911_v30 = vadd.f32 %v2301_v22, %v910_v29 }
  0xc0   : > { %v1134_v31 = vsel %vm895_vm1, %v1130_v28, 0.0  ;;  %v916_v32 = vsel %vm895_vm1, %v911_v30, 0.0 }
  0xc1   : > { %1135 = vadd.xlane.f32.xlu2 %v1134_v31  ;;  %917 = vadd.xlane.f32.xlu0 %v916_v32 }
  0xc5   : > { %v1131_v33 = vpop.f32.mrf.mxu3 }
  0xc6   : > { %v1132_v34 = vadd.f32 %v2302_v26, %v1131_v33 }
  0xc8   : > { %v1137_v35 = vsel %vm895_vm1, %v1132_v34, 0.0 }
  0xc9   : > { %1138 = vadd.xlane.f32.xlu2 %v1137_v35 }
 0x12c   : > { %v915_v43 = vpop.xlane.xlu0 %914 }
 0x12d   : > { %v926_v44 = vmul.f32 %v2666_v42, %v915_v43 }
 0x12f   : > { %v928_v45 = vsub.f32 %v909_v24, %v926_v44 }
 0x131   : > { %v930_v46 = vmul.f32 %v928_v45, %v928_v45 }
 0x133   : > { %v932_v48 = vsel %vm895_vm1, %v930_v46, 0.0 }
 0x134   : > { %v1136_v47 = vpop.xlane.xlu2 %1135  ;;  %933 = vadd.xlane.f32.xlu1 %v932_v48  ;;  %v918_v50 = vpop.xlane.xlu0 %917 }
 0x135   : > { %v1140_v49 = vmul.f32 %v1136_v47, %v2666_v42  ;;  %v927_v51 = vmul.f32 %v2666_v42, %v918_v50 }
 0x137   : > { %v2672_v52 = vsub.f32 %v1130_v28, %v1140_v49  ;;  %v929_v53 = vsub.f32 %v911_v30, %v927_v51 }
 0x139   : > { %v1144_v54 = vmul.f32 %v2672_v52, %v2672_v52  ;;  %v931_v55 = vmul.f32 %v929_v53, %v929_v53 }
 0x13b   : > { %v1146_v56 = vsel %vm895_vm1, %v1144_v54, 0.0  ;;  %v935_v58 = vsel %vm895_vm1, %v931_v55, 0.0 }
 0x13c   : > { %1147 = vadd.xlane.f32.xlu0 %v1146_v56  ;;  %v1139_v57 = vpop.xlane.xlu2 %1138  ;;  %936 = vadd.xlane.f32.xlu1 %v935_v58 }
 0x13d   : > { %v1141_v59 = vmul.f32 %v1139_v57, %v2666_v42 }
 0x13f   : > { %v2679_v60 = vsub.f32 %v1132_v34, %v1141_v59 }
 0x141   : > { %v1145_v61 = vmul.f32 %v2679_v60, %v2679_v60 }
 0x143   : > { %v1149_v62 = vsel %vm895_vm1, %v1145_v61, 0.0 }
 0x144   : > { %1150 = vadd.xlane.f32.xlu1 %v1149_v62 }
 0x1a7   : > { %v934_v63 = vpop.xlane.xlu1 %933 }
 0x1a8   : > { %v938_v0 = vmul.f32 %v934_v63, %v2666_v42 }
 0x1aa   : > { %v940_v1 = vadd.f32 1e-05, %v938_v0 }
 0x1ac   : > { %2323 = vrsqrt.f32 %v940_v1  ;;  %vm948_vm5 = vweird.f32 %v940_v1 }
 0x1af   : > { %v937_v2 = vpop.xlane.xlu1 %936  ;;  %v1148_v4 = vpop.xlane.xlu0 %1147 }
 0x1b0   : > { %v939_v3 = vmul.f32 %v937_v2, %v2666_v42  ;;  %v1152_v6 = vmul.f32 %v1148_v4, %v2666_v42 }
 0x1b2   : > { %v2324_v9 = vpop.eup %2323  ;;  %v941_v10 = vadd.f32 1e-05, %v939_v3  ;;  %v1154_v8 = vadd.f32 1e-05, %v1152_v6 }
 0x1b3   : > { %v943_v11 = vmul.f32 %v2324_v9, %v940_v1  ;;  %vm949_vm4 = vweird.f32 %v2324_v9 }
 0x1b4   : > { %2325 = vrsqrt.f32 %v941_v10  ;;  %vm950_vm6 = vmor %vm948_vm5, %vm949_vm4  ;;  %vm958_vm8 = vweird.f32 %v941_v10 }
 0x1b5   : > { %v944_v13 = vmul.f32 %v2324_v9, %v943_v11 }
 0x1b7   : > { %v945_v14 = vmul.f32 0.5, %v944_v13  ;;  %v1151_v3 = vpop.xlane.xlu1 %1150 }
 0x1b8   : > { %v1153_v5 = vmul.f32 %v1151_v3, %v2666_v42 }
 0x1b9   : > { %v946_v15 = vsub.f32 1.5, %v945_v14 }
 0x1ba   : > { %v2326_v16 = vpop.eup %2325  ;;  %v1155_v7 = vadd.f32 1e-05, %v1153_v5 }
 0x1bb   : > { %v947_v17 = vmul.f32 %v2324_v9, %v946_v15  ;;  %v953_v18 = vmul.f32 %v2326_v16, %v941_v10  ;;  %vm959_vm7 = vweird.f32 %v2326_v16 }
 0x1bc   : > { %vm960_vm9 = vmor %vm958_vm8, %vm959_vm7  ;;  %vm1172_vm5 = vweird.f32 %v1155_v7  ;;  %vm1162_vm7 = vweird.f32 %v1154_v8 }
 0x1bd   : > { %v951_v22 = vsel %vm950_vm6, %v2324_v9, %v947_v17  ;;  %v954_v23 = vmul.f32 %v2326_v16, %v953_v18 }
 0x1be   : > { %v962_v24 = vmul.f32 %v951_v22, %v928_v45 }
 0x1bf   : > { %v955_v26 = vmul.f32 0.5, %v954_v23 }
 0x1c0   : > { %v967_v27 = vmul.f32 %v2304_v19, %v962_v24 }
 0x1c1   : > { %v956_v28 = vsub.f32 1.5, %v955_v26  ;;  %v2303_v26 = vld [vmem:[%s3158_s12] ss:$0 sm:$0xff] }
 0x1c2   : > { %v972_v29 = vadd.f32 %v2305_v25, %v967_v27 }
 0x1c3   : > { %v957_v30 = vmul.f32 %v2326_v16, %v956_v28 }
 0x1c4   : > { %v2156_v31 = vmul.f32 -1.442695, %v972_v29 }
 0x1c5   : > { %v961_v32 = vsel %vm960_vm9, %v2326_v16, %v957_v30  ;;  %v2307_v30 = vld [vmem:[%s3159_s13] ss:$0 sm:$0xff] }
 0x1c6   : > { %v963_v33 = vmul.f32 %v961_v32, %v929_v53  ;;  %2327 = vpow2.f32 %v2156_v31 }
 0x1c8   : > { %v968_v34 = vmul.f32 %v2304_v19, %v963_v33  ;;  %v1038_v33 = vld [vmem:[%s3154_s8 + $0x8] sm:$0xff] }
 0x1ca   : > { %v973_v35 = vadd.f32 %v2305_v25, %v968_v34 }
 0x1cc   : > { %v2328_v36 = vpop.eup %2327  ;;  %v2157_v37 = vmul.f32 -1.442695, %v973_v35 }
 0x1cd   : > { %v980_v38 = vadd.f32 1.0, %v2328_v36  ;;  %v1103_v36 = vld [vmem:[%s3160_s14 + $0x10] sm:$0xff] }
 0x1ce   : > { %2329 = vpow2.f32 %v2157_v37  ;;  %v1104_v37 = vld [vmem:[%s3160_s14 + $0x18] sm:$0xff] }
 0x1cf   : > { %2331 = vrcp.f32 %v980_v38  ;;  %v993_v49 = vand.u32 2147483648, %v980_v38  ;;  %vm987_vm11 = vweird.f32 %v980_v38  ;;  %v991_v50 = vand.u32 2147483647, %v980_v38 }
 0x1d1   : > { %v994_v57 = vor.u32 1.1754944e-38, %v993_v49  ;;  %vm992_vm14 = vcmp.eq.f32.partialorder %v991_v50, 8.507059e+37  ;;  %v2167_v49 = vld [vmem:[%s3193_s23 + $0x20] sm:$0xff] }
 0x1d4   : > { %v2330_v39 = vpop.eup %2329 }
 0x1d5   : > { %v2332_v40 = vpop.eup %2331  ;;  %v981_v41 = vadd.f32 1.0, %v2330_v39  ;;  %v1230_v39 = vpack.c.bf16 %v1104_v37, %v1103_v36 }
 0x1d6   : > { %v983_v43 = vmul.f32 %v2332_v40, %v980_v38  ;;  %vm988_vm10 = vweird.f32 %v2332_v40  ;;  %v1101_v38 = vld [vmem:[%s3160_s14] sm:$0xff] }
 0x1d7   : > { %2333 = vrcp.f32 %v981_v41  ;;  %vm989_vm12 = vmor %vm987_vm11, %vm988_vm10  ;;  %v1008_v53 = vand.u32 2147483648, %v981_v41  ;;  %v1006_v56 = vand.u32 2147483647, %v981_v41  ;;  %vm1002_vm15 = vweird.f32 %v981_v41 }
 0x1d8   : > { %v984_v44 = vsub.f32 1.0, %v983_v43  ;;  %2335 = vrsqrt.f32 %v1155_v7  ;;  %vm1045_vm11 = vcmask 130048  }
 0x1d9   : > { %v1009_v61 = vor.u32 1.1754944e-38, %v1008_v53  ;;  %vm1007_vm4 = vcmp.eq.f32.partialorder %v1006_v56, 8.507059e+37  ;;  %2337 = vrsqrt.f32 %v1154_v8  ;;  %v2168_v53 = vld [vmem:[%s3193_s23 + $0x28] sm:$0xff] }
 0x1da   : > { %v985_v45 = vmul.f32 %v2332_v40, %v984_v44  ;;  %v1341_v56 = vpack.c.bf16 %v2168_v53, %v2167_v49 }
 0x1dc   : > { %v986_v47 = vadd.f32 %v2332_v40, %v985_v45 }
 0x1dd   : > { %v2334_v46 = vpop.eup %2333 }
 0x1de   : > { %v998_v48 = vmul.f32 %v2334_v46, %v981_v41  ;;  %v990_v54 = vsel %vm989_vm12, %v2332_v40, %v986_v47  ;;  %vm1003_vm13 = vweird.f32 %v2334_v46  ;;  %v2336_v9 = vpop.eup %2335  ;;  %v1102_v40 = vld [vmem:[%s3160_s14 + $0x8] sm:$0xff]  ;;  %v2169_v47 = vld [vmem:[%s3193_s23 + $0x30] sm:$0xff] }
 0x1df   : > { %v995_v59 = vsel %vm992_vm14, %v994_v57, %v990_v54  ;;  %vm1004_vm3 = vmor %vm1002_vm15, %vm1003_vm13  ;;  %v2338_v10 = vpop.eup %2337  ;;  %v1167_v11 = vmul.f32 %v2336_v9, %v1155_v7  ;;  %vm1173_vm6 = vweird.f32 %v2336_v9  ;;  %v1229_v41 = vpack.c.bf16 %v1102_v40, %v1101_v38  ;;  %v2311_v40 = vld [vmem:[%s3163_s17] ss:$0 sm:$0xff] }
 0x1e0   : > { %v999_v51 = vsub.f32 1.0, %v998_v48  ;;  %v1012_v0 = vmul.f32 %v995_v59, %v972_v29  ;;  %v1157_v12 = vmul.f32 %v2338_v10, %v1154_v8  ;;  %vm1163_vm8 = vweird.f32 %v2338_v10  ;;  %vm1174_vm9 = vmor %vm1172_vm5, %vm1173_vm6  ;;  %v2170_v48 = vld [vmem:[%s3193_s23 + $0x38] sm:$0xff]  ;;  %v2306_v59 = vld [vmem:[%s3153_s7] ss:$0 sm:$0xff] }
 0x1e1   : > { %v1168_v13 = vmul.f32 %v2336_v9, %v1167_v11  ;;  %vm1164_vm10 = vmor %vm1162_vm7, %vm1163_vm8  ;;  %vm1315_vm8 = vcmask 125952  }
 0x1e2   : > { %v1000_v55 = vmul.f32 %v2334_v46, %v999_v51  ;;  %v1158_v14 = vmul.f32 %v2338_v10, %v1157_v12  ;;  %v1342_v51 = vpack.c.bf16 %v2170_v48, %v2169_v47 }
 0x1e3   : > { %v1169_v15 = vmul.f32 0.5, %v1168_v13 }
 0x1e4   : > { %v1001_v58 = vadd.f32 %v2334_v46, %v1000_v55  ;;  %v1159_v16 = vmul.f32 0.5, %v1158_v14  ;;  %1352 = vmatpush.bf16.msrb.mxu1 %v1342_v51 }
 0x1e5   : > { %v1170_v17 = vsub.f32 1.5, %v1169_v15 }
 0x1e6   : > { %v1005_v62 = vsel %vm1004_vm3, %v2334_v46, %v1001_v58  ;;  %v1160_v18 = vsub.f32 1.5, %v1159_v16 }
 0x1e7   : > { %v1010_v63 = vsel %vm1007_vm4, %v1009_v61, %v1005_v62  ;;  %v1171_v19 = vmul.f32 %v2336_v9, %v1170_v17 }
 0x1e8   : > { %v1013_v1 = vmul.f32 %v1010_v63, %v973_v35  ;;  %v1161_v22 = vmul.f32 %v2338_v10, %v1160_v18  ;;  %1353 = vmatpush.bf16.msrb.mxu1 %v1341_v56 }
 0x1e9   : > { %v1175_v23 = vsel %vm1174_vm9, %v2336_v9, %v1171_v19  ;;  %v2189_v19 = vld [vmem:[%s3194_s10 + $0x28] sm:$0xff] }
 0x1ea   : > { %v1014_v2 = vpack.c.bf16 %v1013_v1, %v1012_v0  ;;  %v1165_v24 = vsel %vm1164_vm10, %v2338_v10, %v1161_v22  ;;  %v1177_v25 = vmul.f32 %v1175_v23, %v2679_v60  ;;  %v1037_v60 = vld [vmem:[%s3154_s8] sm:$0xff]  ;;  %v1554_v22 = vpack.c.bf16 %v2189_v19, %v2189_v19 }
 0x1eb   : > { %v1176_v27 = vmul.f32 %v1165_v24, %v2672_v52  ;;  %v1041_v34 = vpack.c.bf16 %v1038_v33, %v1037_v60  ;;  %v1251_v23 = vld [vmem:[%s3162_s16] sm:$0xff]  ;;  %v1252_v24 = vld [vmem:[%s3162_s16 + $0x8] sm:$0xff] }
 0x1ec   : > { %2158 = vmatmul.msk.bf16.vlgmr.msra.gmra.mxu1 %vm895_vm1, %v1014_v2  ;;  %v1182_v28 = vmul.f32 %v2303_v26, %v1177_v25  ;;  %v1559_v25 = vsel %vm1116_vm0, %v1554_v22, 0 }
 0x1ed   : > { %v1181_v29 = vmul.f32 %v2303_v26, %v1176_v27  ;;  %1056 = vmatpush.bf16.msra.mxu2 %v1041_v34  ;;  %v1255_v26 = vpack.c.bf16 %v1252_v24, %v1251_v23  ;;  %v2187_v27 = vld [vmem:[%s3194_s10 + $0x18] sm:$0xff] }
 0x1ee   : > { %v2715_v31 = vadd.f32 %v2307_v30, %v1182_v28  ;;  %v2188_v28 = vld [vmem:[%s3194_s10 + $0x20] sm:$0xff] }
 0x1ef   : > { %v2717_v32 = vadd.f32 %v2307_v30, %v1181_v29  ;;  %1269 = vmatpush.bf16.msrb.mxu0 %v1255_v26  ;;  %v1553_v29 = vpack.c.bf16 %v2188_v28, %v2187_v27 }
 0x1f0   : > { %v2162_v52 = vmul.f32 -1.442695, %v2715_v31 }
 0x1f1   : > { %v2161_v35 = vmul.f32 -1.442695, %v2717_v32  ;;  %1243 = vmatpush.bf16.msrb.mxu2 %v1230_v39 }
 0x1f2   : > { %2339 = vpow2.f32 %v2162_v52 }
 0x1f3   : > { %2341 = vpow2.f32 %v2161_v35  ;;  %1567 = vmatpush.bf16.msra.mxu0 %v1559_v25  ;;  %v2309_v35 = vld [vmem:[%s3161_s15] ss:$0 sm:$0xff] }
 0x1f5   : > { %1244 = vmatpush.bf16.msrb.mxu2 %v1229_v41 }
 0x1f7   : > { %1568 = vmatpush.bf16.msra.mxu0 %v1553_v29 }
 0x1f8   : > { %v2340_v43 = vpop.eup %2339 }
 0x1f9   : > { %v2342_v44 = vpop.eup %2341  ;;  %v1195_v45 = vadd.f32 1.0, %v2340_v43 }
 0x1fa   : > { %v1194_v46 = vadd.f32 1.0, %v2342_v44 }
 0x1fb   : > { %2343 = vrcp.f32 %v1195_v45  ;;  %v1222_v6 = vand.u32 2147483648, %v1195_v45  ;;  %vm1216_vm14 = vweird.f32 %v1195_v45  ;;  %v1220_v8 = vand.u32 2147483647, %v1195_v45 }
 0x1fc   : > { %2345 = vrcp.f32 %v1194_v46  ;;  %2179 = vmatmul.msk.bf16.vlgmr.msrb.gmra.mxu1 %vm895_vm1, %v2648_v20  ;;  %v1207_v9 = vand.u32 2147483648, %v1194_v46  ;;  %vm1201_vm3 = vweird.f32 %v1194_v46  ;;  %v1205_v20 = vand.u32 2147483647, %v1194_v46 }
 0x1fd   : > { %v1223_v11 = vor.u32 1.1754944e-38, %v1222_v6  ;;  %vm1221_vm5 = vcmp.eq.f32.partialorder %v1220_v8, 8.507059e+37 }
 0x1fe   : > { %v1208_v13 = vor.u32 1.1754944e-38, %v1207_v9  ;;  %vm1206_vm6 = vcmp.eq.f32.partialorder %v1205_v20, 8.507059e+37  ;;  %v2308_v9 = vld [vmem:[%s3155_s9] ss:$0 sm:$0xff] }
 0x201   : > { %v2344_v50 = vpop.eup %2343 }
 0x202   : > { %v2346_v54 = vpop.eup %2345  ;;  %v1212_v57 = vmul.f32 %v2344_v50, %v1195_v45  ;;  %vm1217_vm12 = vweird.f32 %v2344_v50  ;;  %v2312_v45 = vld [vmem:[%s3199_s11 + $0x1] ss:$0 sm:$0xff] }
 0x203   : > { %v1197_v58 = vmul.f32 %v2346_v54, %v1194_v46  ;;  %vm1202_vm13 = vweird.f32 %v2346_v54  ;;  %vm1218_vm15 = vmor %vm1216_vm14, %vm1217_vm12 }
 0x204   : > { %v1213_v61 = vsub.f32 1.0, %v1212_v57  ;;  %vm1203_vm4 = vmor %vm1201_vm3, %vm1202_vm13 }
 0x205   : > { %v1198_v62 = vsub.f32 1.0, %v1197_v58 }
 0x206   : > { %v1214_v2 = vmul.f32 %v2344_v50, %v1213_v61 }
 0x207   : > { %v1199_v4 = vmul.f32 %v2346_v54, %v1198_v62 }
 0x208   : > { %v1215_v5 = vadd.f32 %v2344_v50, %v1214_v2 }
 0x209   : > { %v1200_v7 = vadd.f32 %v2346_v54, %v1199_v4 }
 0x20a   : > { %v1219_v10 = vsel %vm1218_vm15, %v2344_v50, %v1215_v5 }
 0x20b   : > { %v1204_v12 = vsel %vm1203_vm4, %v2346_v54, %v1200_v7  ;;  %v1224_v14 = vsel %vm1221_vm5, %v1223_v11, %v1219_v10 }
 0x20c   : > { %v1209_v15 = vsel %vm1206_vm6, %v1208_v13, %v1204_v12  ;;  %v1227_v16 = vmul.f32 %v1224_v14, %v2715_v31 }
 0x20d   : > { %v1226_v17 = vmul.f32 %v1209_v15, %v2717_v32  ;;  %v2310_v32 = vld [vmem:[%s3198_s20 + $0x1] ss:$0 sm:$0xff] }
 0x20f   : > { %v1228_v18 = vpack.c.bf16 %v1227_v16, %v1226_v17 }
 0x269   : > { %v1032_v55 = vpop.f32.mrf.mxu1 }
 0x26a   : > { %v1033_v0 = vadd.f32 %v2306_v59, %v1032_v55 }
 0x271   : > { %v1034_v63 = vpop.f32.mrf.mxu1 }
 0x272   : > { %v1035_v1 = vadd.f32 %v2306_v59, %v1034_v63 }
 0x274   : > { %v1040_v3 = vpack.c.bf16 %v1035_v1, %v1033_v0 }
 0x276   : > { %2159 = vmatmul.msk.bf16.vlgmr.msra.gmra.mxu2 %vm1045_vm11, %v1040_v3 }
 0x279   : > { %v1355_v60 = vpop.f32.mrf.mxu1 }
 0x27a   : > { %v1356_v33 = vadd.f32 %v2310_v32, %v1355_v60 }
 0x27c   : > { %v1360_v34 = vsel %vm895_vm1, %v1356_v33, 0.0 }
 0x27d   : > { %1361 = vadd.xlane.f32.xlu1 %v1360_v34 }
 0x281   : > { %v1357_v48 = vpop.f32.mrf.mxu1 }
 0x286   : > { %2163 = vmatmul.msk.bf16.vlgmr.msrb.gmra.mxu2 %vm895_vm1, %v1228_v18 }
 0x2f0   : > { %v1362_v49 = vpop.xlane.xlu1 %1361 }
 0x2f1   : > { %v1366_v51 = vmul.f32 %v1362_v49, %v2666_v42 }
 0x2f3   : > { %v2798_v55 = vsub.f32 %v1356_v33, %v1366_v51  ;;  %v2858_v51 = vld [vmem:[%s3201_s21 + $0x1] ss:$0 sm:$0xff] }
 0x2f5   : > { %v1370_v58 = vmul.f32 %v2798_v55, %v2798_v55 }
 0x2f7   : > { %v1372_v59 = vsel %vm895_vm1, %v1370_v58, 0.0 }
 0x2f9   : > { %v1058_v30 = vpop.f32.mrf.mxu2 }
 0x2fa   : > { %v2825_v13 = vadd.f32 %v2308_v9, %v1058_v30 }
 0x2fc   : > { %v1063_v17 = vmul.f32 %v2825_v13, %v2825_v13 }
 0x2fe   : > { %v1065_v22 = vsel %vm1045_vm11, %v1063_v17, 0.0 }
 0x301   : > { %v2776_v31 = vpop.f32.mrf.mxu2 }
 0x302   : > { %v2834_v19 = vadd.f32 %v2308_v9, %v2776_v31  ;;  %v2253_v9 = vld [vmem:[%s2886_s22 + $0x4] sm:$0xf] }
 0x304   : > { %v1064_v26 = vmul.f32 %v2834_v19, %v2834_v19 }
 0x306   : > { %v1068_v27 = vsel %vm1045_vm11, %v1064_v26, 0.0 }
 0x309   : > { %v1246_v52 = vpop.f32.mrf.mxu2 }
 0x30a   : > { %v1247_v37 = vadd.f32 %v2309_v35, %v1246_v52 }
 0x311   : > { %v1248_v36 = vpop.f32.mrf.mxu2 }
 0x312   : > { %v1249_v38 = vadd.f32 %v2309_v35, %v1248_v36 }
 0x314   : > { %v1254_v39 = vpack.c.bf16 %v1249_v38, %v1247_v37 }
 0x316   : > { %2164 = vmatmul.msk.bf16.vlgmr.msrb.gmra.mxu0 %vm1045_vm11, %v1254_v39 }
 0x326   : > { %2198 = vmatmul.msk.bf16.vlgmr.msra.gmra.mxu0 %vm1112_vm2, %v2650_v21  ;;  %v1358_v21 = vadd.f32 %v2310_v32, %v1357_v48 }
 0x328   : > { %v1363_v56 = vsel %vm895_vm1, %v1358_v21, 0.0 }
 0x393   : > { %v1271_v41 = vpop.f32.mrf.mxu0 }
 0x394   : > { %v2791_v43 = vadd.f32 %v2311_v40, %v1271_v41 }
 0x396   : > { %v1276_v18 = vmul.f32 %v2791_v43, %v2791_v43 }
 0x398   : > { %v1278_v23 = vsel %vm1045_vm11, %v1276_v18, 0.0  ;;  %v2314_v18 = vld [vmem:[%s3158_s12 + $0x1] ss:$0 sm:$0xff] }
 0x39b   : > { %v1273_v44 = vpop.f32.mrf.mxu0 }
 0x39c   : > { %v1274_v61 = vadd.f32 %v2311_v40, %v1273_v44 }
 0x39e   : > { %v1277_v62 = vmul.f32 %v1274_v61, %v1274_v61 }
 0x3a0   : > { %v1281_v63 = vsel %vm1045_vm11, %v1277_v62, 0.0 }
 0x3a3   : > { %v1570_v46 = vpop.f32.mrf.mxu0 }
 0x3a4   : > { %v1571_v47 = vadd.f32 %v2312_v45, %v1570_v46  ;;  %v2850_v46 = vld [vmem:[%s3200_s0 + $0x1] ss:$0 sm:$0xff]  ;;  %s2992_s0 = scalar_lea.vmem [#allocation5], %s2870_s30 }
 0x3a6   : > { %v1575_v50 = vsel %vm895_vm1, %v1571_v47, 0.0 }
 0x3a7   : > { %1576 = vadd.xlane.f32.xlu2 %v1575_v50 }
 0x3ab   : > { %v1572_v53 = vpop.f32.mrf.mxu0 }
 0x3ac   : > { %v1573_v54 = vadd.f32 %v2312_v45, %v1572_v53 }
 0x3ae   : > { %v1578_v57 = vsel %vm895_vm1, %v1573_v54, 0.0 }
 0x3af   : > { %1579 = vadd.xlane.f32.xlu0 %v1578_v57  ;;  %1364 = vadd.xlane.f32.xlu2 %v1363_v56 }
 0x3b7   : > { %1373 = vadd.xlane.f32.xlu2 %v1372_v59 }
 0x3bf   : > { %1282 = vadd.xlane.f32.xlu2 %v1281_v63 }
 0x41a   : > { %v1577_v0 = vpop.xlane.xlu2 %1576 }
 0x41b   : > { %v1581_v1 = vmul.f32 %v1577_v0, %v2666_v42 }
 0x41d   : > { %v2807_v2 = vsub.f32 %v1571_v47, %v1581_v1 }
 0x41f   : > { %v1585_v3 = vmul.f32 %v2807_v2, %v2807_v2 }
 0x421   : > { %v1587_v4 = vsel %vm895_vm1, %v1585_v3, 0.0 }
 0x422   : > { %v1580_v5 = vpop.xlane.xlu0 %1579  ;;  %1588 = vadd.xlane.f32.xlu0 %v1587_v4  ;;  %v1365_v6 = vpop.xlane.xlu2 %1364 }
 0x423   : > { %v1582_v7 = vmul.f32 %v1580_v5, %v2666_v42  ;;  %v1367_v8 = vmul.f32 %v1365_v6, %v2666_v42 }
 0x425   : > { %v2817_v20 = vsub.f32 %v1573_v54, %v1582_v7  ;;  %v2819_v10 = vsub.f32 %v1358_v21, %v1367_v8  ;;  %v2195_v7 = vld [vmem:[%s3160_s14 + $0x30] sm:$0xff]  ;;  %v2196_v8 = vld [vmem:[%s3160_s14 + $0x38] sm:$0xff] }
 0x427   : > { %v1586_v11 = vmul.f32 %v2817_v20, %v2817_v20  ;;  %v1371_v12 = vmul.f32 %v2819_v10, %v2819_v10 }
 0x429   : > { %v1590_v14 = vsel %vm895_vm1, %v1586_v11, 0.0  ;;  %v1375_v15 = vsel %vm895_vm1, %v1371_v12, 0.0  ;;  %v1671_v12 = vpack.c.bf16 %v2196_v8, %v2195_v7 }
 0x42a   : > { %1591 = vadd.xlane.f32.xlu1 %v1590_v14  ;;  %1376 = vadd.xlane.f32.xlu0 %v1375_v15  ;;  %v1374_v16 = vpop.xlane.xlu2 %1373  ;;  %v2218_v14 = vld [vmem:[%s2886_s22 + $0x8] sm:$0xf0] }
 0x42b   : > { %v1378_v35 = vmul.f32 %v1374_v16, %v2666_v42  ;;  %1684 = vmatpush.bf16.msra.mxu1 %v1671_v12 }
 0x42d   : > { %v1380_v36 = vadd.f32 1e-05, %v1378_v35 }
 0x42f   : > { %vm1388_vm9 = vweird.f32 %v1380_v36 }
 0x432   : > { %1066 = vadd.xlane.f32.xlu0 %v1065_v22  ;;  %v1283_v24 = vpop.xlane.xlu2 %1282  ;;  %1279 = vadd.xlane.f32.xlu1 %v1278_v23  ;;  %v2221_v23 = vor.u32 %v2253_v9, %v2218_v14 }
 0x433   : > { %v1285_v25 = vmax.f32 %v1283_v24, 1e-24 }
 0x434   : > { %1806 = vmatpush.bf16.msrb.mxu0 %v2221_v23 }
 0x435   : > { %2347 = vrsqrt.f32 %v1285_v25  ;;  %vm1302_vm2 = vweird.f32 %v1285_v25 }
 0x436   : > { %2349 = vrsqrt.f32 %v1380_v36 }
 0x43a   : > { %1069 = vadd.xlane.f32.xlu1 %v1068_v27  ;;  %v2315_v27 = vld [vmem:[%s3159_s13 + $0x1] ss:$0 sm:$0xff] }
 0x43b   : > { %v2348_v28 = vpop.eup %2347 }
 0x43c   : > { %v1297_v29 = vmul.f32 %v2348_v28, %v1285_v25  ;;  %vm1303_vm0 = vweird.f32 %v2348_v28  ;;  %v2350_v37 = vpop.eup %2349 }
 0x43d   : > { %vm1304_vm7 = vmor %vm1302_vm2, %vm1303_vm0  ;;  %v1383_v38 = vmul.f32 %v2350_v37, %v1380_v36  ;;  %vm1389_vm10 = vweird.f32 %v2350_v37 }
 0x43e   : > { %v1298_v30 = vmul.f32 %v2348_v28, %v1297_v29  ;;  %vm1390_vm12 = vmor %vm1388_vm9, %vm1389_vm10 }
 0x43f   : > { %v1384_v39 = vmul.f32 %v2350_v37, %v1383_v38 }
 0x440   : > { %v1299_v31 = vmul.f32 0.5, %v1298_v30 }
 0x441   : > { %v1385_v40 = vmul.f32 0.5, %v1384_v39 }
 0x442   : > { %v1300_v32 = vsub.f32 1.5, %v1299_v31 }
 0x443   : > { %v1386_v41 = vsub.f32 1.5, %v1385_v40 }
 0x444   : > { %v1301_v60 = vmul.f32 %v2348_v28, %v1300_v32 }
 0x445   : > { %v1387_v44 = vmul.f32 %v2350_v37, %v1386_v41  ;;  %v2193_v41 = vld [vmem:[%s3160_s14 + $0x20] sm:$0xff] }
 0x446   : > { %v1305_v33 = vsel %vm1304_vm7, %v2348_v28, %v1301_v60 }
 0x447   : > { %v2841_v52 = vmul.f32 %v1305_v33, %v1274_v61  ;;  %v1391_v45 = vsel %vm1390_vm12, %v2350_v37, %v1387_v44  ;;  %v2194_v44 = vld [vmem:[%s3160_s14 + $0x28] sm:$0xff] }
 0x448   : > { %v1402_v47 = vmul.f32 %v1391_v45, %v2798_v55 }
 0x449   : > { %v1319_v34 = vpack.c.bf16 %v2841_v52, %v2841_v52  ;;  %2166 = vst.msk [vmem:[%s2974_s1 + $0x18] sm:$0xff] %vm1045_vm11, %v2841_v52 }
 0x44a   : > { %v1407_v21 = vmul.f32 %v2850_v46, %v1402_v47 }
 0x44b   : > { %1322 = vst.msk [vmem:[#allocation2 + $0xc] sm:$0xf] %vm1315_vm8, %v1319_v34 }
 0x44c   : > { %v2861_v56 = vadd.f32 %v2858_v51, %v1407_v21 }
 0x44e   : > { %v2180_v63 = vmul.f32 -1.442695, %v2861_v56 }
 0x495   : > { %v1589_v48 = vpop.xlane.xlu0 %1588 }
 0x496   : > { %v1593_v49 = vmul.f32 %v1589_v48, %v2666_v42  ;;  %v2176_v48 = vld [vmem:[%s3152_s6 + $0x30] sm:$0xff] }
 0x498   : > { %v1595_v50 = vadd.f32 1e-05, %v1593_v49  ;;  %v2177_v49 = vld [vmem:[%s3152_s6 + $0x38] sm:$0xff] }
 0x49a   : > { %2351 = vrsqrt.f32 %v1595_v50  ;;  %vm1603_vm14 = vweird.f32 %v1595_v50 }
 0x49d   : > { %v1592_v53 = vpop.xlane.xlu1 %1591  ;;  %v1377_v54 = vpop.xlane.xlu0 %1376 }
 0x49e   : > { %v1594_v57 = vmul.f32 %v1592_v53, %v2666_v42  ;;  %v1379_v55 = vmul.f32 %v1377_v54, %v2666_v42  ;;  %v1670_v54 = vpack.c.bf16 %v2194_v44, %v2193_v41 }
 0x4a0   : > { %v2352_v58 = vpop.eup %2351  ;;  %v2866_v59 = vadd.f32 1e-05, %v1594_v57  ;;  %v2868_v61 = vadd.f32 1e-05, %v1379_v55  ;;  %v2174_v57 = vld [vmem:[%s3152_s6 + $0x20] sm:$0xff]  ;;  %v2175_v55 = vld [vmem:[%s3152_s6 + $0x28] sm:$0xff]  ;;  %1685 = vmatpush.bf16.msra.mxu1 %v1670_v54 }
 0x4a1   : > { %v1598_v62 = vmul.f32 %v2352_v58, %v1595_v50  ;;  %vm1604_vm13 = vweird.f32 %v2352_v58 }
 0x4a2   : > { %2353 = vrsqrt.f32 %v2866_v59  ;;  %vm1605_vm15 = vmor %vm1603_vm14, %vm1604_vm13  ;;  %vm1613_vm3 = vweird.f32 %v2866_v59  ;;  %vm1398_vm6 = vweird.f32 %v2868_v61 }
 0x4a3   : > { %v1599_v0 = vmul.f32 %v2352_v58, %v1598_v62  ;;  %2355 = vrsqrt.f32 %v2868_v61 }
 0x4a4   : > { %2357 = vpow2.f32 %v2180_v63 }
 0x4a5   : > { %v1600_v1 = vmul.f32 0.5, %v1599_v0  ;;  %v1067_v3 = vpop.xlane.xlu0 %1066  ;;  %v1280_v42 = vpop.xlane.xlu1 %1279 }
 0x4a6   : > { %v2875_v4 = vmax.f32 %v1067_v3, 1e-24  ;;  %v2877_v5 = vmax.f32 %v1280_v42, 1e-24  ;;  %v1455_v42 = vpack.c.bf16 %v2175_v55, %v2174_v57 }
 0x4a7   : > { %v1601_v6 = vsub.f32 1.5, %v1600_v1 }
 0x4a8   : > { %v2354_v11 = vpop.eup %2353  ;;  %2359 = vrsqrt.f32 %v2875_v4  ;;  %vm1079_vm10 = vweird.f32 %v2875_v4  ;;  %vm1292_vm13 = vweird.f32 %v2877_v5 }
 0x4a9   : > { %v2356_v15 = vpop.eup %2355  ;;  %v1602_v16 = vmul.f32 %v2352_v58, %v1601_v6  ;;  %v1608_v17 = vmul.f32 %v2354_v11, %v2866_v59  ;;  %2361 = vrsqrt.f32 %v2877_v5  ;;  %vm1614_vm4 = vweird.f32 %v2354_v11 }
 0x4aa   : > { %v1393_v22 = vmul.f32 %v2356_v15, %v2868_v61  ;;  %v2358_v24 = vpop.eup %2357  ;;  %vm1399_vm5 = vweird.f32 %v2356_v15  ;;  %vm1615_vm0 = vmor %vm1613_vm3, %vm1614_vm4  ;;  %v1456_v61 = vpack.c.bf16 %v2177_v49, %v2176_v48 }
 0x4ab   : > { %v1606_v25 = vsel %vm1605_vm15, %v2352_v58, %v1602_v16  ;;  %v1609_v26 = vmul.f32 %v2354_v11, %v1608_v17  ;;  %v2913_v35 = vadd.f32 1.0, %v2358_v24  ;;  %vm1400_vm2 = vmor %vm1398_vm6, %vm1399_vm5 }
 0x4ac   : > { %v1617_v28 = vmul.f32 %v1606_v25, %v2807_v2  ;;  %v1394_v29 = vmul.f32 %v2356_v15, %v1393_v22  ;;  %1469 = vmatpush.bf16.msrb.mxu3 %v1456_v61 }
 0x4ad   : > { %v1610_v30 = vmul.f32 0.5, %v1609_v26  ;;  %v1070_v31 = vpop.xlane.xlu1 %1069  ;;  %v2257_v26 = vld [vmem:[%s2992_s0 + $0x4] sm:$0xf0]  ;;  %v1431_v57 = vand.u32 2147483647, %v2913_v35  ;;  %v1433_v61 = vand.u32 2147483648, %v2913_v35 }
 0x4ae   : > { %v2903_v32 = vpop.eup %2359  ;;  %v1622_v60 = vmul.f32 %v2314_v18, %v1617_v28  ;;  %v1395_v33 = vmul.f32 0.5, %v1394_v29  ;;  %v2911_v34 = vmax.f32 %v1070_v31, 1e-24 }
 0x4af   : > { %v2915_v36 = vpop.eup %2361  ;;  %v1611_v2 = vsub.f32 1.5, %v1610_v30  ;;  %v1074_v37 = vmul.f32 %v2903_v32, %v2875_v4  ;;  %vm1080_vm7 = vweird.f32 %v2903_v32 }
 0x4b0   : > { %v2920_v38 = vadd.f32 %v2315_v27, %v1622_v60  ;;  %v1396_v39 = vsub.f32 1.5, %v1395_v33  ;;  %v1287_v40 = vmul.f32 %v2915_v36, %v2877_v5  ;;  %2363 = vrsqrt.f32 %v2911_v34  ;;  %vm1081_vm12 = vmor %vm1079_vm10, %vm1080_vm7  ;;  %1470 = vmatpush.bf16.msrb.mxu3 %v1455_v42 }
 0x4b1   : > { %v1612_v45 = vmul.f32 %v2354_v11, %v1611_v2  ;;  %v1075_v47 = vmul.f32 %v2903_v32, %v1074_v37  ;;  %vm1293_vm9 = vweird.f32 %v2915_v36  ;;  %vm1089_vm3 = vweird.f32 %v2911_v34 }
 0x4b2   : > { %v2199_v50 = vmul.f32 -1.442695, %v2920_v38  ;;  %v1397_v21 = vmul.f32 %v2356_v15, %v1396_v39  ;;  %v1288_v53 = vmul.f32 %v2915_v36, %v1287_v40  ;;  %vm1294_vm14 = vmor %vm1292_vm13, %vm1293_vm9 }
 0x4b3   : > { %v1616_v58 = vsel %vm1615_vm0, %v2354_v11, %v1612_v45  ;;  %v1076_v59 = vmul.f32 0.5, %v1075_v47  ;;  %vm1427_vm0 = vweird.f32 %v2913_v35 }
 0x4b4   : > { %2365 = vpow2.f32 %v2199_v50  ;;  %v1618_v62 = vmul.f32 %v1616_v58, %v2817_v20  ;;  %v1401_v63 = vsel %vm1400_vm2, %v2356_v15, %v1397_v21  ;;  %v1289_v0 = vmul.f32 0.5, %v1288_v53 }
 0x4b5   : > { %v1403_v1 = vmul.f32 %v1401_v63, %v2819_v10  ;;  %v1077_v3 = vsub.f32 1.5, %v1076_v59  ;;  %2367 = vrcp.f32 %v2913_v35 }
 0x4b6   : > { %v1623_v6 = vmul.f32 %v2314_v18, %v1618_v62  ;;  %v1290_v7 = vsub.f32 1.5, %v1289_v0  ;;  %v2364_v8 = vpop.eup %2363 }
 0x4b7   : > { %v1408_v20 = vmul.f32 %v2850_v46, %v1403_v1  ;;  %v1078_v9 = vmul.f32 %v2903_v32, %v1077_v3  ;;  %v1084_v12 = vmul.f32 %v2364_v8, %v2911_v34  ;;  %vm1090_vm15 = vweird.f32 %v2364_v8 }
 0x4b8   : > { %v2966_v10 = vadd.f32 %v2315_v27, %v1623_v6  ;;  %v1291_v11 = vmul.f32 %v2915_v36, %v1290_v7  ;;  %vm1091_vm4 = vmor %vm1089_vm3, %vm1090_vm15 }
 0x4b9   : > { %v1082_v46 = vsel %vm1081_vm12, %v2903_v32, %v1078_v9  ;;  %v2978_v4 = vadd.f32 %v2858_v51, %v1408_v20  ;;  %v1085_v17 = vmul.f32 %v2364_v8, %v1084_v12  ;;  %v1434_v9 = vor.u32 1.1754944e-38, %v1433_v61 }
 0x4ba   : > { %v2366_v14 = vpop.eup %2365  ;;  %v2200_v15 = vmul.f32 -1.442695, %v2966_v10  ;;  %v1093_v5 = vmul.f32 %v1082_v46, %v2825_v13  ;;  %v1295_v16 = vsel %vm1294_vm14, %v2915_v36, %v1291_v11  ;;  %v2230_v13 = vld [vmem:[%s2992_s0] sm:$0xf]  ;;  %vm1432_vm14 = vcmp.eq.f32.partialorder %v1431_v57, 8.507059e+37 }
 0x4bb   : > { %v2983_v18 = vadd.f32 1.0, %v2366_v14  ;;  %v1306_v22 = vmul.f32 %v1295_v16, %v2791_v43  ;;  %v2181_v23 = vmul.f32 -1.442695, %v2978_v4  ;;  %v2987_v24 = vpop.eup %2367  ;;  %v1086_v25 = vmul.f32 0.5, %v1085_v17 }
 0x4bc   : > { %2369 = vpow2.f32 %v2200_v15  ;;  %1308 = vst.msk [vmem:[%s2974_s1] sm:$0xff] %vm1045_vm11, %v1093_v5  ;;  %v1313_v51 = vpack.c.bf16 %v1093_v5, %v1093_v5  ;;  %v2231_v28 = vor.u32 %v2257_v26, %v2230_v13  ;;  %v1423_v29 = vmul.f32 %v2987_v24, %v2913_v35 }
 0x4bd   : > { %2371 = vrcp.f32 %v2983_v18  ;;  %2165 = vst.msk [vmem:[%s2974_s1 + $0x10] sm:$0xff] %vm1045_vm11, %v1306_v22  ;;  %v1318_v43 = vpack.c.bf16 %v1306_v22, %v1306_v22  ;;  %v1087_v27 = vsub.f32 1.5, %v1086_v25  ;;  %vm1428_vm5 = vweird.f32 %v2987_v24 }
 0x4be   : > { %1316 = vst.msk [vmem:[#allocation2] sm:$0xf] %vm1315_vm8, %v1313_v51  ;;  %2373 = vpow2.f32 %v2181_v23  ;;  %1847 = vmatpush.bf16.msrb.mxu1 %v2231_v28  ;;  %v1424_v2 = vsub.f32 1.0, %v1423_v29  ;;  %v1646_v52 = vand.u32 2147483647, %v2983_v18  ;;  %v1648_v21 = vand.u32 2147483648, %v2983_v18 }
 0x4bf   : > { %1321 = vst.msk [vmem:[#allocation2 + $0x8] sm:$0xf] %vm1315_vm8, %v1318_v43  ;;  %v1088_v30 = vmul.f32 %v2364_v8, %v1087_v27  ;;  %vm1642_vm2 = vweird.f32 %v2983_v18  ;;  %v2232_v43 = vld [vmem:[%s2992_s0 + $0x8] sm:$0xf0]  ;;  %v2183_v28 = vld [vmem:[%s3154_s8 + $0x10] sm:$0xff] }
 0x4c0   : > { %v1425_v44 = vmul.f32 %v2987_v24, %v1424_v2  ;;  %vm1647_vm10 = vcmp.eq.f32.partialorder %v1646_v52, 8.507059e+37  ;;  %v1649_v7 = vor.u32 1.1754944e-38, %v1648_v21  ;;  %v2184_v29 = vld [vmem:[%s3154_s8 + $0x18] sm:$0xff] }
 0x4c1   : > { %v1092_v32 = vsel %vm1091_vm4, %v2364_v8, %v1088_v30  ;;  %v1483_v30 = vpack.c.bf16 %v2184_v29, %v2183_v28 }
 0x4c2   : > { %v2370_v31 = vpop.eup %2369  ;;  %v1094_v36 = vmul.f32 %v1092_v32, %v2834_v19  ;;  %v1426_v47 = vadd.f32 %v2987_v24, %v1425_v44  ;;  %v2254_v32 = vld [vmem:[%s2886_s22 + $0x4] sm:$0xf0] }
 0x4c3   : > { %v2372_v60 = vpop.eup %2371  ;;  %v1636_v33 = vadd.f32 1.0, %v2370_v31  ;;  %1497 = vmatpush.bf16.msra.mxu2 %v1483_v30  ;;  %v2216_v31 = vld [vmem:[%s2886_s22] sm:$0xf] }
 0x4c4   : > { %v2374_v37 = vpop.eup %2373  ;;  %v1638_v39 = vmul.f32 %v2372_v60, %v2983_v18  ;;  %1309 = vst.msk [vmem:[%s2974_s1 + $0x8] sm:$0xff] %vm1045_vm11, %v1094_v36  ;;  %v1314_v40 = vpack.c.bf16 %v1094_v36, %v1094_v36  ;;  %vm1643_vm6 = vweird.f32 %v2372_v60  ;;  %v2317_v36 = vld [vmem:[%s3161_s15 + $0x1] ss:$0 sm:$0xff] }
 0x4c5   : > { %2375 = vrcp.f32 %v1636_v33  ;;  %v1421_v41 = vadd.f32 1.0, %v2374_v37  ;;  %vm3030_vm7 = vmor %vm1642_vm2, %vm1643_vm6  ;;  %v1661_v63 = vand.u32 2147483647, %v1636_v33  ;;  %v1663_v0 = vand.u32 2147483648, %v1636_v33 }
 0x4c6   : > { %v1639_v34 = vsub.f32 1.0, %v1638_v39  ;;  %1317 = vst.msk [vmem:[#allocation2 + $0x4] sm:$0xf] %vm1315_vm8, %v1314_v40  ;;  %vm3020_vm8 = vmor %vm1427_vm0, %vm1428_vm5  ;;  %vm1657_vm12 = vweird.f32 %v1636_v33  ;;  %v2255_v26 = vld [vmem:[#allocation2 + $0x8] sm:$0xff] }
 0x4c7   : > { %2377 = vrcp.f32 %v1421_v41  ;;  %v1430_v59 = vsel %vm3020_vm8, %v2987_v24, %v1426_v47  ;;  %v1448_v6 = vand.u32 2147483648, %v1421_v41  ;;  %v1446_v8 = vand.u32 2147483647, %v1421_v41 }
 0x4c8   : > { %v1640_v45 = vmul.f32 %v2372_v60, %v1639_v34  ;;  %v1664_v12 = vor.u32 1.1754944e-38, %v1663_v0  ;;  %vm1442_vm3 = vweird.f32 %v1421_v41  ;;  %vm1662_vm4 = vcmp.eq.f32.partialorder %v1661_v63, 8.507059e+37  ;;  %v2318_v34 = vld [vmem:[%s3153_s7 + $0x1] ss:$0 sm:$0xff] }
 0x4c9   : > { %v1435_v15 = vsel %vm1432_vm14, %v1434_v9, %v1430_v59  ;;  %v1449_v5 = vor.u32 1.1754944e-38, %v1448_v6  ;;  %vm1447_vm6 = vcmp.eq.f32.partialorder %v1446_v8, 8.507059e+37 }
 0x4ca   : > { %v1641_v48 = vadd.f32 %v2372_v60, %v1640_v45  ;;  %v1452_v24 = vmul.f32 %v1435_v15, %v2861_v56  ;;  %v2203_v56 = vld [vmem:[%s3162_s16 + $0x18] sm:$0xff] }
 0x4cb   : > { %v2376_v19 = vpop.eup %2375 }
 0x4cc   : > { %v1653_v49 = vmul.f32 %v2376_v19, %v1636_v33  ;;  %v1645_v3 = vsel %vm3030_vm7, %v2372_v60, %v1641_v48  ;;  %vm1658_vm9 = vweird.f32 %v2376_v19  ;;  %v2217_v33 = vor.u32 %v2254_v32, %v2216_v31 }
 0x4cd   : > { %v2378_v50 = vpop.eup %2377  ;;  %v3018_v53 = vld [vmem:[#allocation2] sm:$0xff]  ;;  %v1650_v11 = vsel %vm1647_vm10, %v1649_v7, %v1645_v3  ;;  %vm1659_vm15 = vmor %vm1657_vm12, %vm1658_vm9 }
 0x4ce   : > { %v1438_v55 = vmul.f32 %v2378_v50, %v1421_v41  ;;  %v1654_v58 = vsub.f32 1.0, %v1653_v49  ;;  %2223 = vmatmul.msk.bf16.vlgmr.msrb.gmra.mxu0 %vm1045_vm11, %v3018_v53  ;;  %vm1443_vm13 = vweird.f32 %v2378_v50  ;;  %v1667_v18 = vmul.f32 %v1650_v11, %v2920_v38  ;;  %v2202_v38 = vld [vmem:[%s3162_s16 + $0x10] sm:$0xff]  ;;  %1792 = vmatpush.bf16.msrb.mxu2 %v2217_v33 }
 0x4cf   : > { %vm1444_vm5 = vmor %vm1442_vm3, %vm1443_vm13 }
 0x4d0   : > { %v1439_v1 = vsub.f32 1.0, %v1438_v55  ;;  %v1655_v42 = vmul.f32 %v2376_v19, %v1654_v58  ;;  %v2319_v55 = vld [vmem:[%s3163_s17 + $0x1] ss:$0 sm:$0xff] }
 0x4d2   : > { %v1440_v35 = vmul.f32 %v2378_v50, %v1439_v1  ;;  %v1656_v20 = vadd.f32 %v2376_v19, %v1655_v42 }
 0x4d4   : > { %v1441_v46 = vadd.f32 %v2378_v50, %v1440_v35  ;;  %v1660_v14 = vsel %vm1659_vm15, %v2376_v19, %v1656_v20 }
 0x4d5   : > { %v1665_v16 = vsel %vm1662_vm4, %v1664_v12, %v1660_v14 }
 0x4d6   : > { %v1445_v17 = vsel %vm1444_vm5, %v2378_v50, %v1441_v46  ;;  %v1668_v22 = vmul.f32 %v1665_v16, %v2966_v10  ;;  %v1698_v10 = vpack.c.bf16 %v2203_v56, %v2202_v38  ;;  %v2320_v50 = vld [vmem:[%s3155_s9 + $0x1] ss:$0 sm:$0xff]  ;;  %vm1939_vm5 = vcmask 15368  }
 0x4d7   : > { %v1450_v23 = vsel %vm1447_vm6, %v1449_v5, %v1445_v17 }
 0x4d8   : > { %v1453_v51 = vmul.f32 %v1450_v23, %v2978_v4  ;;  %v1669_v25 = vpack.c.bf16 %v1668_v22, %v1667_v18  ;;  %1712 = vmatpush.bf16.msra.mxu3 %v1698_v10  ;;  %v2256_v4 = vld [vmem:[%s2992_s0 + $0x4] sm:$0xf]  ;;  %s3210_s0 = sld [smem:[#allocation18_spill]] }
 0x4d9   : > { %v2235_v27 = vor.u32 %v2256_v4, %v2232_v43 }
 0x4da   : > { %v1454_v13 = vpack.c.bf16 %v1453_v51, %v1452_v24  ;;  %2201 = vmatmul.msk.bf16.vlgmr.msra.gmra.mxu1 %vm895_vm1, %v1669_v25 }
 0x4dc   : > { %2182 = vmatmul.msk.bf16.vlgmr.msrb.gmra.mxu3 %vm895_vm1, %v1454_v13  ;;  %vm1757_vm1 = vcmask 7168  }
 0x4dd   : > { %1861 = vmatpush.bf16.msrb.mxu3 %v2235_v27 }
 0x4de   : > { %s3113_s10 = scalar_lea.vmem %s3210_s0, %s2251_s4 }
 0x4ea   : > { %2236 = vmatmul.msk.bf16.vlgmr.msrb.gmra.mxu1 %vm1045_vm11, %v2255_v26 }
 0x54b   : > { %v1808_v20 = vpop.f32.mrf.mxu0 }
 0x54c   : > { %v1814_v15 = vmul.f32 14.285714, %v1808_v20 }
 0x54e   : > { %v2239_v51 = vadd.f32 -14.285714, %v1814_v15 }
 0x550   : > { %v1880_v10 = vmul.f32 1.442695, %v2239_v51 }
 0x557   : > { %v1687_v60 = vpop.f32.mrf.mxu1 }
 0x558   : > { %v1688_v39 = vadd.f32 %v2317_v36, %v1687_v60 }
 0x55f   : > { %v1472_v2 = vpop.f32.mrf.mxu3  ;;  %v1689_v37 = vpop.f32.mrf.mxu1 }
 0x560   : > { %v1690_v40 = vadd.f32 %v2317_v36, %v1689_v37  ;;  %v1473_v45 = vadd.f32 %v2318_v34, %v1472_v2 }
 0x562   : > { %v1697_v41 = vpack.c.bf16 %v1690_v40, %v1688_v39 }
 0x564   : > { %2205 = vmatmul.msk.bf16.vlgmr.msra.gmra.mxu3 %vm1045_vm11, %v1697_v41 }
 0x567   : > { %v1474_v44 = vpop.f32.mrf.mxu3  ;;  %v1849_v49 = vpop.f32.mrf.mxu1 }
 0x568   : > { %v1475_v19 = vadd.f32 %v2318_v34, %v1474_v44  ;;  %v1868_v57 = vmul.f32 14.285714, %v1849_v49 }
 0x56a   : > { %v1482_v47 = vpack.c.bf16 %v1475_v19, %v1473_v45  ;;  %v2242_v61 = vadd.f32 -14.285714, %v1868_v57  ;;  %v2444_v19 = vmov 0.0  }
 0x56b   : > { %1760 = vst.msk [vmem:[#allocation3 + $0x10] sm:$0xff] %vm1757_vm1, %v2444_v19 }
 0x56c   : > { %2186 = vmatmul.msk.bf16.vlgmr.msra.gmra.mxu2 %vm1045_vm11, %v1482_v47  ;;  %v1904_v42 = vmul.f32 1.442695, %v2242_v61  ;;  %1758 = vst.msk [vmem:[#allocation3] sm:$0xff] %vm1757_vm1, %v2444_v19 }
 0x56d   : > { %1759 = vst.msk [vmem:[#allocation3 + $0x8] sm:$0xff] %vm1757_vm1, %v2444_v19 }
 0x56e   : > { %2379 = vpow2.f32 %v1904_v42  ;;  %1761 = vst.msk [vmem:[#allocation3 + $0x18] sm:$0xff] %vm1757_vm1, %v2444_v19 }
 0x56f   : > { %v1851_v62 = vpop.f32.mrf.mxu1 }
 0x570   : > { %v1870_v6 = vmul.f32 14.285714, %v1851_v62 }
 0x572   : > { %v2244_v9 = vadd.f32 -14.285714, %v1870_v6 }
 0x574   : > { %2237 = vmatmul.msk.bf16.vlgmr.msrb.gmra.mxu3 %vm1045_vm11, %v2255_v26  ;;  %v1908_v5 = vmul.f32 1.442695, %v2244_v9  ;;  %v2380_v17 = vpop.eup %2379  ;;  %v1810_v26 = vpop.f32.mrf.mxu0 }
 0x575   : > { %v1816_v43 = vmul.f32 14.285714, %v1810_v26  ;;  %v1899_v6 = vld [vmem:[#allocation3 + $0x18] sm:$0xff] }
 0x577   : > { %v2241_v32 = vadd.f32 -14.285714, %v1816_v43 }
 0x579   : > { %v1884_v2 = vmul.f32 1.442695, %v2241_v32 }
 0x57c   : > { %2222 = vmatmul.msk.bf16.vlgmr.msrb.gmra.mxu2 %vm1045_vm11, %v3018_v53 }
 0x5e7   : > { %v1714_v48 = vpop.f32.mrf.mxu3 }
 0x5e8   : > { %v3093_v60 = vadd.f32 %v2319_v55, %v1714_v48 }
 0x5ea   : > { %v1719_v37 = vmul.f32 %v3093_v60, %v3093_v60 }
 0x5ec   : > { %v1721_v41 = vsel %vm1045_vm11, %v1719_v37, 0.0 }
 0x5ef   : > { %v1499_v52 = vpop.f32.mrf.mxu2  ;;  %v1716_v21 = vpop.f32.mrf.mxu3 }
 0x5f0   : > { %v3075_v54 = vadd.f32 %v2320_v50, %v1499_v52  ;;  %v3082_v59 = vadd.f32 %v2319_v55, %v1716_v21 }
 0x5f2   : > { %v1504_v58 = vmul.f32 %v3075_v54, %v3075_v54  ;;  %v1720_v3 = vmul.f32 %v3082_v59, %v3082_v59 }
 0x5f4   : > { %v1506_v53 = vsel %vm1045_vm11, %v1504_v58, 0.0  ;;  %v1724_v8 = vsel %vm1045_vm11, %v1720_v3, 0.0 }
 0x5f5   : > { %1507 = vadd.xlane.f32.xlu1 %v1506_v53  ;;  %v1898_v53 = vld [vmem:[#allocation3 + $0x10] sm:$0xff] }
 0x5f7   : > { %v1501_v63 = vpop.f32.mrf.mxu2  ;;  %v1863_v0 = vpop.f32.mrf.mxu3 }
 0x5f8   : > { %v1869_v1 = vmul.f32 14.285714, %v1863_v0  ;;  %v3088_v25 = vadd.f32 %v2320_v50, %v1501_v63 }
 0x5fa   : > { %v2243_v7 = vadd.f32 -14.285714, %v1869_v1  ;;  %v1505_v4 = vmul.f32 %v3088_v25, %v3088_v25 }
 0x5fc   : > { %v1906_v35 = vmul.f32 1.442695, %v2243_v7  ;;  %v1509_v30 = vsel %vm1045_vm11, %v1505_v4, 0.0 }
 0x5fd   : > { %1725 = vadd.xlane.f32.xlu1 %v1724_v8 }
 0x5fe   : > { %2381 = vpow2.f32 %v1906_v35 }
 0x5ff   : > { %v1794_v11 = vpop.f32.mrf.mxu2  ;;  %v1865_v12 = vpop.f32.mrf.mxu3  ;;  %2383 = vpow2.f32 %v1908_v5 }
 0x600   : > { %v1813_v46 = vmul.f32 14.285714, %v1794_v11  ;;  %v1871_v14 = vmul.f32 14.285714, %v1865_v12 }
 0x602   : > { %v2245_v16 = vadd.f32 -14.285714, %v1871_v14  ;;  %v2238_v22 = vadd.f32 -14.285714, %v1813_v46 }
 0x604   : > { %v2382_v18 = vpop.eup %2381  ;;  %v1910_v23 = vmul.f32 1.442695, %v2245_v16  ;;  %v1878_v38 = vmul.f32 1.442695, %v2238_v22 }
 0x605   : > { %v1912_v24 = vadd.f32 %v2382_v18, %v2380_v17  ;;  %v2384_v27 = vpop.eup %2383 }
 0x606   : > { %2385 = vpow2.f32 %v1910_v23 }
 0x607   : > { %v1796_v13 = vpop.f32.mrf.mxu2  ;;  %1913 = vadd.xlane.f32.xlu2 %v1912_v24  ;;  %2387 = vpow2.f32 %v1878_v38 }
 0x608   : > { %v1815_v56 = vmul.f32 14.285714, %v1796_v13  ;;  %2389 = vpow2.f32 %v1880_v10  ;;  %v1873_v13 = vld [vmem:[#allocation3 + $0x8] sm:$0xff] }
 0x60a   : > { %v2240_v29 = vadd.f32 -14.285714, %v1815_v56 }
 0x60c   : > { %v2386_v28 = vpop.eup %2385  ;;  %v1882_v33 = vmul.f32 1.442695, %v2240_v29 }
 0x60d   : > { %v1915_v31 = vadd.f32 %v2386_v28, %v2384_v27  ;;  %v2388_v36 = vpop.eup %2387 }
 0x60e   : > { %v2390_v39 = vpop.eup %2389  ;;  %2391 = vpow2.f32 %v1882_v33 }
 0x60f   : > { %1510 = vadd.xlane.f32.xlu2 %v1509_v30  ;;  %1916 = vadd.xlane.f32.xlu0 %v1915_v31  ;;  %v1886_v40 = vadd.f32 %v2390_v39, %v2388_v36  ;;  %2393 = vpow2.f32 %v1884_v2 }
 0x614   : > { %v2392_v34 = vpop.eup %2391 }
 0x615   : > { %v2394_v44 = vpop.eup %2393 }
 0x616   : > { %v1889_v45 = vadd.f32 %v2394_v44, %v2392_v34 }
 0x617   : > { %1887 = vadd.xlane.f32.xlu2 %v1886_v40  ;;  %1722 = vadd.xlane.f32.xlu0 %v1721_v41 }
 0x61f   : > { %1890 = vadd.xlane.f32.xlu0 %v1889_v45 }
 0x668   : > { %v1508_v47 = vpop.xlane.xlu1 %1507 }
 0x669   : > { %v1512_v48 = vmax.f32 %v1508_v47, 1e-24 }
 0x66b   : > { %2395 = vrsqrt.f32 %v1512_v48  ;;  %vm1520_vm8 = vweird.f32 %v1512_v48 }
 0x670   : > { %v1726_v50 = vpop.xlane.xlu1 %1725 }
 0x671   : > { %v2396_v49 = vpop.eup %2395  ;;  %v1728_v57 = vmax.f32 %v1726_v50, 1e-24 }
 0x672   : > { %v1515_v52 = vmul.f32 %v2396_v49, %v1512_v48  ;;  %vm1521_vm0 = vweird.f32 %v2396_v49 }
 0x673   : > { %2397 = vrsqrt.f32 %v1728_v57  ;;  %vm1522_vm2 = vmor %vm1520_vm8, %vm1521_vm0  ;;  %vm1745_vm10 = vweird.f32 %v1728_v57 }
 0x674   : > { %v1516_v21 = vmul.f32 %v2396_v49, %v1515_v52 }
 0x676   : > { %v1517_v55 = vmul.f32 0.5, %v1516_v21 }
 0x678   : > { %v1518_v58 = vsub.f32 1.5, %v1517_v55 }
 0x679   : > { %v2398_v3 = vpop.eup %2397 }
 0x67a   : > { %v1519_v61 = vmul.f32 %v2396_v49, %v1518_v58  ;;  %v1914_v62 = vpop.xlane.xlu2 %1913  ;;  %v1740_v42 = vmul.f32 %v2398_v3, %v1728_v57  ;;  %vm1746_vm7 = vweird.f32 %v2398_v3 }
 0x67b   : > { %v1918_v63 = vadd.f32 %v1914_v62, %v1898_v53  ;;  %vm1747_vm12 = vmor %vm1745_vm10, %vm1746_vm7 }
 0x67c   : > { %v1523_v0 = vsel %vm1522_vm2, %v2396_v49, %v1519_v61  ;;  %v1741_v11 = vmul.f32 %v2398_v3, %v1740_v42 }
 0x67d   : > { %v1534_v1 = vmul.f32 %v1523_v0, %v3075_v54  ;;  %1920 = vst.msk [vmem:[#allocation3 + $0x10] sm:$0xff] %vm1757_vm1, %v1918_v63  ;;  %v1872_v54 = vld [vmem:[#allocation3] sm:$0xff] }
 0x67e   : > { %v1742_v12 = vmul.f32 0.5, %v1741_v11 }
 0x67f   : > { %2206 = vst.msk [vmem:[%s2974_s1 + $0x20] sm:$0xff] %vm1045_vm11, %v1534_v1 }
 0x680   : > { %v1743_v18 = vsub.f32 1.5, %v1742_v12 }
 0x682   : > { %v1511_v7 = vpop.xlane.xlu2 %1510  ;;  %v1917_v8 = vpop.xlane.xlu0 %1916  ;;  %v1744_v51 = vmul.f32 %v2398_v3, %v1743_v18 }
 0x683   : > { %v1513_v35 = vmax.f32 %v1511_v7, 1e-24  ;;  %v1919_v20 = vadd.f32 %v1917_v8, %v1899_v6 }
 0x684   : > { %v1929_v9 = vld [vmem:[#allocation3 + $0x10] sm:$0xff]  ;;  %v1748_v27 = vsel %vm1747_vm12, %v2398_v3, %v1744_v51 }
 0x685   : > { %2399 = vrsqrt.f32 %v1513_v35  ;;  %1933 = vrot.lane.b32.xlu1 %v1929_v9, %s2445_s24  ;;  %1921 = vst.msk [vmem:[#allocation3 + $0x18] sm:$0xff] %vm1757_vm1, %v1919_v20  ;;  %vm1530_vm13 = vweird.f32 %v1513_v35  ;;  %v1750_v32 = vmul.f32 %v1748_v27, %v3082_v59 }
 0x687   : > { %2209 = vst.msk [vmem:[%s2974_s1 + $0x38] sm:$0xff] %vm1045_vm11, %v1750_v32 }
 0x68a   : > { %v1888_v46 = vpop.xlane.xlu2 %1887  ;;  %v1723_v15 = vpop.xlane.xlu0 %1722 }
 0x68b   : > { %v2400_v14 = vpop.eup %2399  ;;  %v1892_v5 = vadd.f32 %v1888_v46, %v1872_v54  ;;  %v1727_v17 = vmax.f32 %v1723_v15, 1e-24 }
 0x68c   : > { %v1525_v16 = vmul.f32 %v2400_v14, %v1513_v35  ;;  %v1930_v22 = vld [vmem:[#allocation3 + $0x18] sm:$0xff]  ;;  %vm1531_vm9 = vweird.f32 %v2400_v14 }
 0x68d   : > { %1895 = vst.msk [vmem:[#allocation3] sm:$0xff] %vm1757_vm1, %v1892_v5  ;;  %2401 = vrsqrt.f32 %v1727_v17  ;;  %1935 = vrot.lane.b32.xlu2 %v1930_v22, %s2445_s24  ;;  %vm1532_vm14 = vmor %vm1530_vm13, %vm1531_vm9  ;;  %vm1735_vm3 = vweird.f32 %v1727_v17 }
 0x68e   : > { %v1526_v23 = vmul.f32 %v2400_v14, %v1525_v16 }
 0x690   : > { %v1527_v24 = vmul.f32 0.5, %v1526_v23 }
 0x692   : > { %v1528_v26 = vsub.f32 1.5, %v1527_v24  ;;  %v1891_v38 = vpop.xlane.xlu0 %1890 }
 0x693   : > { %v2402_v56 = vpop.eup %2401  ;;  %v1893_v4 = vadd.f32 %v1891_v38, %v1873_v13 }
 0x694   : > { %v1529_v10 = vmul.f32 %v2400_v14, %v1528_v26  ;;  %v1925_v43 = vld [vmem:[#allocation3] sm:$0xff]  ;;  %v1730_v28 = vmul.f32 %v2402_v56, %v1727_v17  ;;  %vm1736_vm15 = vweird.f32 %v2402_v56 }
 0x695   : > { %1927 = vst.msk [vmem:[%s3113_s10] sm:$0xff] %vm1757_vm1, %v1925_v43  ;;  %vm1737_vm4 = vmor %vm1735_vm3, %vm1736_vm15 }
 0x696   : > { %v1533_v29 = vsel %vm1532_vm14, %v2400_v14, %v1529_v10  ;;  %1896 = vst.msk [vmem:[#allocation3 + $0x8] sm:$0xff] %vm1757_vm1, %v1893_v4  ;;  %v1731_v31 = vmul.f32 %v2402_v56, %v1730_v28 }
 0x697   : > { %v1535_v30 = vmul.f32 %v1533_v29, %v3088_v25 }
 0x698   : > { %v1732_v33 = vmul.f32 0.5, %v1731_v31 }
 0x699   : > { %2207 = vst.msk [vmem:[%s2974_s1 + $0x28] sm:$0xff] %vm1045_vm11, %v1535_v30 }
 0x69a   : > { %v1733_v36 = vsub.f32 1.5, %v1732_v33 }
 0x69c   : > { %v1734_v2 = vmul.f32 %v2402_v56, %v1733_v36 }
 0x69d   : > { %v1926_v37 = vld [vmem:[#allocation3 + $0x8] sm:$0xff] }
 0x69e   : > { %1928 = vst.msk [vmem:[%s3113_s10 + $0x8] sm:$0xff] %vm1757_vm1, %v1926_v37  ;;  %v1738_v39 = vsel %vm1737_vm4, %v2402_v56, %v1734_v2 }
 0x69f   : > { %v1749_v25 = vmul.f32 %v1738_v39, %v3093_v60 }
 0x6a1   : > { %2208 = vst.msk [vmem:[%s2974_s1 + $0x30] sm:$0xff] %vm1045_vm11, %v1749_v25 }
 0x6e7   : > { %v1936_v59 = vpop.permute.xlu2 %1935 }
 0x6e8   : > { %1941 = vst.msk [vmem:[%s3113_s10 + $0x8] sm:$0xff] %vm1939_vm5, %v1936_v59 }
 0x6f7   : > { %v1934_v40 = vpop.permute.xlu1 %1933 }
 0x6f8   : > { %1940 = vst.msk [vmem:[%s3113_s10] sm:$0xff] %vm1939_vm5, %v1934_v40 }
 0x6f9 PF: > { %s32_s3 = sadd.s32 1, %s2441_s3   ;;  %s3211_s29 = sld [smem:[#allocation8_spill]] }
 0x6fa   : > { %p29_p11 = scmp.ge.s32.totalorder %s32_s3, 4   ;;  %s3212_s22 = sld [smem:[#allocation7_spill]] }
 0x6fb   : > { %s3213_s2 = smov %s2429_s25  ;;  %s3215_s26 = smov %s2437_s27 }
 0x6fc   :  { %31 = sbr.rel (!%p29_p11) target bundleno = 14 (0xe), region = 267 }
 0x6ff   : > { %s3214_s25 = smov %s3211_s29 }
 0x700   : > { %s3216_s27 = smov %s3212_s22 }

// kernel: moco_pair_forward.1
= control target key start
LH: loop header
LB: loop body
LE: loop exit
PB: predicated region body
PF: predicated region fallthrough
CT: control target
= control target key end

     0   :  { %s3146_s0 = inlined_call_operand.vmem [shape: f32[16,32], index: 0, kind: input, shape index: {}]   ;;  %s3147_s1 = inlined_call_operand.vmem [shape: f32[16,24], index: 1, kind: input, shape index: {}]   ;;  %s3148_s2 = inlined_call_operand.vmem [shape: f32[2,32,32], index: 2, kind: input, shape index: {}]   ;;  %s3149_s3 = inlined_call_operand.vmem [shape: f32[2,1,32], index: 3, kind: input, shape index: {}]   ;;  %s3150_s4 = inlined_call_operand.vmem [shape: f32[2,1,32], index: 4, kind: input, shape index: {}]   ;;  %s3151_s5 = inlined_call_operand.vmem [shape: f32[2,1,32], index: 5, kind: input, shape index: {}]   ;;  %s3152_s6 = inlined_call_operand.vmem [shape: f32[2,32,16], index: 6, kind: input, shape index: {}]   ;;  %s3153_s7 = inlined_call_operand.vmem [shape: f32[2,1,16], index: 7, kind: input, shape index: {}]   ;;  %s3154_s8 = inlined_call_operand.vmem [shape: f32[2,16,16], index: 8, kind: input, shape index: {}]   ;;  %s3155_s9 = inlined_call_operand.vmem [shape: f32[2,1,16], index: 9, kind: input, shape index: {}]   ;;  %s3156_s10 = inlined_call_operand.vmem [shape: f32[2,24,32], index: 10, kind: input, shape index: {}]   ;;  %s3157_s11 = inlined_call_operand.vmem [shape: f32[2,1,32], index: 11, kind: input, shape index: {}]   ;;  %s3158_s12 = inlined_call_operand.vmem [shape: f32[2,1,32], index: 12, kind: input, shape index: {}]   ;;  %s3159_s13 = inlined_call_operand.vmem [shape: f32[2,1,32], index: 13, kind: input, shape index: {}]   ;;  %s3160_s14 = inlined_call_operand.vmem [shape: f32[2,32,16], index: 14, kind: input, shape index: {}]   ;;  %s3161_s15 = inlined_call_operand.vmem [shape: f32[2,1,16], index: 15, kind: input, shape index: {}]   ;;  %s3162_s16 = inlined_call_operand.vmem [shape: f32[2,16,16], index: 16, kind: input, shape index: {}]   ;;  %s3163_s17 = inlined_call_operand.vmem [shape: f32[2,1,16], index: 17, kind: input, shape index: {}]   ;;  %s3164_s18 = inlined_call_operand.vmem [shape: bf16[16,512], index: 18, kind: input, shape index: {}]   ;;  %s3165_s19 = inlined_call_operand.vmem [shape: bf16[16,512], index: 19, kind: input, shape index: {}]   ;;  %s3166_s20 = inlined_call_operand.vmem [shape: f32[8,16,16], index: 20, kind: output, shape index: {0}]   ;;  %s3167_s21 = inlined_call_operand.vmem [shape: f32[2,16,2], index: 21, kind: output, shape index: {1}]  }
   0x1   :  { %3179 = sst [smem:[#allocation9_spill]] %s3146_s0 }
   0x2   :  { %3180 = sst [smem:[#allocation10_spill]] %s3147_s1 }
   0x3   :  { %3181 = sst [smem:[#allocation11_spill]] %s3148_s2 }
   0x4   :  { %3182 = sst [smem:[#allocation12_spill]] %s3149_s3 }
   0x5   :  { %3183 = sst [smem:[#allocation13_spill]] %s3150_s4 }
   0x6   :  { %3184 = sst [smem:[#allocation14_spill]] %s3151_s5 }
   0x7   :  { %3185 = sst [smem:[#allocation15_spill]] %s3156_s10 }
   0x8   :  { %3186 = sst [smem:[#allocation16_spill]] %s3157_s11 }
   0x9   :  { %3187 = sst [smem:[#allocation17_spill]] %s3166_s20 }
   0xa   :  { %3188 = sst [smem:[#allocation18_spill]] %s3167_s21 }
   0xb   :  { %s2556_s2 = smov 0   ;;  %s2558_s25 = smov 0  }
   0xc   :  { %s2560_s26 = smov 0   ;;  %s2562_s27 = smov 0  }
   0xd   :  { %s2564_s3 = smov 0  }
   0xe LB: > { %3189 = sst [smem:[#allocation6_spill]] %s2433_s26  ;;  %s51_s28 = sadd.s32 1, %s2437_s27  ;;  %s2441_s3 = sphi %s2564_s3, %s32_s3   ;;  %s2437_s27 = sphi %s2562_s27, %s3216_s27   ;;  %s2433_s26 = sphi %s2560_s26, %s3215_s26   ;;  %s2429_s25 = sphi %s2558_s25, %s3214_s25   ;;  %s2425_s2 = sphi %s2556_s2, %s3213_s2  }
   0xf   : > { %p53_p0 = scmp.ge.s32.totalorder %s51_s28, 2  ;;  %p455_p1 = scmp.ne.s32.totalorder %s2429_s25, %s2425_s2 }
  0x10   : > { %p456_p2 = scmp.eq.s32.totalorder %s2441_s3, 0  ;;  %s448_s4 = sadd.s32 1, %s2429_s25 }
  0x11   : > { %s3218_s28 = smov (%p53_p0, %s51_s28), 0  ;;  %p2140_p5 = scmp.ge.s32.totalorder %s2441_s3, 2 }
  0x12   : > { %3190 = sst [smem:[#allocation7_spill]] %s3218_s28  ;;  %p2587_p3 = por %p456_p2, %p455_p1 }
  0x13   : > { %s445_s0 = ssub.s32 %s2437_s27, %s3218_s28 }
  0x14   : > { %p446_p4 = scmp.eq.s32.totalorder %s445_s0, 0  ;;  %631 = sbr.rel (%p2140_p5) target bundleno = 37 (0x25), region = 88 }
  0x16   : > { %s2595_s30 = scalar_select %p446_p4, %s2429_s25, %s448_s4  }
  0x18   : > { %3192 = sst [smem:[#allocation8_spill]] %s2595_s30 }
  0x19   : > { %634 = sbr.rel (!%p2587_p3) target bundleno = 31 (0x1f), region = 92  ;;  %s636_s5 = sand.u32 (%p2587_p3), 1, %s2429_s25  }
  0x1a   : > { %s2248_s22 = sshll.u32 (%p2587_p3), %s2437_s27, 3  ;;  %s2141_s23 = sshll.u32 (%p2587_p3), %s636_s5, 4 }
  0x1b   : > { %s642_s21 = scalar_lea.vmem (%p2587_p3), %s3164_s18, %s2248_s22  ;;  %s638_s0 = scalar_lea.vmem (%p2587_p3), [#allocation4], %s2141_s23 }
  0x1c   : > { %v673_v0 = vld [vmem:[%s642_s21] sm:$0xff] (%p2587_p3)  ;;  %v675_v1 = vld [vmem:[%s642_s21 + $0x10] sm:$0xff] (%p2587_p3) }
  0x1d   : > { %674 = vst [vmem:[%s638_s0] sm:$0xff] (%p2587_p3), %v673_v0 }
  0x1e   : > { %676 = vst [vmem:[%s638_s0 + $0x8] sm:$0xff] %v675_v1 }
  0x1f PF: > { %682 = sbr.rel (!%p2587_p3) target bundleno = 37 (0x25), region = 130  ;;  %s684_s4 = sand.u32 (%p2587_p3), 1, %s2429_s25  }
  0x20   : > { %s2249_s28 = sshll.u32 (%p2587_p3), %s2437_s27, 3  ;;  %s2144_s30 = sshll.u32 (%p2587_p3), %s684_s4, 4 }
  0x21   : > { %s690_s26 = scalar_lea.vmem (%p2587_p3), %s3165_s19, %s2249_s28  ;;  %s686_s22 = scalar_lea.vmem (%p2587_p3), [#allocation5], %s2144_s30 }
  0x22   : > { %v721_v2 = vld [vmem:[%s690_s26] sm:$0xff] (%p2587_p3)  ;;  %v723_v3 = vld [vmem:[%s690_s26 + $0x10] sm:$0xff] (%p2587_p3) }
  0x23   : > { %722 = vst [vmem:[%s686_s22] sm:$0xff] (%p2587_p3), %v721_v2 }
  0x24   : > { %724 = vst [vmem:[%s686_s22 + $0x8] sm:$0xff] %v723_v3 }
  0x25 PF: > { %p2147_p6 = scmp.ge.s32.totalorder %s2441_s3, 1  ;;  %p729_p7 = scmp.lt.s32.totalorder %s2441_s3, 3 }
  0x27   : > { %p730_p8 = pnand %p2147_p6, %p729_p7 }
  0x28   : > { %s3193_s23 = sld [smem:[#allocation11_spill]] (!%p730_p8)  ;;  %s2445_s24 = smov (!%p730_p8), 1  }
  0x29   : > { %733 = sbr.rel (%p730_p8) target bundleno = 1785 (0x6f9), region = 168  ;;  %s3194_s10 = sld [smem:[#allocation15_spill]] (!%p730_p8) }
  0x2a   : > { %s3195_s26 = sld [smem:[#allocation9_spill]] (!%p730_p8) }
  0x2b   : > { %s3197_s5 = sld [smem:[#allocation10_spill]] (!%p730_p8) }
  0x2c   : > { %s3198_s20 = sld [smem:[#allocation12_spill]] (!%p730_p8) }
  0x2d   : > { %s3199_s11 = sld [smem:[#allocation16_spill]] (!%p730_p8) }
  0x2e   : > { %v879_v4 = vld [vmem:[%s3193_s23 + $0x10] sm:$0xff]  ;;  %v880_v5 = vld [vmem:[%s3193_s23 + $0x18] sm:$0xff]  ;;  %vm1116_vm0 = vcmask 1043456   ;;  %v877_v9 = vld [vmem:[%s3193_s23] sm:$0xff]  ;;  %vm895_vm1 = vcmask 261120   ;;  %vm1112_vm2 = vcmask 195584  }
  0x2f   : > { %v1097_v6 = vld [vmem:[%s3194_s10 + $0x10] sm:$0xff]  ;;  %v891_v7 = vpack.c.bf16 %v880_v5, %v879_v4  ;;  %v878_v10 = vld [vmem:[%s3193_s23 + $0x8] sm:$0xff]  ;;  %v1095_v11 = vld [vmem:[%s3194_s10] sm:$0xff]  ;;  %v2443_v36 = vmov 32.0   ;;  %s3200_s0 = sld [smem:[#allocation13_spill]] }
  0x30   : > { %v1108_v8 = vpack.c.bf16 %v1097_v6, %v1097_v6  ;;  %v1096_v12 = vld [vmem:[%s3194_s10 + $0x8] sm:$0xff]  ;;  %v890_v14 = vpack.c.bf16 %v878_v10, %v877_v9  ;;  %s3196_s28 = smov %s3195_s26  ;;  %v873_v15 = vld [vmem:[%s3195_s26] sm:$0xff]  ;;  %2321 = vrcp.f32 %v2443_v36  ;;  %v886_v4 = vld [vmem:[%s3152_s6 + $0x10] sm:$0xff]  ;;  %s3201_s21 = sld [smem:[#allocation14_spill]] }
  0x31   : > { %905 = vmatpush.bf16.msra.mxu0 %v891_v7  ;;  %v874_v16 = vld [vmem:[%s3196_s28 + $0x8] sm:$0xff]  ;;  %v1107_v17 = vpack.c.bf16 %v1096_v12, %v1095_v11  ;;  %v875_v18 = vld [vmem:[%s3197_s5] sm:$0xff]  ;;  %v887_v5 = vld [vmem:[%s3152_s6 + $0x18] sm:$0xff]  ;;  %s736_s26 = sand.u32 1, %s2425_s2   ;;  %s3202_s29 = sld [smem:[#allocation6_spill]] }
  0x32   : > { %v1118_v13 = vsel %vm1116_vm0, %v1108_v8, 0  ;;  %v876_v19 = vld [vmem:[%s3197_s5 + $0x8] sm:$0xff]  ;;  %v2648_v20 = vpack.c.bf16 %v874_v16, %v873_v15  ;;  %v2301_v22 = vld [vmem:[%s3198_s20] ss:$0 sm:$0xff]  ;;  %v1016_v7 = vpack.c.bf16 %v887_v5, %v886_v4  ;;  %s2870_s30 = sshll.u32 %s736_s26, 4  ;;  %s3205_s4 = sld [smem:[#allocation17_spill]] }
  0x33   : > { %1126 = vmatpush.bf16.msra.mxu3 %v1118_v13  ;;  %v2650_v21 = vpack.c.bf16 %v876_v19, %v875_v18  ;;  %v2302_v26 = vld [vmem:[%s3199_s11] ss:$0 sm:$0xff]  ;;  %v885_v8 = vld [vmem:[%s3152_s6 + $0x8] sm:$0xff]  ;;  %s2886_s22 = scalar_lea.vmem [#allocation4], %s2870_s30 }
  0x34   : > { %v884_v6 = vld [vmem:[%s3152_s6] sm:$0xff]  ;;  %1029 = vmatpush.bf16.msra.mxu1 %v1016_v7 }
  0x35   : > { %906 = vmatpush.bf16.msra.mxu0 %v890_v14  ;;  %v1015_v12 = vpack.c.bf16 %v885_v8, %v884_v6  ;;  %v2304_v19 = vld [vmem:[%s3200_s0] ss:$0 sm:$0xff] }
  0x36   : > { %v2322_v37 = vpop.eup %2321 }
  0x37   : > { %1127 = vmatpush.bf16.msra.mxu3 %v1107_v17  ;;  %v920_v38 = vmul.f32 32.0, %v2322_v37  ;;  %vm924_vm3 = vweird.f32 %v2322_v37  ;;  %s3177_s2 = sshll.u32 %s3202_s29, 2  ;;  %s3204_s1 = sshll.u32 %s3202_s29, 2 }
  0x38   : > { %2155 = vmatmul.msk.bf16.vlgmr.msra.gmra.mxu0 %vm895_vm1, %v2648_v20  ;;  %1030 = vmatpush.bf16.msra.mxu1 %v1015_v12  ;;  %p2907_p9 = scmp.lt.s32.totalorder %s3177_s2, 7  ;;  %p859_p10 = scmp.lt.s32.totalorder %s3202_s29, 1 }
  0x39   : > { %v921_v39 = vsub.f32 1.0, %v920_v38 }
  0x3a   : > { %2160 = vmatmul.msk.bf16.vlgmr.msra.gmra.mxu3 %vm1112_vm2, %v2650_v21  ;;  %s3220_s1 = smov (!%p2907_p9, %s3204_s1), 7  ;;  %s3222_s29 = smov (!%p859_p10, %s3202_s29), 1 }
  0x3b   : > { %v922_v40 = vmul.f32 %v2322_v37, %v921_v39  ;;  %s2250_s5 = sshll.u32 %s3220_s1, 4 }
  0x3c   : > { %s2974_s1 = scalar_lea.vmem %s3205_s4, %s2250_s5  ;;  %s2251_s4 = sshll.u32 %s3222_s29, 4 }
  0x3d   : > { %v923_v41 = vadd.f32 %v2322_v37, %v922_v40 }
  0x3f   : > { %v2666_v42 = vsel %vm924_vm3, %v2322_v37, %v923_v41 }
  0xb5   : > { %v908_v23 = vpop.f32.mrf.mxu0 }
  0xb6   : > { %v909_v24 = vadd.f32 %v2301_v22, %v908_v23 }
  0xb8   : > { %v913_v25 = vsel %vm895_vm1, %v909_v24, 0.0 }
  0xb9   : > { %914 = vadd.xlane.f32.xlu0 %v913_v25  ;;  %v2305_v25 = vld [vmem:[%s3201_s21] ss:$0 sm:$0xff] }
  0xbd   : > { %v1129_v27 = vpop.f32.mrf.mxu3  ;;  %v910_v29 = vpop.f32.mrf.mxu0 }
  0xbe   : > { %v1130_v28 = vadd.f32 %v2302_v26, %v1129_v27  ;;  %v911_v30 = vadd.f32 %v2301_v22, %v910_v29 }
  0xc0   : > { %v1134_v31 = vsel %vm895_vm1, %v1130_v28, 0.0  ;;  %v916_v32 = vsel %vm895_vm1, %v911_v30, 0.0 }
  0xc1   : > { %1135 = vadd.xlane.f32.xlu2 %v1134_v31  ;;  %917 = vadd.xlane.f32.xlu0 %v916_v32 }
  0xc5   : > { %v1131_v33 = vpop.f32.mrf.mxu3 }
  0xc6   : > { %v1132_v34 = vadd.f32 %v2302_v26, %v1131_v33 }
  0xc8   : > { %v1137_v35 = vsel %vm895_vm1, %v1132_v34, 0.0 }
  0xc9   : > { %1138 = vadd.xlane.f32.xlu2 %v1137_v35 }
 0x12c   : > { %v915_v43 = vpop.xlane.xlu0 %914 }
 0x12d   : > { %v926_v44 = vmul.f32 %v2666_v42, %v915_v43 }
 0x12f   : > { %v928_v45 = vsub.f32 %v909_v24, %v926_v44 }
 0x131   : > { %v930_v46 = vmul.f32 %v928_v45, %v928_v45 }
 0x133   : > { %v932_v48 = vsel %vm895_vm1, %v930_v46, 0.0 }
 0x134   : > { %v1136_v47 = vpop.xlane.xlu2 %1135  ;;  %933 = vadd.xlane.f32.xlu1 %v932_v48  ;;  %v918_v50 = vpop.xlane.xlu0 %917 }
 0x135   : > { %v1140_v49 = vmul.f32 %v1136_v47, %v2666_v42  ;;  %v927_v51 = vmul.f32 %v2666_v42, %v918_v50 }
 0x137   : > { %v2672_v52 = vsub.f32 %v1130_v28, %v1140_v49  ;;  %v929_v53 = vsub.f32 %v911_v30, %v927_v51 }
 0x139   : > { %v1144_v54 = vmul.f32 %v2672_v52, %v2672_v52  ;;  %v931_v55 = vmul.f32 %v929_v53, %v929_v53 }
 0x13b   : > { %v1146_v56 = vsel %vm895_vm1, %v1144_v54, 0.0  ;;  %v935_v58 = vsel %vm895_vm1, %v931_v55, 0.0 }
 0x13c   : > { %1147 = vadd.xlane.f32.xlu0 %v1146_v56  ;;  %v1139_v57 = vpop.xlane.xlu2 %1138  ;;  %936 = vadd.xlane.f32.xlu1 %v935_v58 }
 0x13d   : > { %v1141_v59 = vmul.f32 %v1139_v57, %v2666_v42 }
 0x13f   : > { %v2679_v60 = vsub.f32 %v1132_v34, %v1141_v59 }
 0x141   : > { %v1145_v61 = vmul.f32 %v2679_v60, %v2679_v60 }
 0x143   : > { %v1149_v62 = vsel %vm895_vm1, %v1145_v61, 0.0 }
 0x144   : > { %1150 = vadd.xlane.f32.xlu1 %v1149_v62 }
 0x1a7   : > { %v934_v63 = vpop.xlane.xlu1 %933 }
 0x1a8   : > { %v938_v0 = vmul.f32 %v934_v63, %v2666_v42 }
 0x1aa   : > { %v940_v1 = vadd.f32 1e-05, %v938_v0 }
 0x1ac   : > { %2323 = vrsqrt.f32 %v940_v1  ;;  %vm948_vm5 = vweird.f32 %v940_v1 }
 0x1af   : > { %v937_v2 = vpop.xlane.xlu1 %936  ;;  %v1148_v4 = vpop.xlane.xlu0 %1147 }
 0x1b0   : > { %v939_v3 = vmul.f32 %v937_v2, %v2666_v42  ;;  %v1152_v6 = vmul.f32 %v1148_v4, %v2666_v42 }
 0x1b2   : > { %v2324_v9 = vpop.eup %2323  ;;  %v941_v10 = vadd.f32 1e-05, %v939_v3  ;;  %v1154_v8 = vadd.f32 1e-05, %v1152_v6 }
 0x1b3   : > { %v943_v11 = vmul.f32 %v2324_v9, %v940_v1  ;;  %vm949_vm4 = vweird.f32 %v2324_v9 }
 0x1b4   : > { %2325 = vrsqrt.f32 %v941_v10  ;;  %vm950_vm6 = vmor %vm948_vm5, %vm949_vm4  ;;  %vm958_vm8 = vweird.f32 %v941_v10 }
 0x1b5   : > { %v944_v13 = vmul.f32 %v2324_v9, %v943_v11 }
 0x1b7   : > { %v945_v14 = vmul.f32 0.5, %v944_v13  ;;  %v1151_v3 = vpop.xlane.xlu1 %1150 }
 0x1b8   : > { %v1153_v5 = vmul.f32 %v1151_v3, %v2666_v42 }
 0x1b9   : > { %v946_v15 = vsub.f32 1.5, %v945_v14 }
 0x1ba   : > { %v2326_v16 = vpop.eup %2325  ;;  %v1155_v7 = vadd.f32 1e-05, %v1153_v5 }
 0x1bb   : > { %v947_v17 = vmul.f32 %v2324_v9, %v946_v15  ;;  %v953_v18 = vmul.f32 %v2326_v16, %v941_v10  ;;  %vm959_vm7 = vweird.f32 %v2326_v16 }
 0x1bc   : > { %vm960_vm9 = vmor %vm958_vm8, %vm959_vm7  ;;  %vm1172_vm5 = vweird.f32 %v1155_v7  ;;  %vm1162_vm7 = vweird.f32 %v1154_v8 }
 0x1bd   : > { %v951_v22 = vsel %vm950_vm6, %v2324_v9, %v947_v17  ;;  %v954_v23 = vmul.f32 %v2326_v16, %v953_v18 }
 0x1be   : > { %v962_v24 = vmul.f32 %v951_v22, %v928_v45 }
 0x1bf   : > { %v955_v26 = vmul.f32 0.5, %v954_v23 }
 0x1c0   : > { %v967_v27 = vmul.f32 %v2304_v19, %v962_v24 }
 0x1c1   : > { %v956_v28 = vsub.f32 1.5, %v955_v26  ;;  %v2303_v26 = vld [vmem:[%s3158_s12] ss:$0 sm:$0xff] }
 0x1c2   : > { %v972_v29 = vadd.f32 %v2305_v25, %v967_v27 }
 0x1c3   : > { %v957_v30 = vmul.f32 %v2326_v16, %v956_v28 }
 0x1c4   : > { %v2156_v31 = vmul.f32 -1.442695, %v972_v29 }
 0x1c5   : > { %v961_v32 = vsel %vm960_vm9, %v2326_v16, %v957_v30  ;;  %v2307_v30 = vld [vmem:[%s3159_s13] ss:$0 sm:$0xff] }
 0x1c6   : > { %v963_v33 = vmul.f32 %v961_v32, %v929_v53  ;;  %2327 = vpow2.f32 %v2156_v31 }
 0x1c8   : > { %v968_v34 = vmul.f32 %v2304_v19, %v963_v33  ;;  %v1038_v33 = vld [vmem:[%s3154_s8 + $0x8] sm:$0xff] }
 0x1ca   : > { %v973_v35 = vadd.f32 %v2305_v25, %v968_v34 }
 0x1cc   : > { %v2328_v36 = vpop.eup %2327  ;;  %v2157_v37 = vmul.f32 -1.442695, %v973_v35 }
 0x1cd   : > { %v980_v38 = vadd.f32 1.0, %v2328_v36  ;;  %v1103_v36 = vld [vmem:[%s3160_s14 + $0x10] sm:$0xff] }
 0x1ce   : > { %2329 = vpow2.f32 %v2157_v37  ;;  %v1104_v37 = vld [vmem:[%s3160_s14 + $0x18] sm:$0xff] }
 0x1cf   : > { %2331 = vrcp.f32 %v980_v38  ;;  %v993_v49 = vand.u32 2147483648, %v980_v38  ;;  %vm987_vm11 = vweird.f32 %v980_v38  ;;  %v991_v50 = vand.u32 2147483647, %v980_v38 }
 0x1d1   : > { %v994_v57 = vor.u32 1.1754944e-38, %v993_v49  ;;  %vm992_vm14 = vcmp.eq.f32.partialorder %v991_v50, 8.507059e+37  ;;  %v2167_v49 = vld [vmem:[%s3193_s23 + $0x20] sm:$0xff] }
 0x1d4   : > { %v2330_v39 = vpop.eup %2329 }
 0x1d5   : > { %v2332_v40 = vpop.eup %2331  ;;  %v981_v41 = vadd.f32 1.0, %v2330_v39  ;;  %v1230_v39 = vpack.c.bf16 %v1104_v37, %v1103_v36 }
 0x1d6   : > { %v983_v43 = vmul.f32 %v2332_v40, %v980_v38  ;;  %vm988_vm10 = vweird.f32 %v2332_v40  ;;  %v1101_v38 = vld [vmem:[%s3160_s14] sm:$0xff] }
 0x1d7   : > { %2333 = vrcp.f32 %v981_v41  ;;  %vm989_vm12 = vmor %vm987_vm11, %vm988_vm10  ;;  %v1008_v53 = vand.u32 2147483648, %v981_v41  ;;  %v1006_v56 = vand.u32 2147483647, %v981_v41  ;;  %vm1002_vm15 = vweird.f32 %v981_v41 }
 0x1d8   : > { %v984_v44 = vsub.f32 1.0, %v983_v43  ;;  %2335 = vrsqrt.f32 %v1155_v7  ;;  %vm1045_vm11 = vcmask 130048  }
 0x1d9   : > { %v1009_v61 = vor.u32 1.1754944e-38, %v1008_v53  ;;  %vm1007_vm4 = vcmp.eq.f32.partialorder %v1006_v56, 8.507059e+37  ;;  %2337 = vrsqrt.f32 %v1154_v8  ;;  %v2168_v53 = vld [vmem:[%s3193_s23 + $0x28] sm:$0xff] }
 0x1da   : > { %v985_v45 = vmul.f32 %v2332_v40, %v984_v44  ;;  %v1341_v56 = vpack.c.bf16 %v2168_v53, %v2167_v49 }
 0x1dc   : > { %v986_v47 = vadd.f32 %v2332_v40, %v985_v45 }
 0x1dd   : > { %v2334_v46 = vpop.eup %2333 }
 0x1de   : > { %v998_v48 = vmul.f32 %v2334_v46, %v981_v41  ;;  %v990_v54 = vsel %vm989_vm12, %v2332_v40, %v986_v47  ;;  %vm1003_vm13 = vweird.f32 %v2334_v46  ;;  %v2336_v9 = vpop.eup %2335  ;;  %v1102_v40 = vld [vmem:[%s3160_s14 + $0x8] sm:$0xff]  ;;  %v2169_v47 = vld [vmem:[%s3193_s23 + $0x30] sm:$0xff] }
 0x1df   : > { %v995_v59 = vsel %vm992_vm14, %v994_v57, %v990_v54  ;;  %vm1004_vm3 = vmor %vm1002_vm15, %vm1003_vm13  ;;  %v2338_v10 = vpop.eup %2337  ;;  %v1167_v11 = vmul.f32 %v2336_v9, %v1155_v7  ;;  %vm1173_vm6 = vweird.f32 %v2336_v9  ;;  %v1229_v41 = vpack.c.bf16 %v1102_v40, %v1101_v38  ;;  %v2311_v40 = vld [vmem:[%s3163_s17] ss:$0 sm:$0xff] }
 0x1e0   : > { %v999_v51 = vsub.f32 1.0, %v998_v48  ;;  %v1012_v0 = vmul.f32 %v995_v59, %v972_v29  ;;  %v1157_v12 = vmul.f32 %v2338_v10, %v1154_v8  ;;  %vm1163_vm8 = vweird.f32 %v2338_v10  ;;  %vm1174_vm9 = vmor %vm1172_vm5, %vm1173_vm6  ;;  %v2170_v48 = vld [vmem:[%s3193_s23 + $0x38] sm:$0xff]  ;;  %v2306_v59 = vld [vmem:[%s3153_s7] ss:$0 sm:$0xff] }
 0x1e1   : > { %v1168_v13 = vmul.f32 %v2336_v9, %v1167_v11  ;;  %vm1164_vm10 = vmor %vm1162_vm7, %vm1163_vm8  ;;  %vm1315_vm8 = vcmask 125952  }
 0x1e2   : > { %v1000_v55 = vmul.f32 %v2334_v46, %v999_v51  ;;  %v1158_v14 = vmul.f32 %v2338_v10, %v1157_v12  ;;  %v1342_v51 = vpack.c.bf16 %v2170_v48, %v2169_v47 }
 0x1e3   : > { %v1169_v15 = vmul.f32 0.5, %v1168_v13 }
 0x1e4   : > { %v1001_v58 = vadd.f32 %v2334_v46, %v1000_v55  ;;  %v1159_v16 = vmul.f32 0.5, %v1158_v14  ;;  %1352 = vmatpush.bf16.msrb.mxu1 %v1342_v51 }
 0x1e5   : > { %v1170_v17 = vsub.f32 1.5, %v1169_v15 }
 0x1e6   : > { %v1005_v62 = vsel %vm1004_vm3, %v2334_v46, %v1001_v58  ;;  %v1160_v18 = vsub.f32 1.5, %v1159_v16 }
 0x1e7   : > { %v1010_v63 = vsel %vm1007_vm4, %v1009_v61, %v1005_v62  ;;  %v1171_v19 = vmul.f32 %v2336_v9, %v1170_v17 }
 0x1e8   : > { %v1013_v1 = vmul.f32 %v1010_v63, %v973_v35  ;;  %v1161_v22 = vmul.f32 %v2338_v10, %v1160_v18  ;;  %1353 = vmatpush.bf16.msrb.mxu1 %v1341_v56 }
 0x1e9   : > { %v1175_v23 = vsel %vm1174_vm9, %v2336_v9, %v1171_v19  ;;  %v2189_v19 = vld [vmem:[%s3194_s10 + $0x28] sm:$0xff] }
 0x1ea   : > { %v1014_v2 = vpack.c.bf16 %v1013_v1, %v1012_v0  ;;  %v1165_v24 = vsel %vm1164_vm10, %v2338_v10, %v1161_v22  ;;  %v1177_v25 = vmul.f32 %v1175_v23, %v2679_v60  ;;  %v1037_v60 = vld [vmem:[%s3154_s8] sm:$0xff]  ;;  %v1554_v22 = vpack.c.bf16 %v2189_v19, %v2189_v19 }
 0x1eb   : > { %v1176_v27 = vmul.f32 %v1165_v24, %v2672_v52  ;;  %v1041_v34 = vpack.c.bf16 %v1038_v33, %v1037_v60  ;;  %v1251_v23 = vld [vmem:[%s3162_s16] sm:$0xff]  ;;  %v1252_v24 = vld [vmem:[%s3162_s16 + $0x8] sm:$0xff] }
 0x1ec   : > { %2158 = vmatmul.msk.bf16.vlgmr.msra.gmra.mxu1 %vm895_vm1, %v1014_v2  ;;  %v1182_v28 = vmul.f32 %v2303_v26, %v1177_v25  ;;  %v1559_v25 = vsel %vm1116_vm0, %v1554_v22, 0 }
 0x1ed   : > { %v1181_v29 = vmul.f32 %v2303_v26, %v1176_v27  ;;  %1056 = vmatpush.bf16.msra.mxu2 %v1041_v34  ;;  %v1255_v26 = vpack.c.bf16 %v1252_v24, %v1251_v23  ;;  %v2187_v27 = vld [vmem:[%s3194_s10 + $0x18] sm:$0xff] }
 0x1ee   : > { %v2715_v31 = vadd.f32 %v2307_v30, %v1182_v28  ;;  %v2188_v28 = vld [vmem:[%s3194_s10 + $0x20] sm:$0xff] }
 0x1ef   : > { %v2717_v32 = vadd.f32 %v2307_v30, %v1181_v29  ;;  %1269 = vmatpush.bf16.msrb.mxu0 %v1255_v26  ;;  %v1553_v29 = vpack.c.bf16 %v2188_v28, %v2187_v27 }
 0x1f0   : > { %v2162_v52 = vmul.f32 -1.442695, %v2715_v31 }
 0x1f1   : > { %v2161_v35 = vmul.f32 -1.442695, %v2717_v32  ;;  %1243 = vmatpush.bf16.msrb.mxu2 %v1230_v39 }
 0x1f2   : > { %2339 = vpow2.f32 %v2162_v52 }
 0x1f3   : > { %2341 = vpow2.f32 %v2161_v35  ;;  %1567 = vmatpush.bf16.msra.mxu0 %v1559_v25  ;;  %v2309_v35 = vld [vmem:[%s3161_s15] ss:$0 sm:$0xff] }
 0x1f5   : > { %1244 = vmatpush.bf16.msrb.mxu2 %v1229_v41 }
 0x1f7   : > { %1568 = vmatpush.bf16.msra.mxu0 %v1553_v29 }
 0x1f8   : > { %v2340_v43 = vpop.eup %2339 }
 0x1f9   : > { %v2342_v44 = vpop.eup %2341  ;;  %v1195_v45 = vadd.f32 1.0, %v2340_v43 }
 0x1fa   : > { %v1194_v46 = vadd.f32 1.0, %v2342_v44 }
 0x1fb   : > { %2343 = vrcp.f32 %v1195_v45  ;;  %v1222_v6 = vand.u32 2147483648, %v1195_v45  ;;  %vm1216_vm14 = vweird.f32 %v1195_v45  ;;  %v1220_v8 = vand.u32 2147483647, %v1195_v45 }
 0x1fc   : > { %2345 = vrcp.f32 %v1194_v46  ;;  %2179 = vmatmul.msk.bf16.vlgmr.msrb.gmra.mxu1 %vm895_vm1, %v2648_v20  ;;  %v1207_v9 = vand.u32 2147483648, %v1194_v46  ;;  %vm1201_vm3 = vweird.f32 %v1194_v46  ;;  %v1205_v20 = vand.u32 2147483647, %v1194_v46 }
 0x1fd   : > { %v1223_v11 = vor.u32 1.1754944e-38, %v1222_v6  ;;  %vm1221_vm5 = vcmp.eq.f32.partialorder %v1220_v8, 8.507059e+37 }
 0x1fe   : > { %v1208_v13 = vor.u32 1.1754944e-38, %v1207_v9  ;;  %vm1206_vm6 = vcmp.eq.f32.partialorder %v1205_v20, 8.507059e+37  ;;  %v2308_v9 = vld [vmem:[%s3155_s9] ss:$0 sm:$0xff] }
 0x201   : > { %v2344_v50 = vpop.eup %2343 }
 0x202   : > { %v2346_v54 = vpop.eup %2345  ;;  %v1212_v57 = vmul.f32 %v2344_v50, %v1195_v45  ;;  %vm1217_vm12 = vweird.f32 %v2344_v50  ;;  %v2312_v45 = vld [vmem:[%s3199_s11 + $0x1] ss:$0 sm:$0xff] }
 0x203   : > { %v1197_v58 = vmul.f32 %v2346_v54, %v1194_v46  ;;  %vm1202_vm13 = vweird.f32 %v2346_v54  ;;  %vm1218_vm15 = vmor %vm1216_vm14, %vm1217_vm12 }
 0x204   : > { %v1213_v61 = vsub.f32 1.0, %v1212_v57  ;;  %vm1203_vm4 = vmor %vm1201_vm3, %vm1202_vm13 }
 0x205   : > { %v1198_v62 = vsub.f32 1.0, %v1197_v58 }
 0x206   : > { %v1214_v2 = vmul.f32 %v2344_v50, %v1213_v61 }
 0x207   : > { %v1199_v4 = vmul.f32 %v2346_v54, %v1198_v62 }
 0x208   : > { %v1215_v5 = vadd.f32 %v2344_v50, %v1214_v2 }
 0x209   : > { %v1200_v7 = vadd.f32 %v2346_v54, %v1199_v4 }
 0x20a   : > { %v1219_v10 = vsel %vm1218_vm15, %v2344_v50, %v1215_v5 }
 0x20b   : > { %v1204_v12 = vsel %vm1203_vm4, %v2346_v54, %v1200_v7  ;;  %v1224_v14 = vsel %vm1221_vm5, %v1223_v11, %v1219_v10 }
 0x20c   : > { %v1209_v15 = vsel %vm1206_vm6, %v1208_v13, %v1204_v12  ;;  %v1227_v16 = vmul.f32 %v1224_v14, %v2715_v31 }
 0x20d   : > { %v1226_v17 = vmul.f32 %v1209_v15, %v2717_v32  ;;  %v2310_v32 = vld [vmem:[%s3198_s20 + $0x1] ss:$0 sm:$0xff] }
 0x20f   : > { %v1228_v18 = vpack.c.bf16 %v1227_v16, %v1226_v17 }
 0x269   : > { %v1032_v55 = vpop.f32.mrf.mxu1 }
 0x26a   : > { %v1033_v0 = vadd.f32 %v2306_v59, %v1032_v55 }
 0x271   : > { %v1034_v63 = vpop.f32.mrf.mxu1 }
 0x272   : > { %v1035_v1 = vadd.f32 %v2306_v59, %v1034_v63 }
 0x274   : > { %v1040_v3 = vpack.c.bf16 %v1035_v1, %v1033_v0 }
 0x276   : > { %2159 = vmatmul.msk.bf16.vlgmr.msra.gmra.mxu2 %vm1045_vm11, %v1040_v3 }
 0x279   : > { %v1355_v60 = vpop.f32.mrf.mxu1 }
 0x27a   : > { %v1356_v33 = vadd.f32 %v2310_v32, %v1355_v60 }
 0x27c   : > { %v1360_v34 = vsel %vm895_vm1, %v1356_v33, 0.0 }
 0x27d   : > { %1361 = vadd.xlane.f32.xlu1 %v1360_v34 }
 0x281   : > { %v1357_v48 = vpop.f32.mrf.mxu1 }
 0x286   : > { %2163 = vmatmul.msk.bf16.vlgmr.msrb.gmra.mxu2 %vm895_vm1, %v1228_v18 }
 0x2f0   : > { %v1362_v49 = vpop.xlane.xlu1 %1361 }
 0x2f1   : > { %v1366_v51 = vmul.f32 %v1362_v49, %v2666_v42 }
 0x2f3   : > { %v2798_v55 = vsub.f32 %v1356_v33, %v1366_v51  ;;  %v2858_v51 = vld [vmem:[%s3201_s21 + $0x1] ss:$0 sm:$0xff] }
 0x2f5   : > { %v1370_v58 = vmul.f32 %v2798_v55, %v2798_v55 }
 0x2f7   : > { %v1372_v59 = vsel %vm895_vm1, %v1370_v58, 0.0 }
 0x2f9   : > { %v1058_v30 = vpop.f32.mrf.mxu2 }
 0x2fa   : > { %v2825_v13 = vadd.f32 %v2308_v9, %v1058_v30 }
 0x2fc   : > { %v1063_v17 = vmul.f32 %v2825_v13, %v2825_v13 }
 0x2fe   : > { %v1065_v22 = vsel %vm1045_vm11, %v1063_v17, 0.0 }
 0x301   : > { %v2776_v31 = vpop.f32.mrf.mxu2 }
 0x302   : > { %v2834_v19 = vadd.f32 %v2308_v9, %v2776_v31  ;;  %v2253_v9 = vld [vmem:[%s2886_s22 + $0x4] sm:$0xf] }
 0x304   : > { %v1064_v26 = vmul.f32 %v2834_v19, %v2834_v19 }
 0x306   : > { %v1068_v27 = vsel %vm1045_vm11, %v1064_v26, 0.0 }
 0x309   : > { %v1246_v52 = vpop.f32.mrf.mxu2 }
 0x30a   : > { %v1247_v37 = vadd.f32 %v2309_v35, %v1246_v52 }
 0x311   : > { %v1248_v36 = vpop.f32.mrf.mxu2 }
 0x312   : > { %v1249_v38 = vadd.f32 %v2309_v35, %v1248_v36 }
 0x314   : > { %v1254_v39 = vpack.c.bf16 %v1249_v38, %v1247_v37 }
 0x316   : > { %2164 = vmatmul.msk.bf16.vlgmr.msrb.gmra.mxu0 %vm1045_vm11, %v1254_v39 }
 0x326   : > { %2198 = vmatmul.msk.bf16.vlgmr.msra.gmra.mxu0 %vm1112_vm2, %v2650_v21  ;;  %v1358_v21 = vadd.f32 %v2310_v32, %v1357_v48 }
 0x328   : > { %v1363_v56 = vsel %vm895_vm1, %v1358_v21, 0.0 }
 0x393   : > { %v1271_v41 = vpop.f32.mrf.mxu0 }
 0x394   : > { %v2791_v43 = vadd.f32 %v2311_v40, %v1271_v41 }
 0x396   : > { %v1276_v18 = vmul.f32 %v2791_v43, %v2791_v43 }
 0x398   : > { %v1278_v23 = vsel %vm1045_vm11, %v1276_v18, 0.0  ;;  %v2314_v18 = vld [vmem:[%s3158_s12 + $0x1] ss:$0 sm:$0xff] }
 0x39b   : > { %v1273_v44 = vpop.f32.mrf.mxu0 }
 0x39c   : > { %v1274_v61 = vadd.f32 %v2311_v40, %v1273_v44 }
 0x39e   : > { %v1277_v62 = vmul.f32 %v1274_v61, %v1274_v61 }
 0x3a0   : > { %v1281_v63 = vsel %vm1045_vm11, %v1277_v62, 0.0 }
 0x3a3   : > { %v1570_v46 = vpop.f32.mrf.mxu0 }
 0x3a4   : > { %v1571_v47 = vadd.f32 %v2312_v45, %v1570_v46  ;;  %v2850_v46 = vld [vmem:[%s3200_s0 + $0x1] ss:$0 sm:$0xff]  ;;  %s2992_s0 = scalar_lea.vmem [#allocation5], %s2870_s30 }
 0x3a6   : > { %v1575_v50 = vsel %vm895_vm1, %v1571_v47, 0.0 }
 0x3a7   : > { %1576 = vadd.xlane.f32.xlu2 %v1575_v50 }
 0x3ab   : > { %v1572_v53 = vpop.f32.mrf.mxu0 }
 0x3ac   : > { %v1573_v54 = vadd.f32 %v2312_v45, %v1572_v53 }
 0x3ae   : > { %v1578_v57 = vsel %vm895_vm1, %v1573_v54, 0.0 }
 0x3af   : > { %1579 = vadd.xlane.f32.xlu0 %v1578_v57  ;;  %1364 = vadd.xlane.f32.xlu2 %v1363_v56 }
 0x3b7   : > { %1373 = vadd.xlane.f32.xlu2 %v1372_v59 }
 0x3bf   : > { %1282 = vadd.xlane.f32.xlu2 %v1281_v63 }
 0x41a   : > { %v1577_v0 = vpop.xlane.xlu2 %1576 }
 0x41b   : > { %v1581_v1 = vmul.f32 %v1577_v0, %v2666_v42 }
 0x41d   : > { %v2807_v2 = vsub.f32 %v1571_v47, %v1581_v1 }
 0x41f   : > { %v1585_v3 = vmul.f32 %v2807_v2, %v2807_v2 }
 0x421   : > { %v1587_v4 = vsel %vm895_vm1, %v1585_v3, 0.0 }
 0x422   : > { %v1580_v5 = vpop.xlane.xlu0 %1579  ;;  %1588 = vadd.xlane.f32.xlu0 %v1587_v4  ;;  %v1365_v6 = vpop.xlane.xlu2 %1364 }
 0x423   : > { %v1582_v7 = vmul.f32 %v1580_v5, %v2666_v42  ;;  %v1367_v8 = vmul.f32 %v1365_v6, %v2666_v42 }
 0x425   : > { %v2817_v20 = vsub.f32 %v1573_v54, %v1582_v7  ;;  %v2819_v10 = vsub.f32 %v1358_v21, %v1367_v8  ;;  %v2195_v7 = vld [vmem:[%s3160_s14 + $0x30] sm:$0xff]  ;;  %v2196_v8 = vld [vmem:[%s3160_s14 + $0x38] sm:$0xff] }
 0x427   : > { %v1586_v11 = vmul.f32 %v2817_v20, %v2817_v20  ;;  %v1371_v12 = vmul.f32 %v2819_v10, %v2819_v10 }
 0x429   : > { %v1590_v14 = vsel %vm895_vm1, %v1586_v11, 0.0  ;;  %v1375_v15 = vsel %vm895_vm1, %v1371_v12, 0.0  ;;  %v1671_v12 = vpack.c.bf16 %v2196_v8, %v2195_v7 }
 0x42a   : > { %1591 = vadd.xlane.f32.xlu1 %v1590_v14  ;;  %1376 = vadd.xlane.f32.xlu0 %v1375_v15  ;;  %v1374_v16 = vpop.xlane.xlu2 %1373  ;;  %v2218_v14 = vld [vmem:[%s2886_s22 + $0x8] sm:$0xf0] }
 0x42b   : > { %v1378_v35 = vmul.f32 %v1374_v16, %v2666_v42  ;;  %1684 = vmatpush.bf16.msra.mxu1 %v1671_v12 }
 0x42d   : > { %v1380_v36 = vadd.f32 1e-05, %v1378_v35 }
 0x42f   : > { %vm1388_vm9 = vweird.f32 %v1380_v36 }
 0x432   : > { %1066 = vadd.xlane.f32.xlu0 %v1065_v22  ;;  %v1283_v24 = vpop.xlane.xlu2 %1282  ;;  %1279 = vadd.xlane.f32.xlu1 %v1278_v23  ;;  %v2221_v23 = vor.u32 %v2253_v9, %v2218_v14 }
 0x433   : > { %v1285_v25 = vmax.f32 %v1283_v24, 1e-24 }
 0x434   : > { %1806 = vmatpush.bf16.msrb.mxu0 %v2221_v23 }
 0x435   : > { %2347 = vrsqrt.f32 %v1285_v25  ;;  %vm1302_vm2 = vweird.f32 %v1285_v25 }
 0x436   : > { %2349 = vrsqrt.f32 %v1380_v36 }
 0x43a   : > { %1069 = vadd.xlane.f32.xlu1 %v1068_v27  ;;  %v2315_v27 = vld [vmem:[%s3159_s13 + $0x1] ss:$0 sm:$0xff] }
 0x43b   : > { %v2348_v28 = vpop.eup %2347 }
 0x43c   : > { %v1297_v29 = vmul.f32 %v2348_v28, %v1285_v25  ;;  %vm1303_vm0 = vweird.f32 %v2348_v28  ;;  %v2350_v37 = vpop.eup %2349 }
 0x43d   : > { %vm1304_vm7 = vmor %vm1302_vm2, %vm1303_vm0  ;;  %v1383_v38 = vmul.f32 %v2350_v37, %v1380_v36  ;;  %vm1389_vm10 = vweird.f32 %v2350_v37 }
 0x43e   : > { %v1298_v30 = vmul.f32 %v2348_v28, %v1297_v29  ;;  %vm1390_vm12 = vmor %vm1388_vm9, %vm1389_vm10 }
 0x43f   : > { %v1384_v39 = vmul.f32 %v2350_v37, %v1383_v38 }
 0x440   : > { %v1299_v31 = vmul.f32 0.5, %v1298_v30 }
 0x441   : > { %v1385_v40 = vmul.f32 0.5, %v1384_v39 }
 0x442   : > { %v1300_v32 = vsub.f32 1.5, %v1299_v31 }
 0x443   : > { %v1386_v41 = vsub.f32 1.5, %v1385_v40 }
 0x444   : > { %v1301_v60 = vmul.f32 %v2348_v28, %v1300_v32 }
 0x445   : > { %v1387_v44 = vmul.f32 %v2350_v37, %v1386_v41  ;;  %v2193_v41 = vld [vmem:[%s3160_s14 + $0x20] sm:$0xff] }
 0x446   : > { %v1305_v33 = vsel %vm1304_vm7, %v2348_v28, %v1301_v60 }
 0x447   : > { %v2841_v52 = vmul.f32 %v1305_v33, %v1274_v61  ;;  %v1391_v45 = vsel %vm1390_vm12, %v2350_v37, %v1387_v44  ;;  %v2194_v44 = vld [vmem:[%s3160_s14 + $0x28] sm:$0xff] }
 0x448   : > { %v1402_v47 = vmul.f32 %v1391_v45, %v2798_v55 }
 0x449   : > { %v1319_v34 = vpack.c.bf16 %v2841_v52, %v2841_v52  ;;  %2166 = vst.msk [vmem:[%s2974_s1 + $0x18] sm:$0xff] %vm1045_vm11, %v2841_v52 }
 0x44a   : > { %v1407_v21 = vmul.f32 %v2850_v46, %v1402_v47 }
 0x44b   : > { %1322 = vst.msk [vmem:[#allocation2 + $0xc] sm:$0xf] %vm1315_vm8, %v1319_v34 }
 0x44c   : > { %v2861_v56 = vadd.f32 %v2858_v51, %v1407_v21 }
 0x44e   : > { %v2180_v63 = vmul.f32 -1.442695, %v2861_v56 }
 0x495   : > { %v1589_v48 = vpop.xlane.xlu0 %1588 }
 0x496   : > { %v1593_v49 = vmul.f32 %v1589_v48, %v2666_v42  ;;  %v2176_v48 = vld [vmem:[%s3152_s6 + $0x30] sm:$0xff] }
 0x498   : > { %v1595_v50 = vadd.f32 1e-05, %v1593_v49  ;;  %v2177_v49 = vld [vmem:[%s3152_s6 + $0x38] sm:$0xff] }
 0x49a   : > { %2351 = vrsqrt.f32 %v1595_v50  ;;  %vm1603_vm14 = vweird.f32 %v1595_v50 }
 0x49d   : > { %v1592_v53 = vpop.xlane.xlu1 %1591  ;;  %v1377_v54 = vpop.xlane.xlu0 %1376 }
 0x49e   : > { %v1594_v57 = vmul.f32 %v1592_v53, %v2666_v42  ;;  %v1379_v55 = vmul.f32 %v1377_v54, %v2666_v42  ;;  %v1670_v54 = vpack.c.bf16 %v2194_v44, %v2193_v41 }
 0x4a0   : > { %v2352_v58 = vpop.eup %2351  ;;  %v2866_v59 = vadd.f32 1e-05, %v1594_v57  ;;  %v2868_v61 = vadd.f32 1e-05, %v1379_v55  ;;  %v2174_v57 = vld [vmem:[%s3152_s6 + $0x20] sm:$0xff]  ;;  %v2175_v55 = vld [vmem:[%s3152_s6 + $0x28] sm:$0xff]  ;;  %1685 = vmatpush.bf16.msra.mxu1 %v1670_v54 }
 0x4a1   : > { %v1598_v62 = vmul.f32 %v2352_v58, %v1595_v50  ;;  %vm1604_vm13 = vweird.f32 %v2352_v58 }
 0x4a2   : > { %2353 = vrsqrt.f32 %v2866_v59  ;;  %vm1605_vm15 = vmor %vm1603_vm14, %vm1604_vm13  ;;  %vm1613_vm3 = vweird.f32 %v2866_v59  ;;  %vm1398_vm6 = vweird.f32 %v2868_v61 }
 0x4a3   : > { %v1599_v0 = vmul.f32 %v2352_v58, %v1598_v62  ;;  %2355 = vrsqrt.f32 %v2868_v61 }
 0x4a4   : > { %2357 = vpow2.f32 %v2180_v63 }
 0x4a5   : > { %v1600_v1 = vmul.f32 0.5, %v1599_v0  ;;  %v1067_v3 = vpop.xlane.xlu0 %1066  ;;  %v1280_v42 = vpop.xlane.xlu1 %1279 }
 0x4a6   : > { %v2875_v4 = vmax.f32 %v1067_v3, 1e-24  ;;  %v2877_v5 = vmax.f32 %v1280_v42, 1e-24  ;;  %v1455_v42 = vpack.c.bf16 %v2175_v55, %v2174_v57 }
 0x4a7   : > { %v1601_v6 = vsub.f32 1.5, %v1600_v1 }
 0x4a8   : > { %v2354_v11 = vpop.eup %2353  ;;  %2359 = vrsqrt.f32 %v2875_v4  ;;  %vm1079_vm10 = vweird.f32 %v2875_v4  ;;  %vm1292_vm13 = vweird.f32 %v2877_v5 }
 0x4a9   : > { %v2356_v15 = vpop.eup %2355  ;;  %v1602_v16 = vmul.f32 %v2352_v58, %v1601_v6  ;;  %v1608_v17 = vmul.f32 %v2354_v11, %v2866_v59  ;;  %2361 = vrsqrt.f32 %v2877_v5  ;;  %vm1614_vm4 = vweird.f32 %v2354_v11 }
 0x4aa   : > { %v1393_v22 = vmul.f32 %v2356_v15, %v2868_v61  ;;  %v2358_v24 = vpop.eup %2357  ;;  %vm1399_vm5 = vweird.f32 %v2356_v15  ;;  %vm1615_vm0 = vmor %vm1613_vm3, %vm1614_vm4  ;;  %v1456_v61 = vpack.c.bf16 %v2177_v49, %v2176_v48 }
 0x4ab   : > { %v1606_v25 = vsel %vm1605_vm15, %v2352_v58, %v1602_v16  ;;  %v1609_v26 = vmul.f32 %v2354_v11, %v1608_v17  ;;  %v2913_v35 = vadd.f32 1.0, %v2358_v24  ;;  %vm1400_vm2 = vmor %vm1398_vm6, %vm1399_vm5 }
 0x4ac   : > { %v1617_v28 = vmul.f32 %v1606_v25, %v2807_v2  ;;  %v1394_v29 = vmul.f32 %v2356_v15, %v1393_v22  ;;  %1469 = vmatpush.bf16.msrb.mxu3 %v1456_v61 }
 0x4ad   : > { %v1610_v30 = vmul.f32 0.5, %v1609_v26  ;;  %v1070_v31 = vpop.xlane.xlu1 %1069  ;;  %v2257_v26 = vld [vmem:[%s2992_s0 + $0x4] sm:$0xf0]  ;;  %v1431_v57 = vand.u32 2147483647, %v2913_v35  ;;  %v1433_v61 = vand.u32 2147483648, %v2913_v35 }
 0x4ae   : > { %v2903_v32 = vpop.eup %2359  ;;  %v1622_v60 = vmul.f32 %v2314_v18, %v1617_v28  ;;  %v1395_v33 = vmul.f32 0.5, %v1394_v29  ;;  %v2911_v34 = vmax.f32 %v1070_v31, 1e-24 }
 0x4af   : > { %v2915_v36 = vpop.eup %2361  ;;  %v1611_v2 = vsub.f32 1.5, %v1610_v30  ;;  %v1074_v37 = vmul.f32 %v2903_v32, %v2875_v4  ;;  %vm1080_vm7 = vweird.f32 %v2903_v32 }
 0x4b0   : > { %v2920_v38 = vadd.f32 %v2315_v27, %v1622_v60  ;;  %v1396_v39 = vsub.f32 1.5, %v1395_v33  ;;  %v1287_v40 = vmul.f32 %v2915_v36, %v2877_v5  ;;  %2363 = vrsqrt.f32 %v2911_v34  ;;  %vm1081_vm12 = vmor %vm1079_vm10, %vm1080_vm7  ;;  %1470 = vmatpush.bf16.msrb.mxu3 %v1455_v42 }
 0x4b1   : > { %v1612_v45 = vmul.f32 %v2354_v11, %v1611_v2  ;;  %v1075_v47 = vmul.f32 %v2903_v32, %v1074_v37  ;;  %vm1293_vm9 = vweird.f32 %v2915_v36  ;;  %vm1089_vm3 = vweird.f32 %v2911_v34 }
 0x4b2   : > { %v2199_v50 = vmul.f32 -1.442695, %v2920_v38  ;;  %v1397_v21 = vmul.f32 %v2356_v15, %v1396_v39  ;;  %v1288_v53 = vmul.f32 %v2915_v36, %v1287_v40  ;;  %vm1294_vm14 = vmor %vm1292_vm13, %vm1293_vm9 }
 0x4b3   : > { %v1616_v58 = vsel %vm1615_vm0, %v2354_v11, %v1612_v45  ;;  %v1076_v59 = vmul.f32 0.5, %v1075_v47  ;;  %vm1427_vm0 = vweird.f32 %v2913_v35 }
 0x4b4   : > { %2365 = vpow2.f32 %v2199_v50  ;;  %v1618_v62 = vmul.f32 %v1616_v58, %v2817_v20  ;;  %v1401_v63 = vsel %vm1400_vm2, %v2356_v15, %v1397_v21  ;;  %v1289_v0 = vmul.f32 0.5, %v1288_v53 }
 0x4b5   : > { %v1403_v1 = vmul.f32 %v1401_v63, %v2819_v10  ;;  %v1077_v3 = vsub.f32 1.5, %v1076_v59  ;;  %2367 = vrcp.f32 %v2913_v35 }
 0x4b6   : > { %v1623_v6 = vmul.f32 %v2314_v18, %v1618_v62  ;;  %v1290_v7 = vsub.f32 1.5, %v1289_v0  ;;  %v2364_v8 = vpop.eup %2363 }
 0x4b7   : > { %v1408_v20 = vmul.f32 %v2850_v46, %v1403_v1  ;;  %v1078_v9 = vmul.f32 %v2903_v32, %v1077_v3  ;;  %v1084_v12 = vmul.f32 %v2364_v8, %v2911_v34  ;;  %vm1090_vm15 = vweird.f32 %v2364_v8 }
 0x4b8   : > { %v2966_v10 = vadd.f32 %v2315_v27, %v1623_v6  ;;  %v1291_v11 = vmul.f32 %v2915_v36, %v1290_v7  ;;  %vm1091_vm4 = vmor %vm1089_vm3, %vm1090_vm15 }
 0x4b9   : > { %v1082_v46 = vsel %vm1081_vm12, %v2903_v32, %v1078_v9  ;;  %v2978_v4 = vadd.f32 %v2858_v51, %v1408_v20  ;;  %v1085_v17 = vmul.f32 %v2364_v8, %v1084_v12  ;;  %v1434_v9 = vor.u32 1.1754944e-38, %v1433_v61 }
 0x4ba   : > { %v2366_v14 = vpop.eup %2365  ;;  %v2200_v15 = vmul.f32 -1.442695, %v2966_v10  ;;  %v1093_v5 = vmul.f32 %v1082_v46, %v2825_v13  ;;  %v1295_v16 = vsel %vm1294_vm14, %v2915_v36, %v1291_v11  ;;  %v2230_v13 = vld [vmem:[%s2992_s0] sm:$0xf]  ;;  %vm1432_vm14 = vcmp.eq.f32.partialorder %v1431_v57, 8.507059e+37 }
 0x4bb   : > { %v2983_v18 = vadd.f32 1.0, %v2366_v14  ;;  %v1306_v22 = vmul.f32 %v1295_v16, %v2791_v43  ;;  %v2181_v23 = vmul.f32 -1.442695, %v2978_v4  ;;  %v2987_v24 = vpop.eup %2367  ;;  %v1086_v25 = vmul.f32 0.5, %v1085_v17 }
 0x4bc   : > { %2369 = vpow2.f32 %v2200_v15  ;;  %1308 = vst.msk [vmem:[%s2974_s1] sm:$0xff] %vm1045_vm11, %v1093_v5  ;;  %v1313_v51 = vpack.c.bf16 %v1093_v5, %v1093_v5  ;;  %v2231_v28 = vor.u32 %v2257_v26, %v2230_v13  ;;  %v1423_v29 = vmul.f32 %v2987_v24, %v2913_v35 }
 0x4bd   : > { %2371 = vrcp.f32 %v2983_v18  ;;  %2165 = vst.msk [vmem:[%s2974_s1 + $0x10] sm:$0xff] %vm1045_vm11, %v1306_v22  ;;  %v1318_v43 = vpack.c.bf16 %v1306_v22, %v1306_v22  ;;  %v1087_v27 = vsub.f32 1.5, %v1086_v25  ;;  %vm1428_vm5 = vweird.f32 %v2987_v24 }
 0x4be   : > { %1316 = vst.msk [vmem:[#allocation2] sm:$0xf] %vm1315_vm8, %v1313_v51  ;;  %2373 = vpow2.f32 %v2181_v23  ;;  %1847 = vmatpush.bf16.msrb.mxu1 %v2231_v28  ;;  %v1424_v2 = vsub.f32 1.0, %v1423_v29  ;;  %v1646_v52 = vand.u32 2147483647, %v2983_v18  ;;  %v1648_v21 = vand.u32 2147483648, %v2983_v18 }
 0x4bf   : > { %1321 = vst.msk [vmem:[#allocation2 + $0x8] sm:$0xf] %vm1315_vm8, %v1318_v43  ;;  %v1088_v30 = vmul.f32 %v2364_v8, %v1087_v27  ;;  %vm1642_vm2 = vweird.f32 %v2983_v18  ;;  %v2232_v43 = vld [vmem:[%s2992_s0 + $0x8] sm:$0xf0]  ;;  %v2183_v28 = vld [vmem:[%s3154_s8 + $0x10] sm:$0xff] }
 0x4c0   : > { %v1425_v44 = vmul.f32 %v2987_v24, %v1424_v2  ;;  %vm1647_vm10 = vcmp.eq.f32.partialorder %v1646_v52, 8.507059e+37  ;;  %v1649_v7 = vor.u32 1.1754944e-38, %v1648_v21  ;;  %v2184_v29 = vld [vmem:[%s3154_s8 + $0x18] sm:$0xff] }
 0x4c1   : > { %v1092_v32 = vsel %vm1091_vm4, %v2364_v8, %v1088_v30  ;;  %v1483_v30 = vpack.c.bf16 %v2184_v29, %v2183_v28 }
 0x4c2   : > { %v2370_v31 = vpop.eup %2369  ;;  %v1094_v36 = vmul.f32 %v1092_v32, %v2834_v19  ;;  %v1426_v47 = vadd.f32 %v2987_v24, %v1425_v44  ;;  %v2254_v32 = vld [vmem:[%s2886_s22 + $0x4] sm:$0xf0] }
 0x4c3   : > { %v2372_v60 = vpop.eup %2371  ;;  %v1636_v33 = vadd.f32 1.0, %v2370_v31  ;;  %1497 = vmatpush.bf16.msra.mxu2 %v1483_v30  ;;  %v2216_v31 = vld [vmem:[%s2886_s22] sm:$0xf] }
 0x4c4   : > { %v2374_v37 = vpop.eup %2373  ;;  %v1638_v39 = vmul.f32 %v2372_v60, %v2983_v18  ;;  %1309 = vst.msk [vmem:[%s2974_s1 + $0x8] sm:$0xff] %vm1045_vm11, %v1094_v36  ;;  %v1314_v40 = vpack.c.bf16 %v1094_v36, %v1094_v36  ;;  %vm1643_vm6 = vweird.f32 %v2372_v60  ;;  %v2317_v36 = vld [vmem:[%s3161_s15 + $0x1] ss:$0 sm:$0xff] }
 0x4c5   : > { %2375 = vrcp.f32 %v1636_v33  ;;  %v1421_v41 = vadd.f32 1.0, %v2374_v37  ;;  %vm3030_vm7 = vmor %vm1642_vm2, %vm1643_vm6  ;;  %v1661_v63 = vand.u32 2147483647, %v1636_v33  ;;  %v1663_v0 = vand.u32 2147483648, %v1636_v33 }
 0x4c6   : > { %v1639_v34 = vsub.f32 1.0, %v1638_v39  ;;  %1317 = vst.msk [vmem:[#allocation2 + $0x4] sm:$0xf] %vm1315_vm8, %v1314_v40  ;;  %vm3020_vm8 = vmor %vm1427_vm0, %vm1428_vm5  ;;  %vm1657_vm12 = vweird.f32 %v1636_v33  ;;  %v2255_v26 = vld [vmem:[#allocation2 + $0x8] sm:$0xff] }
 0x4c7   : > { %2377 = vrcp.f32 %v1421_v41  ;;  %v1430_v59 = vsel %vm3020_vm8, %v2987_v24, %v1426_v47  ;;  %v1448_v6 = vand.u32 2147483648, %v1421_v41  ;;  %v1446_v8 = vand.u32 2147483647, %v1421_v41 }
 0x4c8   : > { %v1640_v45 = vmul.f32 %v2372_v60, %v1639_v34  ;;  %v1664_v12 = vor.u32 1.1754944e-38, %v1663_v0  ;;  %vm1442_vm3 = vweird.f32 %v1421_v41  ;;  %vm1662_vm4 = vcmp.eq.f32.partialorder %v1661_v63, 8.507059e+37  ;;  %v2318_v34 = vld [vmem:[%s3153_s7 + $0x1] ss:$0 sm:$0xff] }
 0x4c9   : > { %v1435_v15 = vsel %vm1432_vm14, %v1434_v9, %v1430_v59  ;;  %v1449_v5 = vor.u32 1.1754944e-38, %v1448_v6  ;;  %vm1447_vm6 = vcmp.eq.f32.partialorder %v1446_v8, 8.507059e+37 }
 0x4ca   : > { %v1641_v48 = vadd.f32 %v2372_v60, %v1640_v45  ;;  %v1452_v24 = vmul.f32 %v1435_v15, %v2861_v56  ;;  %v2203_v56 = vld [vmem:[%s3162_s16 + $0x18] sm:$0xff] }
 0x4cb   : > { %v2376_v19 = vpop.eup %2375 }
 0x4cc   : > { %v1653_v49 = vmul.f32 %v2376_v19, %v1636_v33  ;;  %v1645_v3 = vsel %vm3030_vm7, %v2372_v60, %v1641_v48  ;;  %vm1658_vm9 = vweird.f32 %v2376_v19  ;;  %v2217_v33 = vor.u32 %v2254_v32, %v2216_v31 }
 0x4cd   : > { %v2378_v50 = vpop.eup %2377  ;;  %v3018_v53 = vld [vmem:[#allocation2] sm:$0xff]  ;;  %v1650_v11 = vsel %vm1647_vm10, %v1649_v7, %v1645_v3  ;;  %vm1659_vm15 = vmor %vm1657_vm12, %vm1658_vm9 }
 0x4ce   : > { %v1438_v55 = vmul.f32 %v2378_v50, %v1421_v41  ;;  %v1654_v58 = vsub.f32 1.0, %v1653_v49  ;;  %2223 = vmatmul.msk.bf16.vlgmr.msrb.gmra.mxu0 %vm1045_vm11, %v3018_v53  ;;  %vm1443_vm13 = vweird.f32 %v2378_v50  ;;  %v1667_v18 = vmul.f32 %v1650_v11, %v2920_v38  ;;  %v2202_v38 = vld [vmem:[%s3162_s16 + $0x10] sm:$0xff]  ;;  %1792 = vmatpush.bf16.msrb.mxu2 %v2217_v33 }
 0x4cf   : > { %vm1444_vm5 = vmor %vm1442_vm3, %vm1443_vm13 }
 0x4d0   : > { %v1439_v1 = vsub.f32 1.0, %v1438_v55  ;;  %v1655_v42 = vmul.f32 %v2376_v19, %v1654_v58  ;;  %v2319_v55 = vld [vmem:[%s3163_s17 + $0x1] ss:$0 sm:$0xff] }
 0x4d2   : > { %v1440_v35 = vmul.f32 %v2378_v50, %v1439_v1  ;;  %v1656_v20 = vadd.f32 %v2376_v19, %v1655_v42 }
 0x4d4   : > { %v1441_v46 = vadd.f32 %v2378_v50, %v1440_v35  ;;  %v1660_v14 = vsel %vm1659_vm15, %v2376_v19, %v1656_v20 }
 0x4d5   : > { %v1665_v16 = vsel %vm1662_vm4, %v1664_v12, %v1660_v14 }
 0x4d6   : > { %v1445_v17 = vsel %vm1444_vm5, %v2378_v50, %v1441_v46  ;;  %v1668_v22 = vmul.f32 %v1665_v16, %v2966_v10  ;;  %v1698_v10 = vpack.c.bf16 %v2203_v56, %v2202_v38  ;;  %v2320_v50 = vld [vmem:[%s3155_s9 + $0x1] ss:$0 sm:$0xff]  ;;  %vm1939_vm5 = vcmask 15368  }
 0x4d7   : > { %v1450_v23 = vsel %vm1447_vm6, %v1449_v5, %v1445_v17 }
 0x4d8   : > { %v1453_v51 = vmul.f32 %v1450_v23, %v2978_v4  ;;  %v1669_v25 = vpack.c.bf16 %v1668_v22, %v1667_v18  ;;  %1712 = vmatpush.bf16.msra.mxu3 %v1698_v10  ;;  %v2256_v4 = vld [vmem:[%s2992_s0 + $0x4] sm:$0xf]  ;;  %s3210_s0 = sld [smem:[#allocation18_spill]] }
 0x4d9   : > { %v2235_v27 = vor.u32 %v2256_v4, %v2232_v43 }
 0x4da   : > { %v1454_v13 = vpack.c.bf16 %v1453_v51, %v1452_v24  ;;  %2201 = vmatmul.msk.bf16.vlgmr.msra.gmra.mxu1 %vm895_vm1, %v1669_v25 }
 0x4dc   : > { %2182 = vmatmul.msk.bf16.vlgmr.msrb.gmra.mxu3 %vm895_vm1, %v1454_v13  ;;  %vm1757_vm1 = vcmask 7168  }
 0x4dd   : > { %1861 = vmatpush.bf16.msrb.mxu3 %v2235_v27 }
 0x4de   : > { %s3113_s10 = scalar_lea.vmem %s3210_s0, %s2251_s4 }
 0x4ea   : > { %2236 = vmatmul.msk.bf16.vlgmr.msrb.gmra.mxu1 %vm1045_vm11, %v2255_v26 }
 0x54b   : > { %v1808_v20 = vpop.f32.mrf.mxu0 }
 0x54c   : > { %v1814_v15 = vmul.f32 14.285714, %v1808_v20 }
 0x54e   : > { %v2239_v51 = vadd.f32 -14.285714, %v1814_v15 }
 0x550   : > { %v1880_v10 = vmul.f32 1.442695, %v2239_v51 }
 0x557   : > { %v1687_v60 = vpop.f32.mrf.mxu1 }
 0x558   : > { %v1688_v39 = vadd.f32 %v2317_v36, %v1687_v60 }
 0x55f   : > { %v1472_v2 = vpop.f32.mrf.mxu3  ;;  %v1689_v37 = vpop.f32.mrf.mxu1 }
 0x560   : > { %v1690_v40 = vadd.f32 %v2317_v36, %v1689_v37  ;;  %v1473_v45 = vadd.f32 %v2318_v34, %v1472_v2 }
 0x562   : > { %v1697_v41 = vpack.c.bf16 %v1690_v40, %v1688_v39 }
 0x564   : > { %2205 = vmatmul.msk.bf16.vlgmr.msra.gmra.mxu3 %vm1045_vm11, %v1697_v41 }
 0x567   : > { %v1474_v44 = vpop.f32.mrf.mxu3  ;;  %v1849_v49 = vpop.f32.mrf.mxu1 }
 0x568   : > { %v1475_v19 = vadd.f32 %v2318_v34, %v1474_v44  ;;  %v1868_v57 = vmul.f32 14.285714, %v1849_v49 }
 0x56a   : > { %v1482_v47 = vpack.c.bf16 %v1475_v19, %v1473_v45  ;;  %v2242_v61 = vadd.f32 -14.285714, %v1868_v57  ;;  %v2444_v19 = vmov 0.0  }
 0x56b   : > { %1760 = vst.msk [vmem:[#allocation3 + $0x10] sm:$0xff] %vm1757_vm1, %v2444_v19 }
 0x56c   : > { %2186 = vmatmul.msk.bf16.vlgmr.msra.gmra.mxu2 %vm1045_vm11, %v1482_v47  ;;  %v1904_v42 = vmul.f32 1.442695, %v2242_v61  ;;  %1758 = vst.msk [vmem:[#allocation3] sm:$0xff] %vm1757_vm1, %v2444_v19 }
 0x56d   : > { %1759 = vst.msk [vmem:[#allocation3 + $0x8] sm:$0xff] %vm1757_vm1, %v2444_v19 }
 0x56e   : > { %2379 = vpow2.f32 %v1904_v42  ;;  %1761 = vst.msk [vmem:[#allocation3 + $0x18] sm:$0xff] %vm1757_vm1, %v2444_v19 }
 0x56f   : > { %v1851_v62 = vpop.f32.mrf.mxu1 }
 0x570   : > { %v1870_v6 = vmul.f32 14.285714, %v1851_v62 }
 0x572   : > { %v2244_v9 = vadd.f32 -14.285714, %v1870_v6 }
 0x574   : > { %2237 = vmatmul.msk.bf16.vlgmr.msrb.gmra.mxu3 %vm1045_vm11, %v2255_v26  ;;  %v1908_v5 = vmul.f32 1.442695, %v2244_v9  ;;  %v2380_v17 = vpop.eup %2379  ;;  %v1810_v26 = vpop.f32.mrf.mxu0 }
 0x575   : > { %v1816_v43 = vmul.f32 14.285714, %v1810_v26  ;;  %v1899_v6 = vld [vmem:[#allocation3 + $0x18] sm:$0xff] }
 0x577   : > { %v2241_v32 = vadd.f32 -14.285714, %v1816_v43 }
 0x579   : > { %v1884_v2 = vmul.f32 1.442695, %v2241_v32 }
 0x57c   : > { %2222 = vmatmul.msk.bf16.vlgmr.msrb.gmra.mxu2 %vm1045_vm11, %v3018_v53 }
 0x5e7   : > { %v1714_v48 = vpop.f32.mrf.mxu3 }
 0x5e8   : > { %v3093_v60 = vadd.f32 %v2319_v55, %v1714_v48 }
 0x5ea   : > { %v1719_v37 = vmul.f32 %v3093_v60, %v3093_v60 }
 0x5ec   : > { %v1721_v41 = vsel %vm1045_vm11, %v1719_v37, 0.0 }
 0x5ef   : > { %v1499_v52 = vpop.f32.mrf.mxu2  ;;  %v1716_v21 = vpop.f32.mrf.mxu3 }
 0x5f0   : > { %v3075_v54 = vadd.f32 %v2320_v50, %v1499_v52  ;;  %v3082_v59 = vadd.f32 %v2319_v55, %v1716_v21 }
 0x5f2   : > { %v1504_v58 = vmul.f32 %v3075_v54, %v3075_v54  ;;  %v1720_v3 = vmul.f32 %v3082_v59, %v3082_v59 }
 0x5f4   : > { %v1506_v53 = vsel %vm1045_vm11, %v1504_v58, 0.0  ;;  %v1724_v8 = vsel %vm1045_vm11, %v1720_v3, 0.0 }
 0x5f5   : > { %1507 = vadd.xlane.f32.xlu1 %v1506_v53  ;;  %v1898_v53 = vld [vmem:[#allocation3 + $0x10] sm:$0xff] }
 0x5f7   : > { %v1501_v63 = vpop.f32.mrf.mxu2  ;;  %v1863_v0 = vpop.f32.mrf.mxu3 }
 0x5f8   : > { %v1869_v1 = vmul.f32 14.285714, %v1863_v0  ;;  %v3088_v25 = vadd.f32 %v2320_v50, %v1501_v63 }
 0x5fa   : > { %v2243_v7 = vadd.f32 -14.285714, %v1869_v1  ;;  %v1505_v4 = vmul.f32 %v3088_v25, %v3088_v25 }
 0x5fc   : > { %v1906_v35 = vmul.f32 1.442695, %v2243_v7  ;;  %v1509_v30 = vsel %vm1045_vm11, %v1505_v4, 0.0 }
 0x5fd   : > { %1725 = vadd.xlane.f32.xlu1 %v1724_v8 }
 0x5fe   : > { %2381 = vpow2.f32 %v1906_v35 }
 0x5ff   : > { %v1794_v11 = vpop.f32.mrf.mxu2  ;;  %v1865_v12 = vpop.f32.mrf.mxu3  ;;  %2383 = vpow2.f32 %v1908_v5 }
 0x600   : > { %v1813_v46 = vmul.f32 14.285714, %v1794_v11  ;;  %v1871_v14 = vmul.f32 14.285714, %v1865_v12 }
 0x602   : > { %v2245_v16 = vadd.f32 -14.285714, %v1871_v14  ;;  %v2238_v22 = vadd.f32 -14.285714, %v1813_v46 }
 0x604   : > { %v2382_v18 = vpop.eup %2381  ;;  %v1910_v23 = vmul.f32 1.442695, %v2245_v16  ;;  %v1878_v38 = vmul.f32 1.442695, %v2238_v22 }
 0x605   : > { %v1912_v24 = vadd.f32 %v2382_v18, %v2380_v17  ;;  %v2384_v27 = vpop.eup %2383 }
 0x606   : > { %2385 = vpow2.f32 %v1910_v23 }
 0x607   : > { %v1796_v13 = vpop.f32.mrf.mxu2  ;;  %1913 = vadd.xlane.f32.xlu2 %v1912_v24  ;;  %2387 = vpow2.f32 %v1878_v38 }
 0x608   : > { %v1815_v56 = vmul.f32 14.285714, %v1796_v13  ;;  %2389 = vpow2.f32 %v1880_v10  ;;  %v1873_v13 = vld [vmem:[#allocation3 + $0x8] sm:$0xff] }
 0x60a   : > { %v2240_v29 = vadd.f32 -14.285714, %v1815_v56 }
 0x60c   : > { %v2386_v28 = vpop.eup %2385  ;;  %v1882_v33 = vmul.f32 1.442695, %v2240_v29 }
 0x60d   : > { %v1915_v31 = vadd.f32 %v2386_v28, %v2384_v27  ;;  %v2388_v36 = vpop.eup %2387 }
 0x60e   : > { %v2390_v39 = vpop.eup %2389  ;;  %2391 = vpow2.f32 %v1882_v33 }
 0x60f   : > { %1510 = vadd.xlane.f32.xlu2 %v1509_v30  ;;  %1916 = vadd.xlane.f32.xlu0 %v1915_v31  ;;  %v1886_v40 = vadd.f32 %v2390_v39, %v2388_v36  ;;  %2393 = vpow2.f32 %v1884_v2 }
 0x614   : > { %v2392_v34 = vpop.eup %2391 }
 0x615   : > { %v2394_v44 = vpop.eup %2393 }
 0x616   : > { %v1889_v45 = vadd.f32 %v2394_v44, %v2392_v34 }
 0x617   : > { %1887 = vadd.xlane.f32.xlu2 %v1886_v40  ;;  %1722 = vadd.xlane.f32.xlu0 %v1721_v41 }
 0x61f   : > { %1890 = vadd.xlane.f32.xlu0 %v1889_v45 }
 0x668   : > { %v1508_v47 = vpop.xlane.xlu1 %1507 }
 0x669   : > { %v1512_v48 = vmax.f32 %v1508_v47, 1e-24 }
 0x66b   : > { %2395 = vrsqrt.f32 %v1512_v48  ;;  %vm1520_vm8 = vweird.f32 %v1512_v48 }
 0x670   : > { %v1726_v50 = vpop.xlane.xlu1 %1725 }
 0x671   : > { %v2396_v49 = vpop.eup %2395  ;;  %v1728_v57 = vmax.f32 %v1726_v50, 1e-24 }
 0x672   : > { %v1515_v52 = vmul.f32 %v2396_v49, %v1512_v48  ;;  %vm1521_vm0 = vweird.f32 %v2396_v49 }
 0x673   : > { %2397 = vrsqrt.f32 %v1728_v57  ;;  %vm1522_vm2 = vmor %vm1520_vm8, %vm1521_vm0  ;;  %vm1745_vm10 = vweird.f32 %v1728_v57 }
 0x674   : > { %v1516_v21 = vmul.f32 %v2396_v49, %v1515_v52 }
 0x676   : > { %v1517_v55 = vmul.f32 0.5, %v1516_v21 }
 0x678   : > { %v1518_v58 = vsub.f32 1.5, %v1517_v55 }
 0x679   : > { %v2398_v3 = vpop.eup %2397 }
 0x67a   : > { %v1519_v61 = vmul.f32 %v2396_v49, %v1518_v58  ;;  %v1914_v62 = vpop.xlane.xlu2 %1913  ;;  %v1740_v42 = vmul.f32 %v2398_v3, %v1728_v57  ;;  %vm1746_vm7 = vweird.f32 %v2398_v3 }
 0x67b   : > { %v1918_v63 = vadd.f32 %v1914_v62, %v1898_v53  ;;  %vm1747_vm12 = vmor %vm1745_vm10, %vm1746_vm7 }
 0x67c   : > { %v1523_v0 = vsel %vm1522_vm2, %v2396_v49, %v1519_v61  ;;  %v1741_v11 = vmul.f32 %v2398_v3, %v1740_v42 }
 0x67d   : > { %v1534_v1 = vmul.f32 %v1523_v0, %v3075_v54  ;;  %1920 = vst.msk [vmem:[#allocation3 + $0x10] sm:$0xff] %vm1757_vm1, %v1918_v63  ;;  %v1872_v54 = vld [vmem:[#allocation3] sm:$0xff] }
 0x67e   : > { %v1742_v12 = vmul.f32 0.5, %v1741_v11 }
 0x67f   : > { %2206 = vst.msk [vmem:[%s2974_s1 + $0x20] sm:$0xff] %vm1045_vm11, %v1534_v1 }
 0x680   : > { %v1743_v18 = vsub.f32 1.5, %v1742_v12 }
 0x682   : > { %v1511_v7 = vpop.xlane.xlu2 %1510  ;;  %v1917_v8 = vpop.xlane.xlu0 %1916  ;;  %v1744_v51 = vmul.f32 %v2398_v3, %v1743_v18 }
 0x683   : > { %v1513_v35 = vmax.f32 %v1511_v7, 1e-24  ;;  %v1919_v20 = vadd.f32 %v1917_v8, %v1899_v6 }
 0x684   : > { %v1929_v9 = vld [vmem:[#allocation3 + $0x10] sm:$0xff]  ;;  %v1748_v27 = vsel %vm1747_vm12, %v2398_v3, %v1744_v51 }
 0x685   : > { %2399 = vrsqrt.f32 %v1513_v35  ;;  %1933 = vrot.lane.b32.xlu1 %v1929_v9, %s2445_s24  ;;  %1921 = vst.msk [vmem:[#allocation3 + $0x18] sm:$0xff] %vm1757_vm1, %v1919_v20  ;;  %vm1530_vm13 = vweird.f32 %v1513_v35  ;;  %v1750_v32 = vmul.f32 %v1748_v27, %v3082_v59 }
 0x687   : > { %2209 = vst.msk [vmem:[%s2974_s1 + $0x38] sm:$0xff] %vm1045_vm11, %v1750_v32 }
 0x68a   : > { %v1888_v46 = vpop.xlane.xlu2 %1887  ;;  %v1723_v15 = vpop.xlane.xlu0 %1722 }
 0x68b   : > { %v2400_v14 = vpop.eup %2399  ;;  %v1892_v5 = vadd.f32 %v1888_v46, %v1872_v54  ;;  %v1727_v17 = vmax.f32 %v1723_v15, 1e-24 }
 0x68c   : > { %v1525_v16 = vmul.f32 %v2400_v14, %v1513_v35  ;;  %v1930_v22 = vld [vmem:[#allocation3 + $0x18] sm:$0xff]  ;;  %vm1531_vm9 = vweird.f32 %v2400_v14 }
 0x68d   : > { %1895 = vst.msk [vmem:[#allocation3] sm:$0xff] %vm1757_vm1, %v1892_v5  ;;  %2401 = vrsqrt.f32 %v1727_v17  ;;  %1935 = vrot.lane.b32.xlu2 %v1930_v22, %s2445_s24  ;;  %vm1532_vm14 = vmor %vm1530_vm13, %vm1531_vm9  ;;  %vm1735_vm3 = vweird.f32 %v1727_v17 }
 0x68e   : > { %v1526_v23 = vmul.f32 %v2400_v14, %v1525_v16 }
 0x690   : > { %v1527_v24 = vmul.f32 0.5, %v1526_v23 }
 0x692   : > { %v1528_v26 = vsub.f32 1.5, %v1527_v24  ;;  %v1891_v38 = vpop.xlane.xlu0 %1890 }
 0x693   : > { %v2402_v56 = vpop.eup %2401  ;;  %v1893_v4 = vadd.f32 %v1891_v38, %v1873_v13 }
 0x694   : > { %v1529_v10 = vmul.f32 %v2400_v14, %v1528_v26  ;;  %v1925_v43 = vld [vmem:[#allocation3] sm:$0xff]  ;;  %v1730_v28 = vmul.f32 %v2402_v56, %v1727_v17  ;;  %vm1736_vm15 = vweird.f32 %v2402_v56 }
 0x695   : > { %1927 = vst.msk [vmem:[%s3113_s10] sm:$0xff] %vm1757_vm1, %v1925_v43  ;;  %vm1737_vm4 = vmor %vm1735_vm3, %vm1736_vm15 }
 0x696   : > { %v1533_v29 = vsel %vm1532_vm14, %v2400_v14, %v1529_v10  ;;  %1896 = vst.msk [vmem:[#allocation3 + $0x8] sm:$0xff] %vm1757_vm1, %v1893_v4  ;;  %v1731_v31 = vmul.f32 %v2402_v56, %v1730_v28 }
 0x697   : > { %v1535_v30 = vmul.f32 %v1533_v29, %v3088_v25 }
 0x698   : > { %v1732_v33 = vmul.f32 0.5, %v1731_v31 }
 0x699   : > { %2207 = vst.msk [vmem:[%s2974_s1 + $0x28] sm:$0xff] %vm1045_vm11, %v1535_v30 }
 0x69a   : > { %v1733_v36 = vsub.f32 1.5, %v1732_v33 }
 0x69c   : > { %v1734_v2 = vmul.f32 %v2402_v56, %v1733_v36 }
 0x69d   : > { %v1926_v37 = vld [vmem:[#allocation3 + $0x8] sm:$0xff] }
 0x69e   : > { %1928 = vst.msk [vmem:[%s3113_s10 + $0x8] sm:$0xff] %vm1757_vm1, %v1926_v37  ;;  %v1738_v39 = vsel %vm1737_vm4, %v2402_v56, %v1734_v2 }
 0x69f   : > { %v1749_v25 = vmul.f32 %v1738_v39, %v3093_v60 }
 0x6a1   : > { %2208 = vst.msk [vmem:[%s2974_s1 + $0x30] sm:$0xff] %vm1045_vm11, %v1749_v25 }
 0x6e7   : > { %v1936_v59 = vpop.permute.xlu2 %1935 }
 0x6e8   : > { %1941 = vst.msk [vmem:[%s3113_s10 + $0x8] sm:$0xff] %vm1939_vm5, %v1936_v59 }
 0x6f7   : > { %v1934_v40 = vpop.permute.xlu1 %1933 }
 0x6f8   : > { %1940 = vst.msk [vmem:[%s3113_s10] sm:$0xff] %vm1939_vm5, %v1934_v40 }
 0x6f9 PF: > { %s32_s3 = sadd.s32 1, %s2441_s3   ;;  %s3211_s29 = sld [smem:[#allocation8_spill]] }
 0x6fa   : > { %p29_p11 = scmp.ge.s32.totalorder %s32_s3, 4   ;;  %s3212_s22 = sld [smem:[#allocation7_spill]] }
 0x6fb   : > { %s3213_s2 = smov %s2429_s25  ;;  %s3215_s26 = smov %s2437_s27 }
 0x6fc   :  { %31 = sbr.rel (!%p29_p11) target bundleno = 14 (0xe), region = 267 }
 0x6ff   : > { %s3214_s25 = smov %s3211_s29 }
 0x700   : > { %s3216_s27 = smov %s3212_s22 }

</bundles_post_ra>
